<compile_context>
chip_gen: v7x
topology: tpu7x:2x2x1
jax: 0.10.0
libtpu: 0.0.40
codegen_flags: <defaults>
</compile_context>

<pallas_src>
import functools

import jax
import jax.numpy as jnp
from jax import lax
from jax.experimental import pallas as pl
from jax.experimental.pallas import tpu as pltpu

_ACT_DTYPE = jnp.bfloat16


# ----------------------------------------------------------------------------
# Hardware-dependent knobs
# ----------------------------------------------------------------------------
@functools.lru_cache(maxsize=None)
def _is_v5e():
    try:
        kind = jax.devices()[0].device_kind.lower()
        return ("v5 lite" in kind) or ("v5e" in kind) or ("v5litepod" in kind)
    except Exception:
        return False


@functools.lru_cache(maxsize=None)
def _vmem_limit_bytes():
    # ~25% headroom for double buffers / compiler scratch.  v7x only has 64 MiB
    # of physical VMEM, so never request the full capacity.
    try:
        cap = int(pltpu.get_tpu_info().vmem_capacity_bytes)
    except Exception:
        cap = 64 * 1024 * 1024
    return max(32 * 1024 * 1024, (cap * 3) // 4)


def _pick_tco(cout):
    if cout % 256 == 0 and not _is_v5e():
        return 256          # fill the 256-wide MXU N dimension on v6e/v7x
    if cout % 128 == 0:
        return 128
    return cout


def _pick_th(H, W, cin, tco, fuse):
    """Largest row tile (divisor of H, even when pooling) within VMEM budgets."""
    in_row = W * 3 * cin * 2          # bf16, kx-folded input bytes per padded row
    acc_row = W * tco * 4             # f32 accumulator bytes per output row
    cap = (2 << 20) // max(in_row, 1)
    cap = min(cap, (4 << 20) // max(acc_row, 1))
    if fuse:
        # pool staging scratch is (th//2, 2, W//2, 2, tco) f32; Mosaic pads the
        # minor (2, tco) tile to (8, >=128)  ->  ~4-8x footprint, budget ~6 MiB.
        pool_row = W * max(tco, 128) * 4 * 4
        cap = min(cap, (6 << 20) // max(pool_row, 1))
    step = 2 if fuse else 1
    cap = max(cap, step)
    cap = min(cap, H)
    best = step if (H % step == 0) else H
    for d in range(step, cap + 1, step):
        if H % d == 0:
            best = d
    return best


# ----------------------------------------------------------------------------
# Conv 3x3 (padding=1) + bias + ReLU, spatial flattened into the matmul M dim
# ----------------------------------------------------------------------------
def _conv3x3_kernel(x_ref, w_ref, b_ref, o_ref, acc_ref, *, W):
    # x_ref : ((th+2)*W, 3*Cin) bf16    kx-folded, row-padded input tile
    # w_ref : (3, 3*Cin, tco)   bf16    per-ky weight slabs
    # b_ref : (1, tco)          f32
    # o_ref : (th*W, tco)       bf16
    # acc_ref: (th*W, tco)      f32 scratch
    M = o_ref.shape[0]
    acc_ref[...] = jnp.dot(x_ref[pl.ds(0, M), :], w_ref[0],
                           preferred_element_type=jnp.float32)
    acc_ref[...] += jnp.dot(x_ref[pl.ds(W, M), :], w_ref[1],
                            preferred_element_type=jnp.float32)
    acc_ref[...] += jnp.dot(x_ref[pl.ds(2 * W, M), :], w_ref[2],
                            preferred_element_type=jnp.float32)
    o_ref[...] = jnp.maximum(acc_ref[...] + b_ref[...], 0.0).astype(o_ref.dtype)


def _conv3x3_pool_kernel(x_ref, w_ref, b_ref, o_ref, p_ref, acc_ref, pool_ref,
                         *, W, th, pool_mode):
    # Same as above plus a fused 2x2/stride-2 pool epilogue.
    # p_ref   : (th*W//4, tco) bf16 pooled output
    # pool_ref: (th//2, 2, W//2, 2, tco) f32 staging scratch
    M = th * W
    C = o_ref.shape[-1]
    acc_ref[...] = jnp.dot(x_ref[pl.ds(0, M), :], w_ref[0],
                           preferred_element_type=jnp.float32)
    acc_ref[...] += jnp.dot(x_ref[pl.ds(W, M), :], w_ref[1],
                            preferred_element_type=jnp.float32)
    acc_ref[...] += jnp.dot(x_ref[pl.ds(2 * W, M), :], w_ref[2],
                            preferred_element_type=jnp.float32)
    y = jnp.maximum(acc_ref[...] + b_ref[...], 0.0)          # (M, C) f32
    o_ref[...] = y.astype(o_ref.dtype)

    pool_ref[...] = y.reshape(th // 2, 2, W // 2, 2, C)      # leading-dim split
    p00 = pool_ref[:, 0, :, 0, :]
    p01 = pool_ref[:, 0, :, 1, :]
    p10 = pool_ref[:, 1, :, 0, :]
    p11 = pool_ref[:, 1, :, 1, :]
    if pool_mode == "max":
        p = jnp.maximum(jnp.maximum(p00, p01), jnp.maximum(p10, p11))
    else:  # avg
        p = (p00 + p01 + p10 + p11) * 0.25
    p_ref[...] = p.reshape(M // 4, C).astype(p_ref.dtype)


def conv3x3_relu(x, w, b, *, pool=None, row_tile=None):
    """x: (N,H,W,Cin).  w: (Cout,Cin,3,3) (PyTorch layout).  b: (Cout,).

    Returns y (N,H,W,Cout) in bf16; if `pool` is 'max'/'avg', returns (y, pooled).
    """
    N, H, W, Cin = x.shape
    Cout = w.shape[0]
    fuse = pool is not None and H % 2 == 0 and W % 2 == 0
    tco = _pick_tco(Cout)
    th = _pick_th(H, W, Cin, tco, fuse) if row_tile is None else row_tile
    assert H % th == 0 and (not fuse or th % 2 == 0)
    nh = H // th
    M = th * W
    ncout = Cout // tco

    # ---- glue: kx-fold into channels, row-tile with a 2-row halo ------------
    xb = x.astype(_ACT_DTYPE)
    xp = jnp.pad(xb, ((0, 0), (1, 1), (1, 1), (0, 0)))       # (N, H+2, W+2, Cin)
    xsh = jnp.concatenate([xp[:, :, k:k + W, :] for k in range(3)], axis=-1)
    # xsh[n, h, w, kx*Cin + c] == xp[n, h, w+kx, c]           (N, H+2, W, 3Cin)
    if nh == 1:
        xt = xsh.reshape(N, 1, (H + 2) * W, 3 * Cin)
    else:
        xt = jnp.stack([xsh[:, hi * th:hi * th + th + 2] for hi in range(nh)],
                       axis=1).reshape(N, nh, (th + 2) * W, 3 * Cin)
    w3 = jnp.transpose(w, (2, 3, 1, 0)).reshape(3, 3 * Cin, Cout).astype(_ACT_DTYPE)
    b2 = b.reshape(1, Cout).astype(jnp.float32)

    # ---- grid order: put the bigger slab (weight vs input) on the outer axis -
    weight_outer = (3 * tco) > ((th + 2) * W)
    if weight_outer:
        grid = (ncout, N, nh)
        xmap = lambda j, n, hi: (n, hi, 0, 0)
        wmap = lambda j, n, hi: (0, 0, j)
        bmap = lambda j, n, hi: (0, j)
        omap = lambda j, n, hi: (n, hi, 0, j)
    else:
        grid = (N, nh, ncout)
        xmap = lambda n, hi, j: (n, hi, 0, 0)
        wmap = lambda n, hi, j: (0, 0, j)
        bmap = lambda n, hi, j: (0, j)
        omap = lambda n, hi, j: (n, hi, 0, j)

    in_specs = [
        pl.BlockSpec((None, None, (th + 2) * W, 3 * Cin), xmap),
        pl.BlockSpec((3, 3 * Cin, tco), wmap),
        pl.BlockSpec((1, tco), bmap),
    ]
    scratch = [pltpu.VMEM((M, tco), jnp.float32)]
    cparams = pltpu.CompilerParams(
        dimension_semantics=("parallel", "parallel", "parallel"),
        vmem_limit_bytes=_vmem_limit_bytes())

    if fuse:
        out_shape = (jax.ShapeDtypeStruct((N, nh, M, Cout), _ACT_DTYPE),
                     jax.ShapeDtypeStruct((N, nh, M // 4, Cout), _ACT_DTYPE))
        out_specs = (pl.BlockSpec((None, None, M, tco), omap),
                     pl.BlockSpec((None, None, M // 4, tco), omap))
        scratch = scratch + [pltpu.VMEM((th // 2, 2, W // 2, 2, tco), jnp.float32)]
        kern = functools.partial(_conv3x3_pool_kernel, W=W, th=th, pool_mode=pool)
    else:
        out_shape = jax.ShapeDtypeStruct((N, nh, M, Cout), _ACT_DTYPE)
        out_specs = pl.BlockSpec((None, None, M, tco), omap)
        kern = functools.partial(_conv3x3_kernel, W=W)

    res = pl.pallas_call(
        kern,
        out_shape=out_shape,
        grid_spec=pltpu.PrefetchScalarGridSpec(
            num_scalar_prefetch=0, grid=grid,
            in_specs=in_specs, out_specs=out_specs,
            scratch_shapes=scratch),
        compiler_params=cparams,
    )(xt, w3, b2)

    if fuse:
        y, p = res
        y = y.reshape(N, H, W, Cout)
        p = p.reshape(N, H // 2, W // 2, Cout)
        return y, p
    y = res.reshape(N, H, W, Cout)
    if pool is not None:       # odd spatial dims: fall back to standalone pool
        return y, pool2x2(y, mode=pool)
    return y


# ----------------------------------------------------------------------------
# Standalone 2x2/stride-2 pooling (fallback path only; pools are normally fused)
# ----------------------------------------------------------------------------
def _pool2x2_kernel(x_ref, o_ref, *, mode):
    # x_ref: (1, Ho, 2, Wo, 2C)  (row pair on dim 2, column pair packed in lanes)
    C = o_ref.shape[-1]
    a = x_ref[0, :, 0, :, :]
    b = x_ref[0, :, 1, :, :]
    if mode == "max":
        r = jnp.maximum(a, b)
        o_ref[0] = jnp.maximum(r[:, :, :C], r[:, :, C:])
    else:
        r = a.astype(jnp.float32) + b.astype(jnp.float32)
        o_ref[0] = ((r[:, :, :C] + r[:, :, C:]) * 0.25).astype(o_ref.dtype)


def pool2x2(x, mode="max"):
    N, H, W, C = x.shape
    Ho, Wo = H // 2, W // 2
    x = x[:, :2 * Ho, :2 * Wo, :]
    xr = x.reshape(N, Ho, 2, Wo, 2 * C)
    return pl.pallas_call(
        functools.partial(_pool2x2_kernel, mode=mode),
        out_shape=jax.ShapeDtypeStruct((N, Ho, Wo, C), x.dtype),
        grid_spec=pltpu.PrefetchScalarGridSpec(
            num_scalar_prefetch=0, grid=(N,),
            in_specs=[pl.BlockSpec((1, Ho, 2, Wo, 2 * C),
                                   lambda n: (n, 0, 0, 0, 0))],
            out_specs=pl.BlockSpec((1, Ho, Wo, C), lambda n: (n, 0, 0, 0))),
        compiler_params=pltpu.CompilerParams(dimension_semantics=("parallel",)),
    )(xr)


# ----------------------------------------------------------------------------
# VGG network (same topology / names as the PyTorch module)
# ----------------------------------------------------------------------------
_CFG = [
    ("conv1_1", 3, 64), ("conv1_2", 64, 64),
    ("conv2_1", 64, 128), ("conv2_2", 128, 128),
    ("conv3_1", 128, 256), ("conv3_2", 256, 256), ("conv3_3", 256, 256), ("conv3_4", 256, 256),
    ("conv4_1", 256, 512), ("conv4_2", 512, 512), ("conv4_3", 512, 512), ("conv4_4", 512, 512),
    ("conv5_1", 512, 512), ("conv5_2", 512, 512), ("conv5_3", 512, 512), ("conv5_4", 512, 512),
]


def init_params(key):
    """Deterministic synthetic weights (PyTorch Conv2d layout (Cout,Cin,3,3))."""
    params = {}
    for i, (name, cin, cout) in enumerate(_CFG):
        kw, kb = jax.random.split(jax.random.fold_in(key, i))
        w = jax.random.normal(kw, (cout, cin, 3, 3), jnp.float32) * jnp.sqrt(2.0 / (cin * 9))
        b = jax.random.normal(kb, (cout,), jnp.float32) * 0.01
        params[name] = (w, b)
    return params


def _forward_nhwc(params, x, pool="max"):
    c = lambda name, h: conv3x3_relu(h, *params[name])
    cp = lambda name, h: conv3x3_relu(h, *params[name], pool=pool)
    out = {}
    out["r11"] = c("conv1_1", x)
    out["r12"], out["p1"] = cp("conv1_2", out["r11"])
    out["r21"] = c("conv2_1", out["p1"])
    out["r22"], out["p2"] = cp("conv2_2", out["r21"])
    out["r31"] = c("conv3_1", out["p2"])
    out["r32"] = c("conv3_2", out["r31"])
    out["r33"] = c("conv3_3", out["r32"])
    out["r34"], out["p3"] = cp("conv3_4", out["r33"])
    out["r41"] = c("conv4_1", out["p3"])
    out["r42"] = c("conv4_2", out["r41"])
    out["r43"] = c("conv4_3", out["r42"])
    out["r44"], out["p4"] = cp("conv4_4", out["r43"])
    out["r51"] = c("conv5_1", out["p4"])
    out["r52"] = c("conv5_2", out["r51"])
    out["r53"] = c("conv5_3", out["r52"])
    out["r54"], out["p5"] = cp("conv5_4", out["r53"])
    return out


def vgg_forward(params, x_nchw, out_keys, pool="max"):
    """Matches VGG.forward(x, out_keys): returns [out[k] for k in out_keys], NCHW f32."""
    x = jnp.transpose(x_nchw, (0, 2, 3, 1))                  # NCHW -> NHWC
    out = _forward_nhwc(params, x, pool=pool)
    return [jnp.transpose(out[k], (0, 3, 1, 2)).astype(jnp.float32) for k in out_keys]


# ----------------------------------------------------------------------------
# XLA references (same bf16-operand / f32-accumulate numerics as the kernels)
# ----------------------------------------------------------------------------
def _ref_conv_relu(x_nhwc, w, b):
    y = lax.conv_general_dilated(
        x_nhwc.astype(jnp.bfloat16),
        jnp.transpose(w, (2, 3, 1, 0)).astype(jnp.bfloat16),
        window_strides=(1, 1), padding=((1, 1), (1, 1)),
        dimension_numbers=("NHWC", "HWIO", "NHWC"),
        preferred_element_type=jnp.float32)
    return jnp.maximum(y + b[None, None, None, :], 0.0)


def _ref_maxpool(x_nhwc_f32):
    return lax.reduce_window(x_nhwc_f32, -jnp.inf, lax.max,
                             (1, 2, 2, 1), (1, 2, 2, 1), "VALID")


if __name__ == "__main__":
    key = jax.random.PRNGKey(0)
    params = init_params(key)
    # 32x32 is the smallest spatial size for which all 5 pools are valid.
    x_nchw = jax.random.normal(jax.random.fold_in(key, 999), (2, 3, 32, 32), jnp.float32)
    x_nhwc = jnp.transpose(x_nchw, (0, 2, 3, 1))

    # ---- layer-local spot checks (no cross-layer error compounding) ---------
    out = _forward_nhwc(params, x_nhwc, pool="max")

    def _close(a, b, tol, what):
        a = a.astype(jnp.float32)
        b = b.astype(jnp.float32)
        ok = bool(jnp.allclose(a, b, atol=tol, rtol=tol))
        assert ok, (what, float(jnp.max(jnp.abs(a - b))))

    _close(out["r11"], _ref_conv_relu(x_nhwc, *params["conv1_1"]), 2e-2, "r11")
    _close(out["r12"], _ref_conv_relu(out["r11"], *params["conv1_2"]), 2e-2, "r12")
    _close(out["p1"], _ref_maxpool(out["r12"].astype(jnp.float32)), 1e-3, "p1")
    _close(out["r41"], _ref_conv_relu(out["p3"], *params["conv4_1"]), 2e-2, "r41")
    _close(out["r51"], _ref_conv_relu(out["p4"], *params["conv5_1"]), 2e-2, "r51")
    _close(out["p5"], _ref_maxpool(out["r54"].astype(jnp.float32)), 1e-3, "p5")

    # ---- exercise the row-tiled (nh > 1) path with the fused pool -----------
    y8, p8 = conv3x3_relu(out["r11"], *params["conv1_2"], pool="max", row_tile=8)
    _close(y8, out["r12"], 2e-2, "row_tile conv")
    _close(p8, out["p1"], 2e-2, "row_tile pool")

    # ---- full forward, jit'd, NCHW in / NCHW f32 out -------------------------
    out_keys = ("r11", "r21", "r31", "r41", "r51", "p5")
    fwd = jax.jit(functools.partial(vgg_forward, out_keys=out_keys, pool="max"))
    outs = jax.block_until_ready(fwd(params, x_nchw))

    expected = {"r11": (2, 64, 32, 32), "r21": (2, 128, 16, 16),
                "r31": (2, 256, 8, 8), "r41": (2, 512, 4, 4),
                "r51": (2, 512, 2, 2), "p5": (2, 512, 1, 1)}
    for k, o in zip(out_keys, outs):
        assert o.shape == expected[k], (k, o.shape)
        assert o.dtype == jnp.float32
        assert bool(jnp.all(jnp.isfinite(o)))

    print("KERNEL_OK")
</pallas_src>

<mosaic_0001>
module attributes {stable_mosaic.version = 11 : i64} {
  func.func @_conv3x3_kernel(%arg0: i32, %arg1: i32, %arg2: i32, %arg3: memref<1x1x1088x9xbf16, #tpu.memory_space<vmem>>, %arg4: memref<3x9x64xbf16, #tpu.memory_space<vmem>>, %arg5: memref<1x64xf32, #tpu.memory_space<vmem>>, %arg6: memref<1x1x1024x64xbf16, #tpu.memory_space<vmem>>, %arg7: memref<1024x64xf32, #tpu.memory_space<vmem>>) attributes {dimension_semantics = [#tpu.dimension_semantics<parallel>, #tpu.dimension_semantics<parallel>, #tpu.dimension_semantics<parallel>], iteration_bounds = array<i64: 2, 1, 1>, scalar_prefetch = 0 : i64, scratch_operands = 1 : i64, tpu.core_type = #tpu.core_type<tc>, window_params = [{transform_indices = @transform_0, window_bounds = array<i64: 1, 1, 1088, 9>}, {transform_indices = @transform_1, window_bounds = array<i64: 3, 9, 64>}, {transform_indices = @transform_2, window_bounds = array<i64: 1, 64>}, {transform_indices = @transform_3, window_bounds = array<i64: 1, 1, 1024, 64>}]} {
    %c0 = arith.constant 0 : index
    %c0_0 = arith.constant 0 : index
    %c0_1 = arith.constant 0 : index
    %c0_2 = arith.constant 0 : index
    %0 = vector.load %arg3[%c0, %c0_0, %c0_1, %c0_2] : memref<1x1x1088x9xbf16, #tpu.memory_space<vmem>>, vector<1x1x1024x9xbf16>
    %1 = vector.shape_cast %0 : vector<1x1x1024x9xbf16> to vector<1024x9xbf16>
    %c0_3 = arith.constant 0 : index
    %c0_4 = arith.constant 0 : index
    %c0_5 = arith.constant 0 : index
    %2 = vector.load %arg4[%c0_3, %c0_4, %c0_5] : memref<3x9x64xbf16, #tpu.memory_space<vmem>>, vector<1x9x64xbf16>
    %3 = vector.shape_cast %2 : vector<1x9x64xbf16> to vector<9x64xbf16>
    %cst = arith.constant dense<0.000000e+00> : vector<1024x64xf32>
    %4 = tpu.matmul %1, %3, %cst {dimension_numbers = #tpu.dot_dimension_numbers<[1], [0], [0], [1], [0, 0, 1, 1], [], []>} : vector<1024x9xbf16>, vector<9x64xbf16>, vector<1024x64xf32> -> vector<1024x64xf32>
    %c0_6 = arith.constant 0 : index
    %c0_7 = arith.constant 0 : index
    %5 = vector.load %arg7[%c0_6, %c0_7] : memref<1024x64xf32, #tpu.memory_space<vmem>>, vector<1024x64xf32>
    tpu.vector_store %arg7[%c0_6, %c0_7], %4 {strides = array<i32>} : memref<1024x64xf32, #tpu.memory_space<vmem>>, vector<1024x64xf32>,
    %c0_8 = arith.constant 0 : index
    %c0_9 = arith.constant 0 : index
    %6 = vector.load %arg7[%c0_8, %c0_9] : memref<1024x64xf32, #tpu.memory_space<vmem>>, vector<1024x64xf32>
    %c0_10 = arith.constant 0 : index
    %c0_11 = arith.constant 0 : index
    %c32 = arith.constant 32 : index
    %c0_12 = arith.constant 0 : index
    %7 = vector.load %arg3[%c0_10, %c0_11, %c32, %c0_12] : memref<1x1x1088x9xbf16, #tpu.memory_space<vmem>>, vector<1x1x1024x9xbf16>
    %8 = vector.shape_cast %7 : vector<1x1x1024x9xbf16> to vector<1024x9xbf16>
    %c1 = arith.constant 1 : index
    %c0_13 = arith.constant 0 : index
    %c0_14 = arith.constant 0 : index
    %9 = vector.load %arg4[%c1, %c0_13, %c0_14] : memref<3x9x64xbf16, #tpu.memory_space<vmem>>, vector<1x9x64xbf16>
    %10 = vector.shape_cast %9 : vector<1x9x64xbf16> to vector<9x64xbf16>
    %cst_15 = arith.constant dense<0.000000e+00> : vector<1024x64xf32>
    %11 = tpu.matmul %8, %10, %cst_15 {dimension_numbers = #tpu.dot_dimension_numbers<[1], [0], [0], [1], [0, 0, 1, 1], [], []>} : vector<1024x9xbf16>, vector<9x64xbf16>, vector<1024x64xf32> -> vector<1024x64xf32>
    %12 = arith.addf %6, %11 : vector<1024x64xf32>
    %c0_16 = arith.constant 0 : index
    %c0_17 = arith.constant 0 : index
    %13 = vector.load %arg7[%c0_16, %c0_17] : memref<1024x64xf32, #tpu.memory_space<vmem>>, vector<1024x64xf32>
    tpu.vector_store %arg7[%c0_16, %c0_17], %12 {strides = array<i32>} : memref<1024x64xf32, #tpu.memory_space<vmem>>, vector<1024x64xf32>,
    %c0_18 = arith.constant 0 : index
    %c0_19 = arith.constant 0 : index
    %14 = vector.load %arg7[%c0_18, %c0_19] : memref<1024x64xf32, #tpu.memory_space<vmem>>, vector<1024x64xf32>
    %c0_20 = arith.constant 0 : index
    %c0_21 = arith.constant 0 : index
    %c64 = arith.constant 64 : index
    %c0_22 = arith.constant 0 : index
    %15 = vector.load %arg3[%c0_20, %c0_21, %c64, %c0_22] : memref<1x1x1088x9xbf16, #tpu.memory_space<vmem>>, vector<1x1x1024x9xbf16>
    %16 = vector.shape_cast %15 : vector<1x1x1024x9xbf16> to vector<1024x9xbf16>
    %c2 = arith.constant 2 : index
    %c0_23 = arith.constant 0 : index
    %c0_24 = arith.constant 0 : index
    %17 = vector.load %arg4[%c2, %c0_23, %c0_24] : memref<3x9x64xbf16, #tpu.memory_space<vmem>>, vector<1x9x64xbf16>
    %18 = vector.shape_cast %17 : vector<1x9x64xbf16> to vector<9x64xbf16>
    %cst_25 = arith.constant dense<0.000000e+00> : vector<1024x64xf32>
    %19 = tpu.matmul %16, %18, %cst_25 {dimension_numbers = #tpu.dot_dimension_numbers<[1], [0], [0], [1], [0, 0, 1, 1], [], []>} : vector<1024x9xbf16>, vector<9x64xbf16>, vector<1024x64xf32> -> vector<1024x64xf32>
    %20 = arith.addf %14, %19 : vector<1024x64xf32>
    %c0_26 = arith.constant 0 : index
    %c0_27 = arith.constant 0 : index
    %21 = vector.load %arg7[%c0_26, %c0_27] : memref<1024x64xf32, #tpu.memory_space<vmem>>, vector<1024x64xf32>
    tpu.vector_store %arg7[%c0_26, %c0_27], %20 {strides = array<i32>} : memref<1024x64xf32, #tpu.memory_space<vmem>>, vector<1024x64xf32>,
    %c0_28 = arith.constant 0 : index
    %c0_29 = arith.constant 0 : index
    %22 = vector.load %arg7[%c0_28, %c0_29] : memref<1024x64xf32, #tpu.memory_space<vmem>>, vector<1024x64xf32>
    %c0_30 = arith.constant 0 : index
    %c0_31 = arith.constant 0 : index
    %23 = vector.load %arg5[%c0_30, %c0_31] : memref<1x64xf32, #tpu.memory_space<vmem>>, vector<1x64xf32>
    %24 = vector.broadcast %23 : vector<1x64xf32> to vector<1024x64xf32>
    %25 = arith.addf %22, %24 : vector<1024x64xf32>
    %cst_32 = arith.constant 0.000000e+00 : f32
    %26 = vector.broadcast %cst_32 : f32 to vector<1024x64xf32>
    %27 = arith.maximumf %25, %26 : vector<1024x64xf32>
    %28 = arith.truncf %27 : vector<1024x64xf32> to vector<1024x64xbf16>
    %c0_33 = arith.constant 0 : index
    %c0_34 = arith.constant 0 : index
    %c0_35 = arith.constant 0 : index
    %c0_36 = arith.constant 0 : index
    %29 = vector.load %arg6[%c0_33, %c0_34, %c0_35, %c0_36] : memref<1x1x1024x64xbf16, #tpu.memory_space<vmem>>, vector<1x1x1024x64xbf16>
    %30 = vector.shape_cast %29 : vector<1x1x1024x64xbf16> to vector<1024x64xbf16>
    %31 = vector.shape_cast %28 : vector<1024x64xbf16> to vector<1x1x1024x64xbf16>
    tpu.vector_store %arg6[%c0_33, %c0_34, %c0_35, %c0_36], %31 {strides = array<i32>} : memref<1x1x1024x64xbf16, #tpu.memory_space<vmem>>, vector<1x1x1024x64xbf16>,
    return
  }
  func.func @transform_0(%arg0: i32, %arg1: i32, %arg2: i32) -> (i32, i32, i32, i32) {
    %c0_i32 = arith.constant 0 : i32
    %c0_i32_0 = arith.constant 0 : i32
    %c0_i32_1 = arith.constant 0 : i32
    return %arg0, %arg1, %c0_i32, %c0_i32_0 : i32, i32, i32, i32
  }
  func.func @transform_1(%arg0: i32, %arg1: i32, %arg2: i32) -> (i32, i32, i32) {
    %c0_i32 = arith.constant 0 : i32
    %c0_i32_0 = arith.constant 0 : i32
    %c0_i32_1 = arith.constant 0 : i32
    return %c0_i32, %c0_i32_0, %arg2 : i32, i32, i32
  }
  func.func @transform_2(%arg0: i32, %arg1: i32, %arg2: i32) -> (i32, i32) {
    %c0_i32 = arith.constant 0 : i32
    %c0_i32_0 = arith.constant 0 : i32
    return %c0_i32, %arg2 : i32, i32
  }
  func.func @transform_3(%arg0: i32, %arg1: i32, %arg2: i32) -> (i32, i32, i32, i32) {
    %c0_i32 = arith.constant 0 : i32
    %c0_i32_0 = arith.constant 0 : i32
    return %arg0, %arg1, %c0_i32, %arg2 : i32, i32, i32, i32
  }
}

</mosaic_0001>

<bundles_post_ra>
// kernel: tpu_custom_call.1
= control target key start
LH: loop header
LB: loop body
LE: loop exit
PB: predicated region body
PF: predicated region fallthrough
CT: control target
= control target key end

     0   :  { %s7425_s12 = smov 0   ;;  %s7427_s13 = smov 0   ;;  %s8668_s0 = inlined_call_operand.vmem [shape: bf16[2,1,1088,9], index: 0, kind: input, shape index: {}]   ;;  %s8669_s1 = inlined_call_operand.vmem [shape: bf16[3,9,64], index: 1, kind: input, shape index: {}]   ;;  %s8670_s2 = inlined_call_operand.vmem [shape: f32[1,64], index: 2, kind: input, shape index: {}]   ;;  %s8671_s3 = inlined_call_operand.vmem [shape: bf16[2,1,1024,64], index: 3, kind: output, shape index: {}]  }
   0x1   :  { %s7429_s14 = smov 0  }
   0x2 LB: > { %s32_s15 = sadd.s32 1, %s7398_s13  ;;  %p5914_p0 = scmp.ge.s32.totalorder %s7402_s14, 1  ;;  %s7402_s14 = sphi %s7429_s14, %s13_s14   ;;  %s7398_s13 = sphi %s7427_s13, %s8673_s13   ;;  %s7394_s12 = sphi %s7425_s12, %s8672_s12  }
   0x3   : > { %p34_p1 = scmp.ge.s32.totalorder %s32_s15, 2  ;;  %p183_p2 = scmp.lt.s32.totalorder %s7402_s14, 3 }
   0x5   : > { %s8675_s15 = smov (%p34_p1, %s32_s15), 0  ;;  %p184_p3 = pnand %p5914_p0, %p183_p2 }
   0x6   : > { %v7182_v0 = vld [vmem:[%s8669_s1] sm:$0x1f] (!%p184_p3)   ;;  %vm902_vm0 = vcmask (!%p184_p3), 1043456   ;;  %vm903_vm1 = vcmask (!%p184_p3), 1044480   ;;  %p225_p4 = scmp.lt.s32.totalorder (!%p184_p3), %s7394_s12, 1  ;;  %v7404_v1 = vmov (!%p184_p3), 65535  }
   0x7   : > { %187 = sbr.rel (%p184_p3) target bundleno = 642 (0x282), region = 32  ;;  %v904_v2 = vsel (!%p184_p3), %vm902_vm0, 4294967295, %v7404_v1  ;;  %v7184_v4 = vld [vmem:[%s8669_s1 + $0x8] sm:$0x1f] (!%p184_p3)   ;;  %v7190_v6 = vld [vmem:[%s8669_s1 + $0x10] sm:$0x1f] (!%p184_p3)  }
   0x8   : > { %v905_v3 = vsel (!%p184_p3), %vm903_vm1, %v904_v2, 0  ;;  %vm709_vm2 = vcmask (!%p184_p3), 72704   ;;  %vm1454_vm3 = vcmask (!%p184_p3), 523264   ;;  %vm5646_vm4 = vcmask (!%p184_p3), 519168  }
   0x9   : > { %v907_v5 = vand.u32 (!%p184_p3), %v7182_v0, %v905_v3  ;;  %v2360_v7 = vand.u32 (!%p184_p3), %v7184_v4, %v905_v3  ;;  %v3940_v8 = vand.u32 (!%p184_p3), %v7190_v6, %v905_v3 }
   0xb   : > { %7154 = vmatprep.subr.bf16.mxu1 (!%p184_p3), %v907_v5  ;;  %6764 = vmatprep.subr.bf16.mxu0 (!%p184_p3), %v907_v5 }
   0xc   : > { %7155 = vmatpush3.bf16.msra.mxu1 (!%p184_p3), %v907_v5  ;;  %6765 = vmatpush3.bf16.msra.mxu0 (!%p184_p3), %v907_v5 }
   0xd   : > { %6894 = vmatprep.subr.bf16.mxu1 (!%p184_p3), %v2360_v7  ;;  %7024 = vmatprep.subr.bf16.mxu0 (!%p184_p3), %v3940_v8 }
   0xe   : > { %s8677_s12 = smov (!%p225_p4, %s7394_s12), 1 }
   0xf   : > { %s7156_s22 = smul.u32 544, %s8677_s12  ;;  %s6440_s28 = sshll.u32 %s8677_s12, 9 }
  0x10   : > { %s7996_s4 = scalar_lea.vmem %s8671_s3, %s6440_s28 }
  0x11   : > { %s7458_s25 = scalar_lea.vmem %s8668_s0, %s7156_s22 }
  0x12   : > { %v7183_v9 = vld [vmem:[%s7458_s25 + $0x100] sm:$0xff]   ;;  %v7185_v10 = vld [vmem:[%s7458_s25 + $0x108] sm:$0xff]   ;;  %v7188_v13 = vld [vmem:[%s7458_s25 + $0x110] sm:$0xff]  }
  0x13   : > { %6830 = vmatprep.mubr.msk.bf16.mxu1 %vm709_vm2, %v7183_v9  ;;  %v7186_v11 = vld [vmem:[%s7458_s25] sm:$0xff]   ;;  %v7187_v12 = vld [vmem:[%s7458_s25 + $0x8] sm:$0xff]   ;;  %v7191_v14 = vld [vmem:[%s7458_s25 + $0x10] sm:$0xff]  }
  0x14   : > { %6831 = vmatmul.mubr.msk.bf16.vlgmr.msra.gmra.mrb[0].mxu1 %vm709_vm2, %v7185_v10  ;;  %6766 = vmatprep.mubr.msk.bf16.mxu0 %vm709_vm2, %v7186_v11  ;;  %v7189_v15 = vld [vmem:[%s7458_s25 + $0x118] sm:$0xff]   ;;  %v7193_v16 = vld [vmem:[%s7458_s25 + $0x120] sm:$0xff]   ;;  %v7194_v19 = vld [vmem:[%s7458_s25 + $0x128] sm:$0xff]  }
  0x15   : > { %6895 = vmatpush3.bf16.msra.mxu1 %v2360_v7  ;;  %6767 = vmatmul.mubr.msk.bf16.vlgmr.msra.gmra.mrb[0].mxu0 %vm709_vm2, %v7187_v12  ;;  %v7192_v17 = vld [vmem:[%s7458_s25 + $0x18] sm:$0xff]   ;;  %v7195_v18 = vld [vmem:[%s7458_s25 + $0x20] sm:$0xff]   ;;  %v7197_v20 = vld [vmem:[%s7458_s25 + $0x130] sm:$0xff]  }
  0x16   : > { %6834 = vmatprep.mubr.msk.bf16.mxu1 %vm709_vm2, %v7188_v13  ;;  %7025 = vmatpush3.bf16.msra.mxu0 %v3940_v8  ;;  %v7196_v21 = vld [vmem:[%s7458_s25 + $0x28] sm:$0xff]   ;;  %v7199_v22 = vld [vmem:[%s7458_s25 + $0x30] sm:$0xff]   ;;  %v7198_v23 = vld [vmem:[%s7458_s25 + $0x138] sm:$0xff]  }
  0x17   : > { %6770 = vmatprep.mubr.msk.bf16.mxu0 %vm709_vm2, %v7191_v14  ;;  %v7201_v24 = vld [vmem:[%s7458_s25 + $0x140] sm:$0xff]   ;;  %v7200_v25 = vld [vmem:[%s7458_s25 + $0x38] sm:$0xff]   ;;  %v7202_v27 = vld [vmem:[%s7458_s25 + $0x148] sm:$0xff]  }
  0x18   : > { %v7203_v26 = vld [vmem:[%s7458_s25 + $0x40] sm:$0xff]   ;;  %v7205_v28 = vld [vmem:[%s7458_s25 + $0x150] sm:$0xff]   ;;  %v7204_v29 = vld [vmem:[%s7458_s25 + $0x48] sm:$0xff]  }
  0x19   : > { %v7207_v30 = vld [vmem:[%s7458_s25 + $0x50] sm:$0xff]   ;;  %v7206_v31 = vld [vmem:[%s7458_s25 + $0x158] sm:$0xff]   ;;  %v7209_v32 = vld [vmem:[%s7458_s25 + $0x160] sm:$0xff]  }
  0x1a   : > { %v7208_v33 = vld [vmem:[%s7458_s25 + $0x58] sm:$0xff]   ;;  %v7211_v34 = vld [vmem:[%s7458_s25 + $0x60] sm:$0xff]   ;;  %v7210_v35 = vld [vmem:[%s7458_s25 + $0x168] sm:$0xff]  }
  0x1b   : > { %v7213_v36 = vld [vmem:[%s7458_s25 + $0x170] sm:$0xff]   ;;  %v7212_v37 = vld [vmem:[%s7458_s25 + $0x68] sm:$0xff]   ;;  %v7214_v39 = vld [vmem:[%s7458_s25 + $0x178] sm:$0xff]  }
  0x1c   : > { %6835 = vmatmul.mubr.msk.bf16.gmra.mrb[4].mxu1 %vm709_vm2, %v7189_v15  ;;  %v7215_v38 = vld [vmem:[%s7458_s25 + $0x70] sm:$0xff]   ;;  %v7217_v40 = vld [vmem:[%s7458_s25 + $0x180] sm:$0xff]   ;;  %v7216_v41 = vld [vmem:[%s7458_s25 + $0x78] sm:$0xff]  }
  0x1d   : > { %6838 = vmatprep.mubr.msk.bf16.mxu1 %vm709_vm2, %v7193_v16  ;;  %6771 = vmatmul.mubr.msk.bf16.gmra.mrb[4].mxu0 %vm709_vm2, %v7192_v17  ;;  %v7219_v42 = vld [vmem:[%s7458_s25 + $0x80] sm:$0xff]   ;;  %v7218_v43 = vld [vmem:[%s7458_s25 + $0x188] sm:$0xff]   ;;  %v7221_v44 = vld [vmem:[%s7458_s25 + $0x190] sm:$0xff]  }
  0x1e   : > { %6774 = vmatprep.mubr.msk.bf16.mxu0 %vm709_vm2, %v7195_v18  ;;  %v7220_v45 = vld [vmem:[%s7458_s25 + $0x88] sm:$0xff]   ;;  %v7223_v46 = vld [vmem:[%s7458_s25 + $0x90] sm:$0xff]   ;;  %v7222_v47 = vld [vmem:[%s7458_s25 + $0x198] sm:$0xff]  }
  0x1f   : > { %v7225_v48 = vld [vmem:[%s7458_s25 + $0x1a0] sm:$0xff]   ;;  %v7224_v49 = vld [vmem:[%s7458_s25 + $0x98] sm:$0xff]   ;;  %v7226_v51 = vld [vmem:[%s7458_s25 + $0x1a8] sm:$0xff]  }
  0x20   : > { %v7227_v50 = vld [vmem:[%s7458_s25 + $0xa0] sm:$0xff]   ;;  %v7229_v52 = vld [vmem:[%s7458_s25 + $0x1b0] sm:$0xff]   ;;  %v7228_v53 = vld [vmem:[%s7458_s25 + $0xa8] sm:$0xff]  }
  0x21   : > { %v7231_v54 = vld [vmem:[%s7458_s25 + $0xb0] sm:$0xff]   ;;  %v7230_v55 = vld [vmem:[%s7458_s25 + $0x1b8] sm:$0xff]   ;;  %v7233_v56 = vld [vmem:[%s7458_s25 + $0x1c0] sm:$0xff]  }
  0x22   : > { %v7232_v57 = vld [vmem:[%s7458_s25 + $0xb8] sm:$0xff]   ;;  %v7235_v58 = vld [vmem:[%s7458_s25 + $0xc0] sm:$0xff]   ;;  %v7234_v59 = vld [vmem:[%s7458_s25 + $0x1c8] sm:$0xff]  }
  0x23   : > { %v7237_v60 = vld [vmem:[%s7458_s25 + $0x1d0] sm:$0xff]   ;;  %v7236_v61 = vld [vmem:[%s7458_s25 + $0xc8] sm:$0xff]   ;;  %v7238_v63 = vld [vmem:[%s7458_s25 + $0x1d8] sm:$0xff]  }
  0x24   : > { %6839 = vmatmul.mubr.msk.bf16.gmra.mrb[8].mxu1 %vm709_vm2, %v7194_v19  ;;  %v7239_v62 = vld [vmem:[%s7458_s25 + $0xd0] sm:$0xff]   ;;  %v7241_v0 = vld [vmem:[%s7458_s25 + $0x1e0] sm:$0xff]   ;;  %v7240_v1 = vld [vmem:[%s7458_s25 + $0xd8] sm:$0xff]  }
  0x25   : > { %6842 = vmatprep.mubr.msk.bf16.mxu1 %vm709_vm2, %v7197_v20  ;;  %6775 = vmatmul.mubr.msk.bf16.gmra.mrb[8].mxu0 %vm709_vm2, %v7196_v21  ;;  %v7243_v2 = vld [vmem:[%s7458_s25 + $0xe0] sm:$0xff]   ;;  %v7242_v3 = vld [vmem:[%s7458_s25 + $0x1e8] sm:$0xff]   ;;  %v7245_v4 = vld [vmem:[%s7458_s25 + $0x1f0] sm:$0xff]  }
  0x26   : > { %6778 = vmatprep.mubr.msk.bf16.mxu0 %vm709_vm2, %v7199_v22  ;;  %v7244_v5 = vld [vmem:[%s7458_s25 + $0xe8] sm:$0xff]   ;;  %v7247_v6 = vld [vmem:[%s7458_s25 + $0xf0] sm:$0xff]   ;;  %v7246_v7 = vld [vmem:[%s7458_s25 + $0x1f8] sm:$0xff]  }
  0x27   : > { %v7249_v8 = vld [vmem:[%s7458_s25 + $0x10] sm:$0xff]   ;;  %v7248_v9 = vld [vmem:[%s7458_s25 + $0xf8] sm:$0xff]   ;;  %v7251_v10 = vld [vmem:[%s7458_s25 + $0x20] sm:$0xff]  }
  0x28   : > { %v7250_v11 = vld [vmem:[%s7458_s25 + $0x18] sm:$0xff]   ;;  %v7252_v12 = vld [vmem:[%s7458_s25 + $0x20] sm:$0xff]   ;;  %v7253_v13 = vld [vmem:[%s7458_s25 + $0x28] sm:$0xff]  }
  0x29   : > { %v7255_v14 = vld [vmem:[%s7458_s25 + $0x30] sm:$0xff]   ;;  %v7254_v15 = vld [vmem:[%s7458_s25 + $0x28] sm:$0xff]   ;;  %v7257_v17 = vld [vmem:[%s7458_s25 + $0x38] sm:$0xff]  }
  0x2a   : > { %v7256_v16 = vld [vmem:[%s7458_s25 + $0x30] sm:$0xff]   ;;  %v7259_v18 = vld [vmem:[%s7458_s25 + $0x40] sm:$0xff]   ;;  %v7258_v19 = vld [vmem:[%s7458_s25 + $0x38] sm:$0xff]  }
  0x2b   : > { %v7260_v20 = vld [vmem:[%s7458_s25 + $0x40] sm:$0xff]   ;;  %v7261_v21 = vld [vmem:[%s7458_s25 + $0x48] sm:$0xff]   ;;  %v7263_v22 = vld [vmem:[%s7458_s25 + $0x50] sm:$0xff]  }
  0x2c   : > { %6843 = vmatmul.mubr.msk.bf16.gmra.mrb[12].mxu1 %vm709_vm2, %v7198_v23  ;;  %v7262_v23 = vld [vmem:[%s7458_s25 + $0x48] sm:$0xff]  }
  0x2d   : > { %6846 = vmatprep.mubr.msk.bf16.mxu1 %vm709_vm2, %v7201_v24  ;;  %6779 = vmatmul.mubr.msk.bf16.gmra.mrb[12].mxu0 %vm709_vm2, %v7200_v25  ;;  %v7264_v24 = vld [vmem:[%s7458_s25 + $0x50] sm:$0xff]   ;;  %v7265_v25 = vld [vmem:[%s7458_s25 + $0x58] sm:$0xff]  }
  0x2e   : > { %6782 = vmatprep.mubr.msk.bf16.mxu0 %vm709_vm2, %v7203_v26  ;;  %v7267_v26 = vld [vmem:[%s7458_s25 + $0x60] sm:$0xff]  }
  0x34   : > { %6847 = vmatmul.mubr.msk.bf16.gmra.mrb[16].mxu1 %vm709_vm2, %v7202_v27  ;;  %v7266_v27 = vld [vmem:[%s7458_s25 + $0x58] sm:$0xff]  }
  0x35   : > { %6850 = vmatprep.mubr.msk.bf16.mxu1 %vm709_vm2, %v7205_v28  ;;  %6783 = vmatmul.mubr.msk.bf16.gmra.mrb[16].mxu0 %vm709_vm2, %v7204_v29  ;;  %v7268_v28 = vld [vmem:[%s7458_s25 + $0x60] sm:$0xff]   ;;  %v7269_v29 = vld [vmem:[%s7458_s25 + $0x68] sm:$0xff]  }
  0x36   : > { %6786 = vmatprep.mubr.msk.bf16.mxu0 %vm709_vm2, %v7207_v30  ;;  %v7271_v30 = vld [vmem:[%s7458_s25 + $0x70] sm:$0xff]  }
  0x3c   : > { %6851 = vmatmul.mubr.msk.bf16.gmra.mrb[20].mxu1 %vm709_vm2, %v7206_v31  ;;  %v7270_v31 = vld [vmem:[%s7458_s25 + $0x68] sm:$0xff]  }
  0x3d   : > { %6854 = vmatprep.mubr.msk.bf16.mxu1 %vm709_vm2, %v7209_v32  ;;  %6787 = vmatmul.mubr.msk.bf16.gmra.mrb[20].mxu0 %vm709_vm2, %v7208_v33  ;;  %v7272_v32 = vld [vmem:[%s7458_s25 + $0x70] sm:$0xff]   ;;  %v7273_v33 = vld [vmem:[%s7458_s25 + $0x78] sm:$0xff]  }
  0x3e   : > { %6790 = vmatprep.mubr.msk.bf16.mxu0 %vm709_vm2, %v7211_v34  ;;  %v7275_v34 = vld [vmem:[%s7458_s25 + $0x80] sm:$0xff]  }
  0x44   : > { %6855 = vmatmul.mubr.msk.bf16.gmra.mrb[24].mxu1 %vm709_vm2, %v7210_v35  ;;  %v7274_v35 = vld [vmem:[%s7458_s25 + $0x78] sm:$0xff]  }
  0x45   : > { %6858 = vmatprep.mubr.msk.bf16.mxu1 %vm709_vm2, %v7213_v36  ;;  %6791 = vmatmul.mubr.msk.bf16.gmra.mrb[24].mxu0 %vm709_vm2, %v7212_v37  ;;  %v7276_v36 = vld [vmem:[%s7458_s25 + $0x80] sm:$0xff]   ;;  %v7277_v37 = vld [vmem:[%s7458_s25 + $0x88] sm:$0xff]  }
  0x46   : > { %6794 = vmatprep.mubr.msk.bf16.mxu0 %vm709_vm2, %v7215_v38  ;;  %v7279_v38 = vld [vmem:[%s7458_s25 + $0x90] sm:$0xff]  }
  0x4c   : > { %6859 = vmatmul.mubr.msk.bf16.gmra.mrb[28].mxu1 %vm709_vm2, %v7214_v39  ;;  %v7278_v39 = vld [vmem:[%s7458_s25 + $0x88] sm:$0xff]  }
  0x4d   : > { %6862 = vmatprep.mubr.msk.bf16.mxu1 %vm709_vm2, %v7217_v40  ;;  %6795 = vmatmul.mubr.msk.bf16.gmra.mrb[28].mxu0 %vm709_vm2, %v7216_v41  ;;  %v7280_v40 = vld [vmem:[%s7458_s25 + $0x90] sm:$0xff]   ;;  %v7281_v41 = vld [vmem:[%s7458_s25 + $0x98] sm:$0xff]  }
  0x4e   : > { %6798 = vmatprep.mubr.msk.bf16.mxu0 %vm709_vm2, %v7219_v42  ;;  %v7283_v42 = vld [vmem:[%s7458_s25 + $0xa0] sm:$0xff]  }
  0x54   : > { %6863 = vmatmul.mubr.msk.bf16.gmra.mrb[32].mxu1 %vm709_vm2, %v7218_v43  ;;  %v7282_v43 = vld [vmem:[%s7458_s25 + $0x98] sm:$0xff]  }
  0x55   : > { %6866 = vmatprep.mubr.msk.bf16.mxu1 %vm709_vm2, %v7221_v44  ;;  %6799 = vmatmul.mubr.msk.bf16.gmra.mrb[32].mxu0 %vm709_vm2, %v7220_v45  ;;  %v7284_v44 = vld [vmem:[%s7458_s25 + $0xa0] sm:$0xff]   ;;  %v7285_v45 = vld [vmem:[%s7458_s25 + $0xa8] sm:$0xff]  }
  0x56   : > { %6802 = vmatprep.mubr.msk.bf16.mxu0 %vm709_vm2, %v7223_v46  ;;  %v7287_v46 = vld [vmem:[%s7458_s25 + $0xb0] sm:$0xff]  }
  0x5c   : > { %6867 = vmatmul.mubr.msk.bf16.gmra.mrb[36].mxu1 %vm709_vm2, %v7222_v47  ;;  %v7286_v47 = vld [vmem:[%s7458_s25 + $0xa8] sm:$0xff]  }
  0x5d   : > { %6870 = vmatprep.mubr.msk.bf16.mxu1 %vm709_vm2, %v7225_v48  ;;  %6803 = vmatmul.mubr.msk.bf16.gmra.mrb[36].mxu0 %vm709_vm2, %v7224_v49  ;;  %v7288_v48 = vld [vmem:[%s7458_s25 + $0xb0] sm:$0xff]   ;;  %v7289_v49 = vld [vmem:[%s7458_s25 + $0xb8] sm:$0xff]  }
  0x5e   : > { %6806 = vmatprep.mubr.msk.bf16.mxu0 %vm709_vm2, %v7227_v50  ;;  %v7291_v50 = vld [vmem:[%s7458_s25 + $0xc0] sm:$0xff]  }
  0x64   : > { %6871 = vmatmul.mubr.msk.bf16.gmra.mrb[40].mxu1 %vm709_vm2, %v7226_v51  ;;  %v7290_v51 = vld [vmem:[%s7458_s25 + $0xb8] sm:$0xff]  }
  0x65   : > { %6874 = vmatprep.mubr.msk.bf16.mxu1 %vm709_vm2, %v7229_v52  ;;  %6807 = vmatmul.mubr.msk.bf16.gmra.mrb[40].mxu0 %vm709_vm2, %v7228_v53  ;;  %v7292_v52 = vld [vmem:[%s7458_s25 + $0xc0] sm:$0xff]   ;;  %v7293_v53 = vld [vmem:[%s7458_s25 + $0xc8] sm:$0xff]  }
  0x66   : > { %6810 = vmatprep.mubr.msk.bf16.mxu0 %vm709_vm2, %v7231_v54  ;;  %v7295_v54 = vld [vmem:[%s7458_s25 + $0xd0] sm:$0xff]  }
  0x6c   : > { %6875 = vmatmul.mubr.msk.bf16.gmra.mrb[44].mxu1 %vm709_vm2, %v7230_v55 }
  0x6d   : > { %6878 = vmatprep.mubr.msk.bf16.mxu1 %vm709_vm2, %v7233_v56  ;;  %6811 = vmatmul.mubr.msk.bf16.gmra.mrb[44].mxu0 %vm709_vm2, %v7232_v57  ;;  %v7294_v57 = vld [vmem:[%s7458_s25 + $0xc8] sm:$0xff]  }
  0x6e   : > { %6814 = vmatprep.mubr.msk.bf16.mxu0 %vm709_vm2, %v7235_v58 }
  0x74   : > { %6879 = vmatmul.mubr.msk.bf16.gmra.mrb[48].mxu1 %vm709_vm2, %v7234_v59 }
  0x75   : > { %6882 = vmatprep.mubr.msk.bf16.mxu1 %vm709_vm2, %v7237_v60  ;;  %6815 = vmatmul.mubr.msk.bf16.gmra.mrb[48].mxu0 %vm709_vm2, %v7236_v61  ;;  %v7296_v60 = vld [vmem:[%s7458_s25 + $0xd0] sm:$0xff]  }
  0x76   : > { %6818 = vmatprep.mubr.msk.bf16.mxu0 %vm709_vm2, %v7239_v62 }
  0x7c   : > { %6883 = vmatmul.mubr.msk.bf16.gmra.mrb[52].mxu1 %vm709_vm2, %v7238_v63  ;;  %v7297_v63 = vld [vmem:[%s7458_s25 + $0xd8] sm:$0xff]  }
  0x7d   : > { %6886 = vmatprep.mubr.msk.bf16.mxu1 %vm709_vm2, %v7241_v0  ;;  %6819 = vmatmul.mubr.msk.bf16.gmra.mrb[52].mxu0 %vm709_vm2, %v7240_v1  ;;  %v7299_v1 = vld [vmem:[%s7458_s25 + $0xe0] sm:$0xff]  }
  0x7e   : > { %6822 = vmatprep.mubr.msk.bf16.mxu0 %vm709_vm2, %v7243_v2 }
  0x84   : > { %6887 = vmatmul.mubr.msk.bf16.gmra.mrb[56].mxu1 %vm709_vm2, %v7242_v3 }
  0x85   : > { %6890 = vmatprep.mubr.msk.bf16.mxu1 %vm709_vm2, %v7245_v4  ;;  %6823 = vmatmul.mubr.msk.bf16.gmra.mrb[56].mxu0 %vm709_vm2, %v7244_v5  ;;  %v7298_v5 = vld [vmem:[%s7458_s25 + $0xd8] sm:$0xff]  }
  0x86   : > { %6826 = vmatprep.mubr.msk.bf16.mxu0 %vm709_vm2, %v7247_v6 }
  0x8c   : > { %6891 = vmatmul.mubr.msk.bf16.gmra.mrb[60].mxu1 %vm709_vm2, %v7246_v7 }
  0x8d   : > { %6896 = vmatprep.mubr.msk.bf16.mxu1 %vm709_vm2, %v7249_v8  ;;  %6827 = vmatmul.mubr.msk.bf16.gmra.mrb[60].mxu0 %vm709_vm2, %v7248_v9  ;;  %v7300_v8 = vld [vmem:[%s7458_s25 + $0xe0] sm:$0xff]  }
  0x8e   : > { %7026 = vmatprep.mubr.msk.bf16.mxu0 %vm709_vm2, %v7251_v10 }
  0x94   : > { %6897 = vmatmul.mubr.msk.bf16.vlgmr.msra.gmra.mrb[64].mxu1 %vm709_vm2, %v7250_v11  ;;  %v7301_v11 = vld [vmem:[%s7458_s25 + $0xe8] sm:$0xff]  }
  0x95   : > { %6900 = vmatprep.mubr.msk.bf16.mxu1 %vm709_vm2, %v7252_v12  ;;  %7027 = vmatmul.mubr.msk.bf16.vlgmr.msra.gmra.mrb[64].mxu0 %vm709_vm2, %v7253_v13  ;;  %v7303_v13 = vld [vmem:[%s7458_s25 + $0xf0] sm:$0xff]  }
  0x96   : > { %7030 = vmatprep.mubr.msk.bf16.mxu0 %vm709_vm2, %v7255_v14 }
  0x9c   : > { %6901 = vmatmul.mubr.msk.bf16.gmra.mrb[68].mxu1 %vm709_vm2, %v7254_v15 }
  0x9d   : > { %6904 = vmatprep.mubr.msk.bf16.mxu1 %vm709_vm2, %v7256_v16  ;;  %7031 = vmatmul.mubr.msk.bf16.gmra.mrb[68].mxu0 %vm709_vm2, %v7257_v17  ;;  %v7302_v17 = vld [vmem:[%s7458_s25 + $0xe8] sm:$0xff]  }
  0x9e   : > { %7034 = vmatprep.mubr.msk.bf16.mxu0 %vm709_vm2, %v7259_v18 }
  0xa4   : > { %6905 = vmatmul.mubr.msk.bf16.gmra.mrb[72].mxu1 %vm709_vm2, %v7258_v19 }
  0xa5   : > { %6908 = vmatprep.mubr.msk.bf16.mxu1 %vm709_vm2, %v7260_v20  ;;  %7035 = vmatmul.mubr.msk.bf16.gmra.mrb[72].mxu0 %vm709_vm2, %v7261_v21  ;;  %v7304_v20 = vld [vmem:[%s7458_s25 + $0xf0] sm:$0xff]  }
  0xa6   : > { %7038 = vmatprep.mubr.msk.bf16.mxu0 %vm709_vm2, %v7263_v22 }
  0xac   : > { %6909 = vmatmul.mubr.msk.bf16.gmra.mrb[76].mxu1 %vm709_vm2, %v7262_v23  ;;  %v7305_v23 = vld [vmem:[%s7458_s25 + $0xf8] sm:$0xff]  }
  0xad   : > { %6912 = vmatprep.mubr.msk.bf16.mxu1 %vm709_vm2, %v7264_v24  ;;  %7039 = vmatmul.mubr.msk.bf16.gmra.mrb[76].mxu0 %vm709_vm2, %v7265_v25  ;;  %v7307_v25 = vld [vmem:[%s7458_s25 + $0x100] sm:$0xff]  }
  0xae   : > { %7042 = vmatprep.mubr.msk.bf16.mxu0 %vm709_vm2, %v7267_v26 }
  0xb4   : > { %6913 = vmatmul.mubr.msk.bf16.gmra.mrb[80].mxu1 %vm709_vm2, %v7266_v27 }
  0xb5   : > { %6916 = vmatprep.mubr.msk.bf16.mxu1 %vm709_vm2, %v7268_v28  ;;  %7043 = vmatmul.mubr.msk.bf16.gmra.mrb[80].mxu0 %vm709_vm2, %v7269_v29  ;;  %v7306_v29 = vld [vmem:[%s7458_s25 + $0xf8] sm:$0xff]  }
  0xb6   : > { %7046 = vmatprep.mubr.msk.bf16.mxu0 %vm709_vm2, %v7271_v30 }
  0xbc   : > { %6917 = vmatmul.mubr.msk.bf16.gmra.mrb[84].mxu1 %vm709_vm2, %v7270_v31 }
  0xbd   : > { %6920 = vmatprep.mubr.msk.bf16.mxu1 %vm709_vm2, %v7272_v32  ;;  %7047 = vmatmul.mubr.msk.bf16.gmra.mrb[84].mxu0 %vm709_vm2, %v7273_v33  ;;  %v7308_v32 = vld [vmem:[%s7458_s25 + $0x100] sm:$0xff]  }
  0xbe   : > { %7050 = vmatprep.mubr.msk.bf16.mxu0 %vm709_vm2, %v7275_v34 }
  0xc4   : > { %6921 = vmatmul.mubr.msk.bf16.gmra.mrb[88].mxu1 %vm709_vm2, %v7274_v35  ;;  %v7309_v35 = vld [vmem:[%s7458_s25 + $0x108] sm:$0xff]  }
  0xc5   : > { %6924 = vmatprep.mubr.msk.bf16.mxu1 %vm709_vm2, %v7276_v36  ;;  %7051 = vmatmul.mubr.msk.bf16.gmra.mrb[88].mxu0 %vm709_vm2, %v7277_v37  ;;  %v7311_v37 = vld [vmem:[%s7458_s25 + $0x110] sm:$0xff]  }
  0xc6   : > { %7054 = vmatprep.mubr.msk.bf16.mxu0 %vm709_vm2, %v7279_v38 }
  0xcc   : > { %6925 = vmatmul.mubr.msk.bf16.gmra.mrb[92].mxu1 %vm709_vm2, %v7278_v39 }
  0xcd   : > { %6928 = vmatprep.mubr.msk.bf16.mxu1 %vm709_vm2, %v7280_v40  ;;  %7055 = vmatmul.mubr.msk.bf16.gmra.mrb[92].mxu0 %vm709_vm2, %v7281_v41  ;;  %v7310_v41 = vld [vmem:[%s7458_s25 + $0x108] sm:$0xff]  }
  0xce   : > { %7058 = vmatprep.mubr.msk.bf16.mxu0 %vm709_vm2, %v7283_v42 }
  0xd4   : > { %6929 = vmatmul.mubr.msk.bf16.gmra.mrb[96].mxu1 %vm709_vm2, %v7282_v43 }
  0xd5   : > { %6932 = vmatprep.mubr.msk.bf16.mxu1 %vm709_vm2, %v7284_v44  ;;  %7059 = vmatmul.mubr.msk.bf16.gmra.mrb[96].mxu0 %vm709_vm2, %v7285_v45  ;;  %v7312_v44 = vld [vmem:[%s7458_s25 + $0x110] sm:$0xff]  }
  0xd6   : > { %7062 = vmatprep.mubr.msk.bf16.mxu0 %vm709_vm2, %v7287_v46 }
  0xdc   : > { %6933 = vmatmul.mubr.msk.bf16.gmra.mrb[100].mxu1 %vm709_vm2, %v7286_v47  ;;  %v7313_v47 = vld [vmem:[%s7458_s25 + $0x118] sm:$0xff]  }
  0xdd   : > { %6936 = vmatprep.mubr.msk.bf16.mxu1 %vm709_vm2, %v7288_v48  ;;  %7063 = vmatmul.mubr.msk.bf16.gmra.mrb[100].mxu0 %vm709_vm2, %v7289_v49  ;;  %v7315_v49 = vld [vmem:[%s7458_s25 + $0x120] sm:$0xff]  }
  0xde   : > { %7066 = vmatprep.mubr.msk.bf16.mxu0 %vm709_vm2, %v7291_v50 }
  0xe4   : > { %6937 = vmatmul.mubr.msk.bf16.gmra.mrb[104].mxu1 %vm709_vm2, %v7290_v51 }
  0xe5   : > { %6940 = vmatprep.mubr.msk.bf16.mxu1 %vm709_vm2, %v7292_v52  ;;  %7067 = vmatmul.mubr.msk.bf16.gmra.mrb[104].mxu0 %vm709_vm2, %v7293_v53  ;;  %v7314_v53 = vld [vmem:[%s7458_s25 + $0x118] sm:$0xff]  }
  0xe6   : > { %7070 = vmatprep.mubr.msk.bf16.mxu0 %vm709_vm2, %v7295_v54 }
  0xe7   : > { %v6832_v55 = vpop.f32.mrb[0].mxu1 }
  0xe8   : > { %1521 = vst.msk [vmem:[#allocation2 + $0x210] sm:$0xff] %vm1454_vm3, %v6832_v55  ;;  %v1199_v56 = vpop.f32.mrb[1].mxu1  ;;  %v6768_v59 = vpop.f32.mrb[0].mxu0 }
  0xe9   : > { %1519 = vst.msk [vmem:[#allocation2 + $0x200] sm:$0xff] %vm1454_vm3, %v1199_v56  ;;  %v6833_v58 = vpop.f32.mrb[2].mxu1  ;;  %1457 = vst.msk [vmem:[#allocation2 + $0x10] sm:$0xff] %vm1454_vm3, %v6768_v59  ;;  %v943_v62 = vpop.f32.mrb[1].mxu0  ;;  %v7316_v56 = vld [vmem:[%s7458_s25 + $0x120] sm:$0xff]   ;;  %v7317_v59 = vld [vmem:[%s7458_s25 + $0x128] sm:$0xff]  }
  0xea   : > { %1522 = vst.msk [vmem:[#allocation2 + $0x218] sm:$0xff] %vm1454_vm3, %v6833_v58  ;;  %v1202_v61 = vpop.f32.mrb[3].mxu1  ;;  %1455 = vst.msk [vmem:[#allocation2] sm:$0xff] %vm1454_vm3, %v943_v62  ;;  %v6769_v0 = vpop.f32.mrb[2].mxu0 }
  0xeb   : > { %1520 = vst.msk [vmem:[#allocation2 + $0x208] sm:$0xff] %vm1454_vm3, %v1202_v61  ;;  %1458 = vst.msk [vmem:[#allocation2 + $0x18] sm:$0xff] %vm1454_vm3, %v6769_v0  ;;  %v946_v2 = vpop.f32.mrb[3].mxu0  ;;  %v7319_v61 = vld [vmem:[%s7458_s25 + $0x130] sm:$0xff]  }
  0xec   : > { %6941 = vmatmul.mubr.msk.bf16.gmra.mrb[108].mxu1 %vm709_vm2, %v7294_v57  ;;  %1456 = vst.msk [vmem:[#allocation2 + $0x8] sm:$0xff] %vm1454_vm3, %v946_v2 }
  0xed   : > { %6944 = vmatprep.mubr.msk.bf16.mxu1 %vm709_vm2, %v7296_v60  ;;  %7071 = vmatmul.mubr.msk.bf16.gmra.mrb[108].mxu0 %vm709_vm2, %v7297_v63 }
  0xee   : > { %7074 = vmatprep.mubr.msk.bf16.mxu0 %vm709_vm2, %v7299_v1  ;;  %v7318_v1 = vld [vmem:[%s7458_s25 + $0x128] sm:$0xff]  }
  0xef   : > { %v6836_v3 = vpop.f32.mrb[4].mxu1 }
  0xf0   : > { %1525 = vst.msk [vmem:[#allocation2 + $0x230] sm:$0xff] %vm1454_vm3, %v6836_v3  ;;  %v1215_v4 = vpop.f32.mrb[5].mxu1  ;;  %v6772_v7 = vpop.f32.mrb[4].mxu0 }
  0xf1   : > { %1523 = vst.msk [vmem:[#allocation2 + $0x220] sm:$0xff] %vm1454_vm3, %v1215_v4  ;;  %v6837_v6 = vpop.f32.mrb[6].mxu1  ;;  %1461 = vst.msk [vmem:[#allocation2 + $0x30] sm:$0xff] %vm1454_vm3, %v6772_v7  ;;  %v959_v10 = vpop.f32.mrb[5].mxu0  ;;  %v7320_v4 = vld [vmem:[%s7458_s25 + $0x130] sm:$0xff]   ;;  %v7321_v7 = vld [vmem:[%s7458_s25 + $0x138] sm:$0xff]  }
  0xf2   : > { %1526 = vst.msk [vmem:[#allocation2 + $0x238] sm:$0xff] %vm1454_vm3, %v6837_v6  ;;  %v1218_v9 = vpop.f32.mrb[7].mxu1  ;;  %1459 = vst.msk [vmem:[#allocation2 + $0x20] sm:$0xff] %vm1454_vm3, %v959_v10  ;;  %v6773_v12 = vpop.f32.mrb[6].mxu0 }
  0xf3   : > { %1524 = vst.msk [vmem:[#allocation2 + $0x228] sm:$0xff] %vm1454_vm3, %v1218_v9  ;;  %1462 = vst.msk [vmem:[#allocation2 + $0x38] sm:$0xff] %vm1454_vm3, %v6773_v12  ;;  %v962_v14 = vpop.f32.mrb[7].mxu0  ;;  %v7323_v9 = vld [vmem:[%s7458_s25 + $0x140] sm:$0xff]  }
  0xf4   : > { %6945 = vmatmul.mubr.msk.bf16.gmra.mrb[112].mxu1 %vm709_vm2, %v7298_v5  ;;  %1460 = vst.msk [vmem:[#allocation2 + $0x28] sm:$0xff] %vm1454_vm3, %v962_v14 }
  0xf5   : > { %6948 = vmatprep.mubr.msk.bf16.mxu1 %vm709_vm2, %v7300_v8  ;;  %7075 = vmatmul.mubr.msk.bf16.gmra.mrb[112].mxu0 %vm709_vm2, %v7301_v11 }
  0xf6   : > { %7078 = vmatprep.mubr.msk.bf16.mxu0 %vm709_vm2, %v7303_v13  ;;  %v7322_v13 = vld [vmem:[%s7458_s25 + $0x138] sm:$0xff]  }
  0xf7   : > { %v6840_v15 = vpop.f32.mrb[8].mxu1 }
  0xf8   : > { %1529 = vst.msk [vmem:[#allocation2 + $0x250] sm:$0xff] %vm1454_vm3, %v6840_v15  ;;  %v1231_v16 = vpop.f32.mrb[9].mxu1  ;;  %v6776_v19 = vpop.f32.mrb[8].mxu0 }
  0xf9   : > { %1527 = vst.msk [vmem:[#allocation2 + $0x240] sm:$0xff] %vm1454_vm3, %v1231_v16  ;;  %v6841_v18 = vpop.f32.mrb[10].mxu1  ;;  %1465 = vst.msk [vmem:[#allocation2 + $0x50] sm:$0xff] %vm1454_vm3, %v6776_v19  ;;  %v975_v22 = vpop.f32.mrb[9].mxu0  ;;  %v7324_v16 = vld [vmem:[%s7458_s25 + $0x140] sm:$0xff]   ;;  %v7325_v19 = vld [vmem:[%s7458_s25 + $0x148] sm:$0xff]  }
  0xfa   : > { %1530 = vst.msk [vmem:[#allocation2 + $0x258] sm:$0xff] %vm1454_vm3, %v6841_v18  ;;  %v1234_v21 = vpop.f32.mrb[11].mxu1  ;;  %1463 = vst.msk [vmem:[#allocation2 + $0x40] sm:$0xff] %vm1454_vm3, %v975_v22  ;;  %v6777_v24 = vpop.f32.mrb[10].mxu0 }
  0xfb   : > { %1528 = vst.msk [vmem:[#allocation2 + $0x248] sm:$0xff] %vm1454_vm3, %v1234_v21  ;;  %1466 = vst.msk [vmem:[#allocation2 + $0x58] sm:$0xff] %vm1454_vm3, %v6777_v24  ;;  %v978_v26 = vpop.f32.mrb[11].mxu0  ;;  %v7327_v21 = vld [vmem:[%s7458_s25 + $0x150] sm:$0xff]  }
  0xfc   : > { %6949 = vmatmul.mubr.msk.bf16.gmra.mrb[116].mxu1 %vm709_vm2, %v7302_v17  ;;  %1464 = vst.msk [vmem:[#allocation2 + $0x48] sm:$0xff] %vm1454_vm3, %v978_v26 }
  0xfd   : > { %6952 = vmatprep.mubr.msk.bf16.mxu1 %vm709_vm2, %v7304_v20  ;;  %7079 = vmatmul.mubr.msk.bf16.gmra.mrb[116].mxu0 %vm709_vm2, %v7305_v23 }
  0xfe   : > { %7082 = vmatprep.mubr.msk.bf16.mxu0 %vm709_vm2, %v7307_v25  ;;  %v7326_v25 = vld [vmem:[%s7458_s25 + $0x148] sm:$0xff]  }
  0xff   : > { %v6844_v27 = vpop.f32.mrb[12].mxu1 }
 0x100   : > { %1533 = vst.msk [vmem:[#allocation2 + $0x270] sm:$0xff] %vm1454_vm3, %v6844_v27  ;;  %v1247_v28 = vpop.f32.mrb[13].mxu1  ;;  %v6780_v31 = vpop.f32.mrb[12].mxu0 }
 0x101   : > { %1531 = vst.msk [vmem:[#allocation2 + $0x260] sm:$0xff] %vm1454_vm3, %v1247_v28  ;;  %v6845_v30 = vpop.f32.mrb[14].mxu1  ;;  %1469 = vst.msk [vmem:[#allocation2 + $0x70] sm:$0xff] %vm1454_vm3, %v6780_v31  ;;  %v991_v34 = vpop.f32.mrb[13].mxu0  ;;  %v7328_v28 = vld [vmem:[%s7458_s25 + $0x150] sm:$0xff]   ;;  %v7329_v31 = vld [vmem:[%s7458_s25 + $0x158] sm:$0xff]  }
 0x102   : > { %1534 = vst.msk [vmem:[#allocation2 + $0x278] sm:$0xff] %vm1454_vm3, %v6845_v30  ;;  %v1250_v33 = vpop.f32.mrb[15].mxu1  ;;  %1467 = vst.msk [vmem:[#allocation2 + $0x60] sm:$0xff] %vm1454_vm3, %v991_v34  ;;  %v6781_v36 = vpop.f32.mrb[14].mxu0 }
 0x103   : > { %1532 = vst.msk [vmem:[#allocation2 + $0x268] sm:$0xff] %vm1454_vm3, %v1250_v33  ;;  %1470 = vst.msk [vmem:[#allocation2 + $0x78] sm:$0xff] %vm1454_vm3, %v6781_v36  ;;  %v994_v38 = vpop.f32.mrb[15].mxu0  ;;  %v7331_v33 = vld [vmem:[%s7458_s25 + $0x160] sm:$0xff]  }
 0x104   : > { %6953 = vmatmul.mubr.msk.bf16.gmra.mrb[120].mxu1 %vm709_vm2, %v7306_v29  ;;  %1468 = vst.msk [vmem:[#allocation2 + $0x68] sm:$0xff] %vm1454_vm3, %v994_v38 }
 0x105   : > { %6956 = vmatprep.mubr.msk.bf16.mxu1 %vm709_vm2, %v7308_v32  ;;  %7083 = vmatmul.mubr.msk.bf16.gmra.mrb[120].mxu0 %vm709_vm2, %v7309_v35 }
 0x106   : > { %7086 = vmatprep.mubr.msk.bf16.mxu0 %vm709_vm2, %v7311_v37  ;;  %v7330_v37 = vld [vmem:[%s7458_s25 + $0x158] sm:$0xff]  }
 0x107   : > { %v6848_v39 = vpop.f32.mrb[16].mxu1 }
 0x108   : > { %1537 = vst.msk [vmem:[#allocation2 + $0x290] sm:$0xff] %vm1454_vm3, %v6848_v39  ;;  %v1263_v40 = vpop.f32.mrb[17].mxu1  ;;  %v6784_v43 = vpop.f32.mrb[16].mxu0 }
 0x109   : > { %1535 = vst.msk [vmem:[#allocation2 + $0x280] sm:$0xff] %vm1454_vm3, %v1263_v40  ;;  %v6849_v42 = vpop.f32.mrb[18].mxu1  ;;  %1473 = vst.msk [vmem:[#allocation2 + $0x90] sm:$0xff] %vm1454_vm3, %v6784_v43  ;;  %v1007_v46 = vpop.f32.mrb[17].mxu0  ;;  %v7332_v40 = vld [vmem:[%s7458_s25 + $0x160] sm:$0xff]   ;;  %v7333_v43 = vld [vmem:[%s7458_s25 + $0x168] sm:$0xff]  }
 0x10a   : > { %1538 = vst.msk [vmem:[#allocation2 + $0x298] sm:$0xff] %vm1454_vm3, %v6849_v42  ;;  %v1266_v45 = vpop.f32.mrb[19].mxu1  ;;  %1471 = vst.msk [vmem:[#allocation2 + $0x80] sm:$0xff] %vm1454_vm3, %v1007_v46  ;;  %v6785_v48 = vpop.f32.mrb[18].mxu0 }
 0x10b   : > { %1536 = vst.msk [vmem:[#allocation2 + $0x288] sm:$0xff] %vm1454_vm3, %v1266_v45  ;;  %1474 = vst.msk [vmem:[#allocation2 + $0x98] sm:$0xff] %vm1454_vm3, %v6785_v48  ;;  %v1010_v50 = vpop.f32.mrb[19].mxu0  ;;  %v7335_v45 = vld [vmem:[%s7458_s25 + $0x170] sm:$0xff]  }
 0x10c   : > { %6957 = vmatmul.mubr.msk.bf16.gmra.mrb[124].mxu1 %vm709_vm2, %v7310_v41  ;;  %1472 = vst.msk [vmem:[#allocation2 + $0x88] sm:$0xff] %vm1454_vm3, %v1010_v50 }
 0x10d   : > { %6960 = vmatprep.mubr.msk.bf16.mxu1 %vm709_vm2, %v7312_v44  ;;  %7087 = vmatmul.mubr.msk.bf16.gmra.mrb[124].mxu0 %vm709_vm2, %v7313_v47 }
 0x10e   : > { %7090 = vmatprep.mubr.msk.bf16.mxu0 %vm709_vm2, %v7315_v49  ;;  %v7334_v49 = vld [vmem:[%s7458_s25 + $0x168] sm:$0xff]  }
 0x10f   : > { %v6852_v51 = vpop.f32.mrb[20].mxu1 }
 0x110   : > { %1541 = vst.msk [vmem:[#allocation2 + $0x2b0] sm:$0xff] %vm1454_vm3, %v6852_v51  ;;  %v1279_v52 = vpop.f32.mrb[21].mxu1  ;;  %v6788_v55 = vpop.f32.mrb[20].mxu0 }
 0x111   : > { %1539 = vst.msk [vmem:[#allocation2 + $0x2a0] sm:$0xff] %vm1454_vm3, %v1279_v52  ;;  %v6853_v54 = vpop.f32.mrb[22].mxu1  ;;  %1477 = vst.msk [vmem:[#allocation2 + $0xb0] sm:$0xff] %vm1454_vm3, %v6788_v55  ;;  %v1023_v58 = vpop.f32.mrb[21].mxu0  ;;  %v7336_v52 = vld [vmem:[%s7458_s25 + $0x170] sm:$0xff]   ;;  %v7337_v55 = vld [vmem:[%s7458_s25 + $0x178] sm:$0xff]  }
 0x112   : > { %1542 = vst.msk [vmem:[#allocation2 + $0x2b8] sm:$0xff] %vm1454_vm3, %v6853_v54  ;;  %v1282_v57 = vpop.f32.mrb[23].mxu1  ;;  %1475 = vst.msk [vmem:[#allocation2 + $0xa0] sm:$0xff] %vm1454_vm3, %v1023_v58  ;;  %v6789_v60 = vpop.f32.mrb[22].mxu0 }
 0x113   : > { %1540 = vst.msk [vmem:[#allocation2 + $0x2a8] sm:$0xff] %vm1454_vm3, %v1282_v57  ;;  %1478 = vst.msk [vmem:[#allocation2 + $0xb8] sm:$0xff] %vm1454_vm3, %v6789_v60  ;;  %v1026_v62 = vpop.f32.mrb[23].mxu0  ;;  %v7339_v57 = vld [vmem:[%s7458_s25 + $0x180] sm:$0xff]  }
 0x114   : > { %6961 = vmatmul.mubr.msk.bf16.gmra.mrb[128].mxu1 %vm709_vm2, %v7314_v53  ;;  %1476 = vst.msk [vmem:[#allocation2 + $0xa8] sm:$0xff] %vm1454_vm3, %v1026_v62 }
 0x115   : > { %6964 = vmatprep.mubr.msk.bf16.mxu1 %vm709_vm2, %v7316_v56  ;;  %7091 = vmatmul.mubr.msk.bf16.gmra.mrb[128].mxu0 %vm709_vm2, %v7317_v59 }
 0x116   : > { %7094 = vmatprep.mubr.msk.bf16.mxu0 %vm709_vm2, %v7319_v61  ;;  %v7338_v61 = vld [vmem:[%s7458_s25 + $0x178] sm:$0xff]  }
 0x117   : > { %v6856_v63 = vpop.f32.mrb[24].mxu1 }
 0x118   : > { %1545 = vst.msk [vmem:[#allocation2 + $0x2d0] sm:$0xff] %vm1454_vm3, %v6856_v63  ;;  %v1295_v0 = vpop.f32.mrb[25].mxu1  ;;  %v6792_v3 = vpop.f32.mrb[24].mxu0 }
 0x119   : > { %1543 = vst.msk [vmem:[#allocation2 + $0x2c0] sm:$0xff] %vm1454_vm3, %v1295_v0  ;;  %v6857_v2 = vpop.f32.mrb[26].mxu1  ;;  %1481 = vst.msk [vmem:[#allocation2 + $0xd0] sm:$0xff] %vm1454_vm3, %v6792_v3  ;;  %v1039_v6 = vpop.f32.mrb[25].mxu0  ;;  %v7340_v0 = vld [vmem:[%s7458_s25 + $0x180] sm:$0xff]   ;;  %v7341_v3 = vld [vmem:[%s7458_s25 + $0x188] sm:$0xff]  }
 0x11a   : > { %1546 = vst.msk [vmem:[#allocation2 + $0x2d8] sm:$0xff] %vm1454_vm3, %v6857_v2  ;;  %v1298_v5 = vpop.f32.mrb[27].mxu1  ;;  %1479 = vst.msk [vmem:[#allocation2 + $0xc0] sm:$0xff] %vm1454_vm3, %v1039_v6  ;;  %v6793_v8 = vpop.f32.mrb[26].mxu0 }
 0x11b   : > { %1544 = vst.msk [vmem:[#allocation2 + $0x2c8] sm:$0xff] %vm1454_vm3, %v1298_v5  ;;  %1482 = vst.msk [vmem:[#allocation2 + $0xd8] sm:$0xff] %vm1454_vm3, %v6793_v8  ;;  %v1042_v10 = vpop.f32.mrb[27].mxu0  ;;  %v7343_v5 = vld [vmem:[%s7458_s25 + $0x190] sm:$0xff]  }
 0x11c   : > { %6965 = vmatmul.mubr.msk.bf16.gmra.mrb[132].mxu1 %vm709_vm2, %v7318_v1  ;;  %1480 = vst.msk [vmem:[#allocation2 + $0xc8] sm:$0xff] %vm1454_vm3, %v1042_v10 }
 0x11d   : > { %6968 = vmatprep.mubr.msk.bf16.mxu1 %vm709_vm2, %v7320_v4  ;;  %7095 = vmatmul.mubr.msk.bf16.gmra.mrb[132].mxu0 %vm709_vm2, %v7321_v7 }
 0x11e   : > { %7098 = vmatprep.mubr.msk.bf16.mxu0 %vm709_vm2, %v7323_v9  ;;  %v7342_v9 = vld [vmem:[%s7458_s25 + $0x188] sm:$0xff]  }
 0x11f   : > { %v6860_v11 = vpop.f32.mrb[28].mxu1 }
 0x120   : > { %1549 = vst.msk [vmem:[#allocation2 + $0x2f0] sm:$0xff] %vm1454_vm3, %v6860_v11  ;;  %v1311_v12 = vpop.f32.mrb[29].mxu1  ;;  %v6796_v15 = vpop.f32.mrb[28].mxu0 }
 0x121   : > { %1547 = vst.msk [vmem:[#allocation2 + $0x2e0] sm:$0xff] %vm1454_vm3, %v1311_v12  ;;  %v6861_v14 = vpop.f32.mrb[30].mxu1  ;;  %1485 = vst.msk [vmem:[#allocation2 + $0xf0] sm:$0xff] %vm1454_vm3, %v6796_v15  ;;  %v1055_v18 = vpop.f32.mrb[29].mxu0  ;;  %v7344_v12 = vld [vmem:[%s7458_s25 + $0x190] sm:$0xff]   ;;  %v7345_v15 = vld [vmem:[%s7458_s25 + $0x198] sm:$0xff]  }
 0x122   : > { %1550 = vst.msk [vmem:[#allocation2 + $0x2f8] sm:$0xff] %vm1454_vm3, %v6861_v14  ;;  %v1314_v17 = vpop.f32.mrb[31].mxu1  ;;  %1483 = vst.msk [vmem:[#allocation2 + $0xe0] sm:$0xff] %vm1454_vm3, %v1055_v18  ;;  %v6797_v20 = vpop.f32.mrb[30].mxu0 }
 0x123   : > { %1548 = vst.msk [vmem:[#allocation2 + $0x2e8] sm:$0xff] %vm1454_vm3, %v1314_v17  ;;  %1486 = vst.msk [vmem:[#allocation2 + $0xf8] sm:$0xff] %vm1454_vm3, %v6797_v20  ;;  %v1058_v22 = vpop.f32.mrb[31].mxu0  ;;  %v7347_v17 = vld [vmem:[%s7458_s25 + $0x1a0] sm:$0xff]  }
 0x124   : > { %6969 = vmatmul.mubr.msk.bf16.gmra.mrb[136].mxu1 %vm709_vm2, %v7322_v13  ;;  %1484 = vst.msk [vmem:[#allocation2 + $0xe8] sm:$0xff] %vm1454_vm3, %v1058_v22 }
 0x125   : > { %6972 = vmatprep.mubr.msk.bf16.mxu1 %vm709_vm2, %v7324_v16  ;;  %7099 = vmatmul.mubr.msk.bf16.gmra.mrb[136].mxu0 %vm709_vm2, %v7325_v19 }
 0x126   : > { %7102 = vmatprep.mubr.msk.bf16.mxu0 %vm709_vm2, %v7327_v21  ;;  %v7346_v21 = vld [vmem:[%s7458_s25 + $0x198] sm:$0xff]  }
 0x127   : > { %v6864_v23 = vpop.f32.mrb[32].mxu1 }
 0x128   : > { %1553 = vst.msk [vmem:[#allocation2 + $0x310] sm:$0xff] %vm1454_vm3, %v6864_v23  ;;  %v1327_v24 = vpop.f32.mrb[33].mxu1  ;;  %v6800_v27 = vpop.f32.mrb[32].mxu0 }
 0x129   : > { %1551 = vst.msk [vmem:[#allocation2 + $0x300] sm:$0xff] %vm1454_vm3, %v1327_v24  ;;  %v6865_v26 = vpop.f32.mrb[34].mxu1  ;;  %1489 = vst.msk [vmem:[#allocation2 + $0x110] sm:$0xff] %vm1454_vm3, %v6800_v27  ;;  %v1071_v30 = vpop.f32.mrb[33].mxu0  ;;  %v7348_v24 = vld [vmem:[%s7458_s25 + $0x1a0] sm:$0xff]   ;;  %v7349_v27 = vld [vmem:[%s7458_s25 + $0x1a8] sm:$0xff]  }
 0x12a   : > { %1554 = vst.msk [vmem:[#allocation2 + $0x318] sm:$0xff] %vm1454_vm3, %v6865_v26  ;;  %v1330_v29 = vpop.f32.mrb[35].mxu1  ;;  %1487 = vst.msk [vmem:[#allocation2 + $0x100] sm:$0xff] %vm1454_vm3, %v1071_v30  ;;  %v6801_v32 = vpop.f32.mrb[34].mxu0 }
 0x12b   : > { %1552 = vst.msk [vmem:[#allocation2 + $0x308] sm:$0xff] %vm1454_vm3, %v1330_v29  ;;  %1490 = vst.msk [vmem:[#allocation2 + $0x118] sm:$0xff] %vm1454_vm3, %v6801_v32  ;;  %v1074_v34 = vpop.f32.mrb[35].mxu0  ;;  %v7351_v29 = vld [vmem:[%s7458_s25 + $0x1b0] sm:$0xff]  }
 0x12c   : > { %6973 = vmatmul.mubr.msk.bf16.gmra.mrb[140].mxu1 %vm709_vm2, %v7326_v25  ;;  %1488 = vst.msk [vmem:[#allocation2 + $0x108] sm:$0xff] %vm1454_vm3, %v1074_v34 }
 0x12d   : > { %6976 = vmatprep.mubr.msk.bf16.mxu1 %vm709_vm2, %v7328_v28  ;;  %7103 = vmatmul.mubr.msk.bf16.gmra.mrb[140].mxu0 %vm709_vm2, %v7329_v31 }
 0x12e   : > { %7106 = vmatprep.mubr.msk.bf16.mxu0 %vm709_vm2, %v7331_v33  ;;  %v7350_v33 = vld [vmem:[%s7458_s25 + $0x1a8] sm:$0xff]  }
 0x12f   : > { %v6868_v35 = vpop.f32.mrb[36].mxu1 }
 0x130   : > { %1557 = vst.msk [vmem:[#allocation2 + $0x330] sm:$0xff] %vm1454_vm3, %v6868_v35  ;;  %v1343_v36 = vpop.f32.mrb[37].mxu1  ;;  %v6804_v39 = vpop.f32.mrb[36].mxu0 }
 0x131   : > { %1555 = vst.msk [vmem:[#allocation2 + $0x320] sm:$0xff] %vm1454_vm3, %v1343_v36  ;;  %v6869_v38 = vpop.f32.mrb[38].mxu1  ;;  %1493 = vst.msk [vmem:[#allocation2 + $0x130] sm:$0xff] %vm1454_vm3, %v6804_v39  ;;  %v1087_v42 = vpop.f32.mrb[37].mxu0  ;;  %v7352_v36 = vld [vmem:[%s7458_s25 + $0x1b0] sm:$0xff]   ;;  %v7353_v39 = vld [vmem:[%s7458_s25 + $0x1b8] sm:$0xff]  }
 0x132   : > { %1558 = vst.msk [vmem:[#allocation2 + $0x338] sm:$0xff] %vm1454_vm3, %v6869_v38  ;;  %v1346_v41 = vpop.f32.mrb[39].mxu1  ;;  %1491 = vst.msk [vmem:[#allocation2 + $0x120] sm:$0xff] %vm1454_vm3, %v1087_v42  ;;  %v6805_v44 = vpop.f32.mrb[38].mxu0 }
 0x133   : > { %1556 = vst.msk [vmem:[#allocation2 + $0x328] sm:$0xff] %vm1454_vm3, %v1346_v41  ;;  %1494 = vst.msk [vmem:[#allocation2 + $0x138] sm:$0xff] %vm1454_vm3, %v6805_v44  ;;  %v1090_v46 = vpop.f32.mrb[39].mxu0  ;;  %v7355_v41 = vld [vmem:[%s7458_s25 + $0x1c0] sm:$0xff]  }
 0x134   : > { %6977 = vmatmul.mubr.msk.bf16.gmra.mrb[144].mxu1 %vm709_vm2, %v7330_v37  ;;  %1492 = vst.msk [vmem:[#allocation2 + $0x128] sm:$0xff] %vm1454_vm3, %v1090_v46 }
 0x135   : > { %6980 = vmatprep.mubr.msk.bf16.mxu1 %vm709_vm2, %v7332_v40  ;;  %7107 = vmatmul.mubr.msk.bf16.gmra.mrb[144].mxu0 %vm709_vm2, %v7333_v43 }
 0x136   : > { %7110 = vmatprep.mubr.msk.bf16.mxu0 %vm709_vm2, %v7335_v45  ;;  %v7354_v45 = vld [vmem:[%s7458_s25 + $0x1b8] sm:$0xff]  }
 0x137   : > { %v6872_v47 = vpop.f32.mrb[40].mxu1 }
 0x138   : > { %1561 = vst.msk [vmem:[#allocation2 + $0x350] sm:$0xff] %vm1454_vm3, %v6872_v47  ;;  %v1359_v48 = vpop.f32.mrb[41].mxu1  ;;  %v6808_v51 = vpop.f32.mrb[40].mxu0 }
 0x139   : > { %1559 = vst.msk [vmem:[#allocation2 + $0x340] sm:$0xff] %vm1454_vm3, %v1359_v48  ;;  %v6873_v50 = vpop.f32.mrb[42].mxu1  ;;  %1497 = vst.msk [vmem:[#allocation2 + $0x150] sm:$0xff] %vm1454_vm3, %v6808_v51  ;;  %v1103_v54 = vpop.f32.mrb[41].mxu0  ;;  %v7356_v48 = vld [vmem:[%s7458_s25 + $0x1c0] sm:$0xff]   ;;  %v7357_v51 = vld [vmem:[%s7458_s25 + $0x1c8] sm:$0xff]  }
 0x13a   : > { %1562 = vst.msk [vmem:[#allocation2 + $0x358] sm:$0xff] %vm1454_vm3, %v6873_v50  ;;  %v1362_v53 = vpop.f32.mrb[43].mxu1  ;;  %1495 = vst.msk [vmem:[#allocation2 + $0x140] sm:$0xff] %vm1454_vm3, %v1103_v54  ;;  %v6809_v56 = vpop.f32.mrb[42].mxu0 }
 0x13b   : > { %1560 = vst.msk [vmem:[#allocation2 + $0x348] sm:$0xff] %vm1454_vm3, %v1362_v53  ;;  %1498 = vst.msk [vmem:[#allocation2 + $0x158] sm:$0xff] %vm1454_vm3, %v6809_v56  ;;  %v1106_v58 = vpop.f32.mrb[43].mxu0  ;;  %v7359_v53 = vld [vmem:[%s7458_s25 + $0x1d0] sm:$0xff]  }
 0x13c   : > { %6981 = vmatmul.mubr.msk.bf16.gmra.mrb[148].mxu1 %vm709_vm2, %v7334_v49  ;;  %1496 = vst.msk [vmem:[#allocation2 + $0x148] sm:$0xff] %vm1454_vm3, %v1106_v58  ;;  %v1583_v58 = vld [vmem:[#allocation2] sm:$0xff] }
 0x13d   : > { %6984 = vmatprep.mubr.msk.bf16.mxu1 %vm709_vm2, %v7336_v52  ;;  %7111 = vmatmul.mubr.msk.bf16.gmra.mrb[148].mxu0 %vm709_vm2, %v7337_v55  ;;  %v1585_v55 = vld [vmem:[#allocation2 + $0x10] sm:$0xff] }
 0x13e   : > { %7114 = vmatprep.mubr.msk.bf16.mxu0 %vm709_vm2, %v7339_v57 }
 0x13f   : > { %v6876_v59 = vpop.f32.mrb[44].mxu1 }
 0x140   : > { %1565 = vst.msk [vmem:[#allocation2 + $0x370] sm:$0xff] %vm1454_vm3, %v6876_v59  ;;  %v1375_v60 = vpop.f32.mrb[45].mxu1  ;;  %v6812_v63 = vpop.f32.mrb[44].mxu0 }
 0x141   : > { %1563 = vst.msk [vmem:[#allocation2 + $0x360] sm:$0xff] %vm1454_vm3, %v1375_v60  ;;  %v6877_v62 = vpop.f32.mrb[46].mxu1  ;;  %1501 = vst.msk [vmem:[#allocation2 + $0x170] sm:$0xff] %vm1454_vm3, %v6812_v63  ;;  %v1119_v2 = vpop.f32.mrb[45].mxu0  ;;  %v7358_v60 = vld [vmem:[%s7458_s25 + $0x1c8] sm:$0xff]  }
 0x142   : > { %1566 = vst.msk [vmem:[#allocation2 + $0x378] sm:$0xff] %vm1454_vm3, %v6877_v62  ;;  %v1378_v1 = vpop.f32.mrb[47].mxu1  ;;  %1499 = vst.msk [vmem:[#allocation2 + $0x160] sm:$0xff] %vm1454_vm3, %v1119_v2  ;;  %v6813_v4 = vpop.f32.mrb[46].mxu0  ;;  %v1586_v62 = vld [vmem:[#allocation2 + $0x18] sm:$0xff] }
 0x143   : > { %1564 = vst.msk [vmem:[#allocation2 + $0x368] sm:$0xff] %vm1454_vm3, %v1378_v1  ;;  %1502 = vst.msk [vmem:[#allocation2 + $0x178] sm:$0xff] %vm1454_vm3, %v6813_v4  ;;  %v1122_v6 = vpop.f32.mrb[47].mxu0  ;;  %v7360_v1 = vld [vmem:[%s7458_s25 + $0x1d0] sm:$0xff]  }
 0x144   : > { %6985 = vmatmul.mubr.msk.bf16.gmra.mrb[152].mxu1 %vm709_vm2, %v7338_v61  ;;  %1500 = vst.msk [vmem:[#allocation2 + $0x168] sm:$0xff] %vm1454_vm3, %v1122_v6  ;;  %v7361_v6 = vld [vmem:[%s7458_s25 + $0x1d8] sm:$0xff]  }
 0x145   : > { %6988 = vmatprep.mubr.msk.bf16.mxu1 %vm709_vm2, %v7340_v0  ;;  %7115 = vmatmul.mubr.msk.bf16.gmra.mrb[152].mxu0 %vm709_vm2, %v7341_v3  ;;  %v1584_v3 = vld [vmem:[#allocation2 + $0x8] sm:$0xff] }
 0x146   : > { %7118 = vmatprep.mubr.msk.bf16.mxu0 %vm709_vm2, %v7343_v5 }
 0x147   : > { %v6880_v7 = vpop.f32.mrb[48].mxu1 }
 0x148   : > { %1569 = vst.msk [vmem:[#allocation2 + $0x390] sm:$0xff] %vm1454_vm3, %v6880_v7  ;;  %v1391_v8 = vpop.f32.mrb[49].mxu1  ;;  %v6816_v11 = vpop.f32.mrb[48].mxu0 }
 0x149   : > { %1567 = vst.msk [vmem:[#allocation2 + $0x380] sm:$0xff] %vm1454_vm3, %v1391_v8  ;;  %v6881_v10 = vpop.f32.mrb[50].mxu1  ;;  %1505 = vst.msk [vmem:[#allocation2 + $0x190] sm:$0xff] %vm1454_vm3, %v6816_v11  ;;  %v1135_v14 = vpop.f32.mrb[49].mxu0  ;;  %v1589_v11 = vld [vmem:[#allocation2 + $0x30] sm:$0xff] }
 0x14a   : > { %1570 = vst.msk [vmem:[#allocation2 + $0x398] sm:$0xff] %vm1454_vm3, %v6881_v10  ;;  %v1394_v13 = vpop.f32.mrb[51].mxu1  ;;  %1503 = vst.msk [vmem:[#allocation2 + $0x180] sm:$0xff] %vm1454_vm3, %v1135_v14  ;;  %v6817_v16 = vpop.f32.mrb[50].mxu0  ;;  %v1587_v14 = vld [vmem:[#allocation2 + $0x20] sm:$0xff] }
 0x14b   : > { %1568 = vst.msk [vmem:[#allocation2 + $0x388] sm:$0xff] %vm1454_vm3, %v1394_v13  ;;  %1506 = vst.msk [vmem:[#allocation2 + $0x198] sm:$0xff] %vm1454_vm3, %v6817_v16  ;;  %v1138_v18 = vpop.f32.mrb[51].mxu0  ;;  %v7362_v16 = vld [vmem:[%s7458_s25 + $0x1d8] sm:$0xff]  }
 0x14c   : > { %6989 = vmatmul.mubr.msk.bf16.gmra.mrb[156].mxu1 %vm709_vm2, %v7342_v9  ;;  %1504 = vst.msk [vmem:[#allocation2 + $0x188] sm:$0xff] %vm1454_vm3, %v1138_v18  ;;  %v7363_v9 = vld [vmem:[%s7458_s25 + $0x1e0] sm:$0xff]  }
 0x14d   : > { %6992 = vmatprep.mubr.msk.bf16.mxu1 %vm709_vm2, %v7344_v12  ;;  %7119 = vmatmul.mubr.msk.bf16.gmra.mrb[156].mxu0 %vm709_vm2, %v7345_v15 }
 0x14e   : > { %7122 = vmatprep.mubr.msk.bf16.mxu0 %vm709_vm2, %v7347_v17 }
 0x14f   : > { %v6884_v19 = vpop.f32.mrb[52].mxu1 }
 0x150   : > { %1573 = vst.msk [vmem:[#allocation2 + $0x3b0] sm:$0xff] %vm1454_vm3, %v6884_v19  ;;  %v1407_v20 = vpop.f32.mrb[53].mxu1  ;;  %v6820_v23 = vpop.f32.mrb[52].mxu0  ;;  %v1590_v19 = vld [vmem:[#allocation2 + $0x38] sm:$0xff] }
 0x151   : > { %1571 = vst.msk [vmem:[#allocation2 + $0x3a0] sm:$0xff] %vm1454_vm3, %v1407_v20  ;;  %v6885_v22 = vpop.f32.mrb[54].mxu1  ;;  %1509 = vst.msk [vmem:[#allocation2 + $0x1b0] sm:$0xff] %vm1454_vm3, %v6820_v23  ;;  %v1151_v26 = vpop.f32.mrb[53].mxu0 }
 0x152   : > { %1574 = vst.msk [vmem:[#allocation2 + $0x3b8] sm:$0xff] %vm1454_vm3, %v6885_v22  ;;  %v1410_v25 = vpop.f32.mrb[55].mxu1  ;;  %1507 = vst.msk [vmem:[#allocation2 + $0x1a0] sm:$0xff] %vm1454_vm3, %v1151_v26  ;;  %v6821_v28 = vpop.f32.mrb[54].mxu0  ;;  %v7364_v22 = vld [vmem:[%s7458_s25 + $0x1e0] sm:$0xff]   ;;  %v1588_v26 = vld [vmem:[#allocation2 + $0x28] sm:$0xff] }
 0x153   : > { %1572 = vst.msk [vmem:[#allocation2 + $0x3a8] sm:$0xff] %vm1454_vm3, %v1410_v25  ;;  %1510 = vst.msk [vmem:[#allocation2 + $0x1b8] sm:$0xff] %vm1454_vm3, %v6821_v28  ;;  %v1154_v30 = vpop.f32.mrb[55].mxu0 }
 0x154   : > { %6993 = vmatmul.mubr.msk.bf16.gmra.mrb[160].mxu1 %vm709_vm2, %v7346_v21  ;;  %1508 = vst.msk [vmem:[#allocation2 + $0x1a8] sm:$0xff] %vm1454_vm3, %v1154_v30 }
 0x155   : > { %6996 = vmatprep.mubr.msk.bf16.mxu1 %vm709_vm2, %v7348_v24  ;;  %7123 = vmatmul.mubr.msk.bf16.gmra.mrb[160].mxu0 %vm709_vm2, %v7349_v27 }
 0x156   : > { %7126 = vmatprep.mubr.msk.bf16.mxu0 %vm709_vm2, %v7351_v29  ;;  %v7365_v29 = vld [vmem:[%s7458_s25 + $0x1e8] sm:$0xff]  }
 0x157   : > { %v6888_v31 = vpop.f32.mrb[56].mxu1 }
 0x158   : > { %1577 = vst.msk [vmem:[#allocation2 + $0x3d0] sm:$0xff] %vm1454_vm3, %v6888_v31  ;;  %v1423_v32 = vpop.f32.mrb[57].mxu1  ;;  %v6824_v35 = vpop.f32.mrb[56].mxu0 }
 0x159   : > { %1575 = vst.msk [vmem:[#allocation2 + $0x3c0] sm:$0xff] %vm1454_vm3, %v1423_v32  ;;  %v6889_v34 = vpop.f32.mrb[58].mxu1  ;;  %1513 = vst.msk [vmem:[#allocation2 + $0x1d0] sm:$0xff] %vm1454_vm3, %v6824_v35  ;;  %v1167_v38 = vpop.f32.mrb[57].mxu0 }
 0x15a   : > { %1578 = vst.msk [vmem:[#allocation2 + $0x3d8] sm:$0xff] %vm1454_vm3, %v6889_v34  ;;  %v1426_v37 = vpop.f32.mrb[59].mxu1  ;;  %1511 = vst.msk [vmem:[#allocation2 + $0x1c0] sm:$0xff] %vm1454_vm3, %v1167_v38  ;;  %v6825_v40 = vpop.f32.mrb[58].mxu0  ;;  %v7367_v34 = vld [vmem:[%s7458_s25 + $0x1f0] sm:$0xff]  }
 0x15b   : > { %1576 = vst.msk [vmem:[#allocation2 + $0x3c8] sm:$0xff] %vm1454_vm3, %v1426_v37  ;;  %1514 = vst.msk [vmem:[#allocation2 + $0x1d8] sm:$0xff] %vm1454_vm3, %v6825_v40  ;;  %v1170_v42 = vpop.f32.mrb[59].mxu0 }
 0x15c   : > { %6997 = vmatmul.mubr.msk.bf16.gmra.mrb[164].mxu1 %vm709_vm2, %v7350_v33  ;;  %1512 = vst.msk [vmem:[#allocation2 + $0x1c8] sm:$0xff] %vm1454_vm3, %v1170_v42 }
 0x15d   : > { %7000 = vmatprep.mubr.msk.bf16.mxu1 %vm709_vm2, %v7352_v36  ;;  %7127 = vmatmul.mubr.msk.bf16.gmra.mrb[164].mxu0 %vm709_vm2, %v7353_v39  ;;  %v1593_v39 = vld [vmem:[#allocation2 + $0x50] sm:$0xff] }
 0x15e   : > { %7130 = vmatprep.mubr.msk.bf16.mxu0 %vm709_vm2, %v7355_v41  ;;  %v7967_v41 = vld [vmem:[%s8670_s2] ss:$0 sm:$0xff] }
 0x15f   : > { %v6892_v43 = vpop.f32.mrb[60].mxu1 }
 0x160   : > { %1581 = vst.msk [vmem:[#allocation2 + $0x3f0] sm:$0xff] %vm1454_vm3, %v6892_v43  ;;  %v1439_v44 = vpop.f32.mrb[61].mxu1  ;;  %v6828_v47 = vpop.f32.mrb[60].mxu0  ;;  %v1591_v43 = vld [vmem:[#allocation2 + $0x40] sm:$0xff] }
 0x161   : > { %1579 = vst.msk [vmem:[#allocation2 + $0x3e0] sm:$0xff] %vm1454_vm3, %v1439_v44  ;;  %v6893_v46 = vpop.f32.mrb[62].mxu1  ;;  %1517 = vst.msk [vmem:[#allocation2 + $0x1f0] sm:$0xff] %vm1454_vm3, %v6828_v47  ;;  %v1183_v50 = vpop.f32.mrb[61].mxu0 }
 0x162   : > { %1582 = vst.msk [vmem:[#allocation2 + $0x3f8] sm:$0xff] %vm1454_vm3, %v6893_v46  ;;  %v1442_v49 = vpop.f32.mrb[63].mxu1  ;;  %1515 = vst.msk [vmem:[#allocation2 + $0x1e0] sm:$0xff] %vm1454_vm3, %v1183_v50  ;;  %v6829_v52 = vpop.f32.mrb[62].mxu0 }
 0x163   : > { %1580 = vst.msk [vmem:[#allocation2 + $0x3e8] sm:$0xff] %vm1454_vm3, %v1442_v49  ;;  %1518 = vst.msk [vmem:[#allocation2 + $0x1f8] sm:$0xff] %vm1454_vm3, %v6829_v52  ;;  %v1186_v54 = vpop.f32.mrb[63].mxu0 }
 0x164   : > { %7001 = vmatmul.mubr.msk.bf16.gmra.mrb[168].mxu1 %vm709_vm2, %v7354_v45  ;;  %1516 = vst.msk [vmem:[#allocation2 + $0x1e8] sm:$0xff] %vm1454_vm3, %v1186_v54  ;;  %v7366_v45 = vld [vmem:[%s7458_s25 + $0x1e8] sm:$0xff]  }
 0x165   : > { %7004 = vmatprep.mubr.msk.bf16.mxu1 %vm709_vm2, %v7356_v48  ;;  %7131 = vmatmul.mubr.msk.bf16.gmra.mrb[168].mxu0 %vm709_vm2, %v7357_v51  ;;  %v1594_v48 = vld [vmem:[#allocation2 + $0x58] sm:$0xff]  ;;  %v7368_v51 = vld [vmem:[%s7458_s25 + $0x1f0] sm:$0xff]  }
 0x166   : > { %7134 = vmatprep.mubr.msk.bf16.mxu0 %vm709_vm2, %v7359_v53 }
 0x167   : > { %v6898_v56 = vpop.f32.mrb[64].mxu1 }
 0x168   : > { %v2909_v57 = vadd.f32 %v6898_v56, %v1585_v55  ;;  %v2396_v59 = vpop.f32.mrb[65].mxu1  ;;  %v7028_v0 = vpop.f32.mrb[64].mxu0  ;;  %v1592_v55 = vld [vmem:[#allocation2 + $0x48] sm:$0xff] }
 0x169   : > { %v2907_v61 = vadd.f32 %v2396_v59, %v1583_v58  ;;  %v6899_v63 = vpop.f32.mrb[66].mxu1  ;;  %v3976_v5 = vpop.f32.mrb[65].mxu0  ;;  %v7369_v58 = vld [vmem:[%s7458_s25 + $0x1f8] sm:$0xff]  }
 0x16a   : > { %3037 = vst.msk [vmem:[#allocation2 + $0x10] sm:$0xff] %vm1454_vm3, %v2909_v57  ;;  %v2910_v2 = vadd.f32 %v6899_v63, %v1586_v62  ;;  %v2399_v4 = vpop.f32.mrb[67].mxu1  ;;  %v7029_v8 = vpop.f32.mrb[66].mxu0 }
 0x16b   : > { %3035 = vst.msk [vmem:[#allocation2] sm:$0xff] %vm1454_vm3, %v2907_v61  ;;  %v2908_v7 = vadd.f32 %v2399_v4, %v1584_v3  ;;  %v3979_v10 = vpop.f32.mrb[67].mxu0 }
 0x16c   : > { %3038 = vst.msk [vmem:[#allocation2 + $0x18] sm:$0xff] %vm1454_vm3, %v2910_v2  ;;  %7005 = vmatmul.mubr.msk.bf16.gmra.mrb[172].mxu1 %vm709_vm2, %v7358_v60 }
 0x16d   : > { %3036 = vst.msk [vmem:[#allocation2 + $0x8] sm:$0xff] %vm1454_vm3, %v2908_v7  ;;  %7008 = vmatprep.mubr.msk.bf16.mxu1 %vm709_vm2, %v7360_v1  ;;  %7135 = vmatmul.mubr.msk.bf16.gmra.mrb[172].mxu0 %vm709_vm2, %v7361_v6 }
 0x16e   : > { %7138 = vmatprep.mubr.msk.bf16.mxu0 %vm709_vm2, %v7363_v9 }
 0x16f   : > { %v6902_v12 = vpop.f32.mrb[68].mxu1 }
 0x170   : > { %v2913_v13 = vadd.f32 %v6902_v12, %v1589_v11  ;;  %v2412_v15 = vpop.f32.mrb[69].mxu1  ;;  %v7032_v21 = vpop.f32.mrb[68].mxu0 }
 0x171   : > { %v3165_v17 = vld [vmem:[#allocation2 + $0x10] sm:$0xff]  ;;  %v2911_v18 = vadd.f32 %v2412_v15, %v1587_v14  ;;  %v6903_v20 = vpop.f32.mrb[70].mxu1  ;;  %v3992_v28 = vpop.f32.mrb[69].mxu0 }
 0x172   : > { %v4489_v23 = vadd.f32 %v7028_v0, %v3165_v17  ;;  %3041 = vst.msk [vmem:[#allocation2 + $0x30] sm:$0xff] %vm1454_vm3, %v2913_v13  ;;  %v3163_v24 = vld [vmem:[#allocation2] sm:$0xff]  ;;  %v2914_v25 = vadd.f32 %v6903_v20, %v1590_v19  ;;  %v2415_v27 = vpop.f32.mrb[71].mxu1  ;;  %v7033_v33 = vpop.f32.mrb[70].mxu0  ;;  %v1597_v14 = vld [vmem:[#allocation2 + $0x70] sm:$0xff] }
 0x173   : > { %v4487_v30 = vadd.f32 %v3976_v5, %v3163_v24  ;;  %3039 = vst.msk [vmem:[#allocation2 + $0x20] sm:$0xff] %vm1454_vm3, %v2911_v18  ;;  %v3166_v31 = vld [vmem:[#allocation2 + $0x18] sm:$0xff]  ;;  %v2912_v32 = vadd.f32 %v2415_v27, %v1588_v26  ;;  %v3995_v37 = vpop.f32.mrb[71].mxu0  ;;  %v7371_v0 = vld [vmem:[%s7458_s25 + $0x200] sm:$0xff]  }
 0x174   : > { %4617 = vst.msk [vmem:[#allocation2 + $0x10] sm:$0xff] %vm1454_vm3, %v4489_v23  ;;  %v4490_v35 = vadd.f32 %v7029_v8, %v3166_v31  ;;  %3042 = vst.msk [vmem:[#allocation2 + $0x38] sm:$0xff] %vm1454_vm3, %v2914_v25  ;;  %v3164_v36 = vld [vmem:[#allocation2 + $0x8] sm:$0xff]  ;;  %7009 = vmatmul.mubr.msk.bf16.gmra.mrb[176].mxu1 %vm709_vm2, %v7362_v16  ;;  %v1595_v19 = vld [vmem:[#allocation2 + $0x60] sm:$0xff] }
 0x175   : > { %4615 = vst.msk [vmem:[#allocation2] sm:$0xff] %vm1454_vm3, %v4487_v30  ;;  %v4488_v38 = vadd.f32 %v3979_v10, %v3164_v36  ;;  %3040 = vst.msk [vmem:[#allocation2 + $0x28] sm:$0xff] %vm1454_vm3, %v2912_v32  ;;  %7012 = vmatprep.mubr.msk.bf16.mxu1 %vm709_vm2, %v7364_v22  ;;  %7139 = vmatmul.mubr.msk.bf16.gmra.mrb[176].mxu0 %vm709_vm2, %v7365_v29  ;;  %v1598_v26 = vld [vmem:[#allocation2 + $0x78] sm:$0xff]  ;;  %v7372_v29 = vld [vmem:[%s7458_s25 + $0x200] sm:$0xff]  }
 0x176   : > { %4618 = vst.msk [vmem:[#allocation2 + $0x18] sm:$0xff] %vm1454_vm3, %v4490_v35  ;;  %7142 = vmatprep.mubr.msk.bf16.mxu0 %vm709_vm2, %v7367_v34  ;;  %v1596_v34 = vld [vmem:[#allocation2 + $0x68] sm:$0xff] }
 0x177   : > { %4616 = vst.msk [vmem:[#allocation2 + $0x8] sm:$0xff] %vm1454_vm3, %v4488_v38  ;;  %v6906_v40 = vpop.f32.mrb[72].mxu1 }
 0x178   : > { %v2917_v42 = vadd.f32 %v6906_v40, %v1593_v39  ;;  %v2428_v44 = vpop.f32.mrb[73].mxu1  ;;  %v7036_v50 = vpop.f32.mrb[72].mxu0 }
 0x179   : > { %v3169_v46 = vld [vmem:[#allocation2 + $0x30] sm:$0xff]  ;;  %v2915_v47 = vadd.f32 %v2428_v44, %v1591_v43  ;;  %v6907_v49 = vpop.f32.mrb[74].mxu1  ;;  %v7972_v57 = vpop.f32.mrb[73].mxu0 }
 0x17a   : > { %v4493_v52 = vadd.f32 %v7032_v21, %v3169_v46  ;;  %3045 = vst.msk [vmem:[#allocation2 + $0x50] sm:$0xff] %vm1454_vm3, %v2917_v42  ;;  %v3167_v53 = vld [vmem:[#allocation2 + $0x20] sm:$0xff]  ;;  %v2918_v54 = vadd.f32 %v6907_v49, %v1594_v48  ;;  %v2431_v56 = vpop.f32.mrb[75].mxu1  ;;  %v7976_v63 = vpop.f32.mrb[74].mxu0  ;;  %v7370_v21 = vld [vmem:[%s7458_s25 + $0x1f8] sm:$0xff]  }
 0x17b   : > { %v4745_v59 = vld [vmem:[#allocation2 + $0x10] sm:$0xff]  ;;  %v4491_v60 = vadd.f32 %v3992_v28, %v3167_v53  ;;  %3043 = vst.msk [vmem:[#allocation2 + $0x40] sm:$0xff] %vm1454_vm3, %v2915_v47  ;;  %v3170_v61 = vld [vmem:[#allocation2 + $0x38] sm:$0xff]  ;;  %v2916_v62 = vadd.f32 %v2431_v56, %v1592_v55  ;;  %v7984_v5 = vpop.f32.mrb[75].mxu0 }
 0x17c   : > { %v4880_v1 = vadd.f32 %v7967_v41, %v4745_v59  ;;  %v4743_v2 = vld [vmem:[#allocation2] sm:$0xff]  ;;  %4621 = vst.msk [vmem:[#allocation2 + $0x30] sm:$0xff] %vm1454_vm3, %v4493_v52  ;;  %v4494_v3 = vadd.f32 %v7033_v33, %v3170_v61  ;;  %3046 = vst.msk [vmem:[#allocation2 + $0x58] sm:$0xff] %vm1454_vm3, %v2918_v54  ;;  %v3168_v4 = vld [vmem:[#allocation2 + $0x28] sm:$0xff]  ;;  %7013 = vmatmul.mubr.msk.bf16.gmra.mrb[180].mxu1 %vm709_vm2, %v7366_v45 }
 0x17d   : > { %v4878_v6 = vadd.f32 %v7967_v41, %v4743_v2  ;;  %v4746_v7 = vld [vmem:[#allocation2 + $0x18] sm:$0xff]  ;;  %4619 = vst.msk [vmem:[#allocation2 + $0x20] sm:$0xff] %vm1454_vm3, %v4491_v60  ;;  %v4492_v8 = vadd.f32 %v3995_v37, %v3168_v4  ;;  %3044 = vst.msk [vmem:[#allocation2 + $0x48] sm:$0xff] %vm1454_vm3, %v2916_v62  ;;  %7016 = vmatprep.mubr.msk.bf16.mxu1 %vm709_vm2, %v7368_v51  ;;  %7143 = vmatmul.mubr.msk.bf16.gmra.mrb[180].mxu0 %vm709_vm2, %v7369_v58  ;;  %v7373_v37 = vld [vmem:[%s7458_s25 + $0x208] sm:$0xff]  }
 0x17e   : > { %v5008_v9 = vmax.f32 %v4880_v1, 0.0  ;;  %v4881_v10 = vadd.f32 %v7967_v41, %v4746_v7  ;;  %v4744_v11 = vld [vmem:[#allocation2 + $0x8] sm:$0xff]  ;;  %4622 = vst.msk [vmem:[#allocation2 + $0x38] sm:$0xff] %vm1454_vm3, %v4494_v3  ;;  %7146 = vmatprep.mubr.msk.bf16.mxu0 %vm709_vm2, %v7371_v0  ;;  %v7375_v45 = vld [vmem:[%s7458_s25 + $0x210] sm:$0xff]   ;;  %v1599_v0 = vld [vmem:[#allocation2 + $0x80] sm:$0xff] }
 0x17f   : > { %v5006_v12 = vmax.f32 %v4878_v6, 0.0  ;;  %v4879_v13 = vadd.f32 %v7967_v41, %v4744_v11  ;;  %4620 = vst.msk [vmem:[#allocation2 + $0x28] sm:$0xff] %vm1454_vm3, %v4492_v8  ;;  %v6910_v15 = vpop.f32.mrb[76].mxu1  ;;  %v1601_v59 = vld [vmem:[#allocation2 + $0x90] sm:$0xff]  ;;  %v7374_v2 = vld [vmem:[%s7458_s25 + $0x208] sm:$0xff]   ;;  %v1602_v7 = vld [vmem:[#allocation2 + $0x98] sm:$0xff] }
 0x180   : > { %v6443_v16 = vpack.c.bf16 %v5008_v9, %v5008_v9  ;;  %v5009_v17 = vmax.f32 %v4881_v10, 0.0  ;;  %v2921_v18 = vadd.f32 %v6910_v15, %v1597_v14  ;;  %v2444_v20 = vpop.f32.mrb[77].mxu1  ;;  %v8002_v28 = vpop.f32.mrb[76].mxu0  ;;  %v1600_v14 = vld [vmem:[#allocation2 + $0x88] sm:$0xff] }
 0x181   : > { %v6441_v22 = vpack.c.bf16 %v5006_v12, %v5006_v12  ;;  %v5007_v23 = vmax.f32 %v4879_v13, 0.0  ;;  %v3173_v24 = vld [vmem:[#allocation2 + $0x50] sm:$0xff]  ;;  %v2919_v25 = vadd.f32 %v2444_v20, %v1595_v19  ;;  %v6911_v27 = vpop.f32.mrb[78].mxu1  ;;  %v8008_v36 = vpop.f32.mrb[77].mxu0 }
 0x182   : > { %5649 = vst.msk [vmem:[%s7996_s4 + $0x8] sm:$0xf] %vm5646_vm4, %v6443_v16  ;;  %v6444_v30 = vpack.c.bf16 %v5009_v17, %v5009_v17  ;;  %v4497_v31 = vadd.f32 %v7036_v50, %v3173_v24  ;;  %v3171_v32 = vld [vmem:[#allocation2 + $0x40] sm:$0xff]  ;;  %v2922_v33 = vadd.f32 %v6911_v27, %v1598_v26  ;;  %v2447_v35 = vpop.f32.mrb[79].mxu1  ;;  %v8015_v44 = vpop.f32.mrb[78].mxu0  ;;  %v7376_v17 = vld [vmem:[%s7458_s25 + $0x218] sm:$0xff]  }
 0x183   : > { %3049 = vst.msk [vmem:[#allocation2 + $0x70] sm:$0xff] %vm1454_vm3, %v2921_v18  ;;  %v6442_v38 = vpack.c.bf16 %v5007_v23, %v5007_v23  ;;  %v4749_v39 = vld [vmem:[#allocation2 + $0x30] sm:$0xff]  ;;  %v4495_v40 = vadd.f32 %v7972_v57, %v3171_v32  ;;  %3047 = vst.msk [vmem:[#allocation2 + $0x60] sm:$0xff] %vm1454_vm3, %v2919_v25  ;;  %v3174_v42 = vld [vmem:[#allocation2 + $0x58] sm:$0xff]  ;;  %v2920_v43 = vadd.f32 %v2447_v35, %v1596_v34  ;;  %v8025_v50 = vpop.f32.mrb[79].mxu0 }
 0x184   : > { %5647 = vst.msk [vmem:[%s7996_s4] sm:$0xf] %vm5646_vm4, %v6441_v22  ;;  %5650 = vst.msk [vmem:[%s7996_s4 + $0xc] sm:$0xf] %vm5646_vm4, %v6444_v30  ;;  %v4884_v46 = vadd.f32 %v7967_v41, %v4749_v39  ;;  %v4747_v47 = vld [vmem:[#allocation2 + $0x20] sm:$0xff]  ;;  %v4498_v48 = vadd.f32 %v7976_v63, %v3174_v42  ;;  %v3172_v49 = vld [vmem:[#allocation2 + $0x48] sm:$0xff]  ;;  %7017 = vmatmul.mubr.msk.bf16.gmra.mrb[184].mxu1 %vm709_vm2, %v7370_v21 }
 0x185   : > { %4625 = vst.msk [vmem:[#allocation2 + $0x50] sm:$0xff] %vm1454_vm3, %v4497_v31  ;;  %3050 = vst.msk [vmem:[#allocation2 + $0x78] sm:$0xff] %vm1454_vm3, %v2922_v33  ;;  %v4882_v51 = vadd.f32 %v7967_v41, %v4747_v47  ;;  %v4750_v52 = vld [vmem:[#allocation2 + $0x38] sm:$0xff]  ;;  %v4496_v53 = vadd.f32 %v7984_v5, %v3172_v49  ;;  %7020 = vmatprep.mubr.msk.bf16.mxu1 %vm709_vm2, %v7372_v29  ;;  %7147 = vmatmul.mubr.msk.bf16.gmra.mrb[184].mxu0 %vm709_vm2, %v7373_v37  ;;  %v1605_v37 = vld [vmem:[#allocation2 + $0xb0] sm:$0xff] }
 0x186   : > { %5648 = vst.msk [vmem:[%s7996_s4 + $0x4] sm:$0xf] %vm5646_vm4, %v6442_v38  ;;  %v5012_v54 = vmax.f32 %v4884_v46, 0.0  ;;  %v4885_v55 = vadd.f32 %v7967_v41, %v4750_v52  ;;  %v4748_v56 = vld [vmem:[#allocation2 + $0x28] sm:$0xff]  ;;  %7150 = vmatprep.mubr.msk.bf16.mxu0 %vm709_vm2, %v7375_v45  ;;  %v1606_v49 = vld [vmem:[#allocation2 + $0xb8] sm:$0xff] }
 0x187   : > { %4623 = vst.msk [vmem:[#allocation2 + $0x40] sm:$0xff] %vm1454_vm3, %v4495_v40  ;;  %3048 = vst.msk [vmem:[#allocation2 + $0x68] sm:$0xff] %vm1454_vm3, %v2920_v43  ;;  %v5010_v57 = vmax.f32 %v4882_v51, 0.0  ;;  %v4883_v58 = vadd.f32 %v7967_v41, %v4748_v56  ;;  %v6914_v60 = vpop.f32.mrb[80].mxu1  ;;  %v1603_v43 = vld [vmem:[#allocation2 + $0xa0] sm:$0xff]  ;;  %v1604_v56 = vld [vmem:[#allocation2 + $0xa8] sm:$0xff] }
 0x188   : > { %4626 = vst.msk [vmem:[#allocation2 + $0x58] sm:$0xff] %vm1454_vm3, %v4498_v48  ;;  %4624 = vst.msk [vmem:[#allocation2 + $0x48] sm:$0xff] %vm1454_vm3, %v4496_v53  ;;  %v6447_v61 = vpack.c.bf16 %v5012_v54, %v5012_v54  ;;  %v5013_v62 = vmax.f32 %v4885_v55, 0.0  ;;  %v2925_v63 = vadd.f32 %v6914_v60, %v1601_v59  ;;  %v2460_v1 = vpop.f32.mrb[81].mxu1  ;;  %v7044_v9 = vpop.f32.mrb[80].mxu0 }
 0x189   : > { %v6445_v3 = vpack.c.bf16 %v5010_v57, %v5010_v57  ;;  %v5011_v4 = vmax.f32 %v4883_v58, 0.0  ;;  %v2923_v6 = vadd.f32 %v2460_v1, %v1599_v0  ;;  %v6915_v8 = vpop.f32.mrb[82].mxu1  ;;  %v4040_v16 = vpop.f32.mrb[81].mxu0 }
 0x18a   : > { %v3177_v5 = vld [vmem:[#allocation2 + $0x70] sm:$0xff]  ;;  %5653 = vst.msk [vmem:[%s7996_s4 + $0x18] sm:$0xf] %vm5646_vm4, %v6447_v61  ;;  %v6448_v10 = vpack.c.bf16 %v5013_v62, %v5013_v62  ;;  %v3175_v12 = vld [vmem:[#allocation2 + $0x60] sm:$0xff]  ;;  %v2926_v13 = vadd.f32 %v6915_v8, %v1602_v7  ;;  %v2463_v15 = vpop.f32.mrb[83].mxu1  ;;  %v7045_v23 = vpop.f32.mrb[82].mxu0 }
 0x18b   : > { %v4501_v11 = vadd.f32 %v8002_v28, %v3177_v5  ;;  %3053 = vst.msk [vmem:[#allocation2 + $0x90] sm:$0xff] %vm1454_vm3, %v2925_v63  ;;  %v6446_v18 = vpack.c.bf16 %v5011_v4, %v5011_v4  ;;  %v4499_v20 = vadd.f32 %v8008_v36, %v3175_v12  ;;  %3051 = vst.msk [vmem:[#allocation2 + $0x80] sm:$0xff] %vm1454_vm3, %v2923_v6  ;;  %v4043_v28 = vpop.f32.mrb[83].mxu0 }
 0x18c   : > { %5651 = vst.msk [vmem:[%s7996_s4 + $0x10] sm:$0xf] %vm5646_vm4, %v6445_v3  ;;  %v4753_v19 = vld [vmem:[#allocation2 + $0x50] sm:$0xff]  ;;  %v3178_v21 = vld [vmem:[#allocation2 + $0x78] sm:$0xff]  ;;  %v2924_v22 = vadd.f32 %v2463_v15, %v1600_v14  ;;  %5654 = vst.msk [vmem:[%s7996_s4 + $0x1c] sm:$0xf] %vm5646_vm4, %v6448_v10  ;;  %7021 = vmatmul.mubr.msk.bf16.gmra.mrb[188].mxu1 %vm709_vm2, %v7374_v2 }
 0x18d   : > { %v4888_v24 = vadd.f32 %v7967_v41, %v4753_v19  ;;  %4629 = vst.msk [vmem:[#allocation2 + $0x70] sm:$0xff] %vm1454_vm3, %v4501_v11  ;;  %v4502_v26 = vadd.f32 %v8015_v44, %v3178_v21  ;;  %3054 = vst.msk [vmem:[#allocation2 + $0x98] sm:$0xff] %vm1454_vm3, %v2926_v13  ;;  %7151 = vmatmul.mubr.msk.bf16.gmra.mrb[188].mxu0 %vm709_vm2, %v7376_v17  ;;  %v1609_v14 = vld [vmem:[#allocation2 + $0xd0] sm:$0xff]  ;;  %v1607_v19 = vld [vmem:[#allocation2 + $0xc0] sm:$0xff] }
 0x18e   : > { %v4751_v25 = vld [vmem:[#allocation2 + $0x40] sm:$0xff]  ;;  %v3176_v27 = vld [vmem:[#allocation2 + $0x68] sm:$0xff]  ;;  %5652 = vst.msk [vmem:[%s7996_s4 + $0x14] sm:$0xf] %vm5646_vm4, %v6446_v18 }
 0x18f   : > { %v4886_v29 = vadd.f32 %v7967_v41, %v4751_v25  ;;  %v4754_v30 = vld [vmem:[#allocation2 + $0x58] sm:$0xff]  ;;  %4627 = vst.msk [vmem:[#allocation2 + $0x60] sm:$0xff] %vm1454_vm3, %v4499_v20  ;;  %v4500_v31 = vadd.f32 %v8025_v50, %v3176_v27  ;;  %3052 = vst.msk [vmem:[#allocation2 + $0x88] sm:$0xff] %vm1454_vm3, %v2924_v22  ;;  %v5016_v32 = vmax.f32 %v4888_v24, 0.0  ;;  %v4752_v34 = vld [vmem:[#allocation2 + $0x48] sm:$0xff]  ;;  %v6918_v38 = vpop.f32.mrb[84].mxu1 }
 0x190   : > { %v4889_v33 = vadd.f32 %v7967_v41, %v4754_v30  ;;  %4630 = vst.msk [vmem:[#allocation2 + $0x78] sm:$0xff] %vm1454_vm3, %v4502_v26  ;;  %v4887_v36 = vadd.f32 %v7967_v41, %v4752_v34  ;;  %v2929_v42 = vadd.f32 %v6918_v38, %v1605_v37  ;;  %v2476_v44 = vpop.f32.mrb[85].mxu1  ;;  %v7048_v51 = vpop.f32.mrb[84].mxu0  ;;  %v1610_v25 = vld [vmem:[#allocation2 + $0xd8] sm:$0xff] }
 0x191   : > { %v5014_v35 = vmax.f32 %v4886_v29, 0.0  ;;  %4628 = vst.msk [vmem:[#allocation2 + $0x68] sm:$0xff] %vm1454_vm3, %v4500_v31  ;;  %v6451_v39 = vpack.c.bf16 %v5016_v32, %v5016_v32  ;;  %v2927_v48 = vadd.f32 %v2476_v44, %v1603_v43  ;;  %v6919_v50 = vpop.f32.mrb[86].mxu1  ;;  %v4056_v58 = vpop.f32.mrb[85].mxu0  ;;  %v1608_v32 = vld [vmem:[#allocation2 + $0xc8] sm:$0xff] }
 0x192   : > { %v5017_v40 = vmax.f32 %v4889_v33, 0.0  ;;  %v5015_v46 = vmax.f32 %v4887_v36, 0.0  ;;  %v3181_v47 = vld [vmem:[#allocation2 + $0x90] sm:$0xff]  ;;  %3057 = vst.msk [vmem:[#allocation2 + $0xb0] sm:$0xff] %vm1454_vm3, %v2929_v42  ;;  %v3179_v54 = vld [vmem:[#allocation2 + $0x80] sm:$0xff]  ;;  %v2930_v55 = vadd.f32 %v6919_v50, %v1606_v49  ;;  %v2479_v57 = vpop.f32.mrb[87].mxu1 }
 0x193   : > { %v6449_v45 = vpack.c.bf16 %v5014_v35, %v5014_v35  ;;  %5657 = vst.msk [vmem:[%s7996_s4 + $0x28] sm:$0xf] %vm5646_vm4, %v6451_v39  ;;  %v4505_v53 = vadd.f32 %v7044_v9, %v3181_v47  ;;  %v4503_v61 = vadd.f32 %v4040_v16, %v3179_v54  ;;  %v2928_v63 = vadd.f32 %v2479_v57, %v1604_v56  ;;  %v7049_v0 = vpop.f32.mrb[86].mxu0 }
 0x194   : > { %v6452_v52 = vpack.c.bf16 %v5017_v40, %v5017_v40  ;;  %v6450_v59 = vpack.c.bf16 %v5015_v46, %v5015_v46  ;;  %v4757_v60 = vld [vmem:[#allocation2 + $0x70] sm:$0xff]  ;;  %3055 = vst.msk [vmem:[#allocation2 + $0xa0] sm:$0xff] %vm1454_vm3, %v2927_v48  ;;  %v3182_v62 = vld [vmem:[#allocation2 + $0x98] sm:$0xff]  ;;  %3058 = vst.msk [vmem:[#allocation2 + $0xb8] sm:$0xff] %vm1454_vm3, %v2930_v55  ;;  %v4059_v5 = vpop.f32.mrb[87].mxu0 }
 0x195   : > { %5655 = vst.msk [vmem:[%s7996_s4 + $0x20] sm:$0xf] %vm5646_vm4, %v6449_v45  ;;  %v4892_v1 = vadd.f32 %v7967_v41, %v4757_v60  ;;  %v4506_v3 = vadd.f32 %v7045_v23, %v3182_v62  ;;  %v1613_v55 = vld [vmem:[#allocation2 + $0xf0] sm:$0xff]  ;;  %v1611_v60 = vld [vmem:[#allocation2 + $0xe0] sm:$0xff] }
 0x196   : > { %5658 = vst.msk [vmem:[%s7996_s4 + $0x2c] sm:$0xf] %vm5646_vm4, %v6452_v52  ;;  %v4755_v2 = vld [vmem:[#allocation2 + $0x60] sm:$0xff]  ;;  %v3180_v4 = vld [vmem:[#allocation2 + $0x88] sm:$0xff]  ;;  %5656 = vst.msk [vmem:[%s7996_s4 + $0x24] sm:$0xf] %vm5646_vm4, %v6450_v59 }
 0x197   : > { %4633 = vst.msk [vmem:[#allocation2 + $0x90] sm:$0xff] %vm1454_vm3, %v4505_v53  ;;  %v4890_v6 = vadd.f32 %v7967_v41, %v4755_v2  ;;  %v4758_v7 = vld [vmem:[#allocation2 + $0x78] sm:$0xff]  ;;  %4631 = vst.msk [vmem:[#allocation2 + $0x80] sm:$0xff] %vm1454_vm3, %v4503_v61  ;;  %v4504_v8 = vadd.f32 %v4043_v28, %v3180_v4  ;;  %v5020_v9 = vmax.f32 %v4892_v1, 0.0  ;;  %v6922_v15 = vpop.f32.mrb[88].mxu1 }
 0x198   : > { %3056 = vst.msk [vmem:[#allocation2 + $0xa8] sm:$0xff] %vm1454_vm3, %v2928_v63  ;;  %v4893_v10 = vadd.f32 %v7967_v41, %v4758_v7  ;;  %v4756_v11 = vld [vmem:[#allocation2 + $0x68] sm:$0xff]  ;;  %4634 = vst.msk [vmem:[#allocation2 + $0x98] sm:$0xff] %vm1454_vm3, %v4506_v3  ;;  %v2933_v18 = vadd.f32 %v6922_v15, %v1609_v14  ;;  %v2492_v20 = vpop.f32.mrb[89].mxu1  ;;  %v7052_v27 = vpop.f32.mrb[88].mxu0  ;;  %v1614_v2 = vld [vmem:[#allocation2 + $0xf8] sm:$0xff] }
 0x199   : > { %v5018_v12 = vmax.f32 %v4890_v6, 0.0  ;;  %v4891_v13 = vadd.f32 %v7967_v41, %v4756_v11  ;;  %4632 = vst.msk [vmem:[#allocation2 + $0x88] sm:$0xff] %vm1454_vm3, %v4504_v8  ;;  %v6455_v16 = vpack.c.bf16 %v5020_v9, %v5020_v9  ;;  %v3185_v23 = vld [vmem:[#allocation2 + $0xb0] sm:$0xff]  ;;  %v2931_v24 = vadd.f32 %v2492_v20, %v1607_v19  ;;  %v6923_v26 = vpop.f32.mrb[90].mxu1  ;;  %v4072_v34 = vpop.f32.mrb[89].mxu0  ;;  %v1612_v9 = vld [vmem:[#allocation2 + $0xe8] sm:$0xff] }
 0x19a   : > { %v5021_v17 = vmax.f32 %v4893_v10, 0.0  ;;  %v4509_v29 = vadd.f32 %v7048_v51, %v3185_v23  ;;  %3061 = vst.msk [vmem:[#allocation2 + $0xd0] sm:$0xff] %vm1454_vm3, %v2933_v18  ;;  %v2934_v31 = vadd.f32 %v6923_v26, %v1610_v25  ;;  %v2495_v33 = vpop.f32.mrb[91].mxu1  ;;  %v7053_v40 = vpop.f32.mrb[90].mxu0 }
 0x19b   : > { %v6453_v21 = vpack.c.bf16 %v5018_v12, %v5018_v12  ;;  %v5019_v22 = vmax.f32 %v4891_v13, 0.0  ;;  %5661 = vst.msk [vmem:[%s7996_s4 + $0x38] sm:$0xf] %vm5646_vm4, %v6455_v16  ;;  %v3183_v30 = vld [vmem:[#allocation2 + $0xa0] sm:$0xff]  ;;  %v3186_v38 = vld [vmem:[#allocation2 + $0xb8] sm:$0xff]  ;;  %v2932_v39 = vadd.f32 %v2495_v33, %v1608_v32  ;;  %v4075_v46 = vpop.f32.mrb[91].mxu0 }
 0x19c   : > { %v6456_v28 = vpack.c.bf16 %v5021_v17, %v5021_v17  ;;  %v4507_v37 = vadd.f32 %v4056_v58, %v3183_v30  ;;  %3059 = vst.msk [vmem:[#allocation2 + $0xc0] sm:$0xff] %vm1454_vm3, %v2931_v24  ;;  %4637 = vst.msk [vmem:[#allocation2 + $0xb0] sm:$0xff] %vm1454_vm3, %v4509_v29  ;;  %v4510_v44 = vadd.f32 %v7049_v0, %v3186_v38 }
 0x19d   : > { %5659 = vst.msk [vmem:[%s7996_s4 + $0x30] sm:$0xf] %vm5646_vm4, %v6453_v21  ;;  %v6454_v35 = vpack.c.bf16 %v5019_v22, %v5019_v22 }
 0x19e   : > { %v4761_v36 = vld [vmem:[#allocation2 + $0x90] sm:$0xff]  ;;  %5662 = vst.msk [vmem:[%s7996_s4 + $0x3c] sm:$0xf] %vm5646_vm4, %v6456_v28  ;;  %v4759_v43 = vld [vmem:[#allocation2 + $0x80] sm:$0xff] }
 0x19f   : > { %v4896_v42 = vadd.f32 %v7967_v41, %v4761_v36  ;;  %3062 = vst.msk [vmem:[#allocation2 + $0xd8] sm:$0xff] %vm1454_vm3, %v2934_v31  ;;  %v3184_v45 = vld [vmem:[#allocation2 + $0xa8] sm:$0xff]  ;;  %v4894_v47 = vadd.f32 %v7967_v41, %v4759_v43  ;;  %v4762_v48 = vld [vmem:[#allocation2 + $0x98] sm:$0xff]  ;;  %4635 = vst.msk [vmem:[#allocation2 + $0xa0] sm:$0xff] %vm1454_vm3, %v4507_v37  ;;  %v6926_v56 = vpop.f32.mrb[92].mxu1 }
 0x1a0   : > { %5660 = vst.msk [vmem:[%s7996_s4 + $0x34] sm:$0xf] %vm5646_vm4, %v6454_v35  ;;  %v4508_v49 = vadd.f32 %v4059_v5, %v3184_v45  ;;  %v4897_v51 = vadd.f32 %v7967_v41, %v4762_v48  ;;  %v4760_v52 = vld [vmem:[#allocation2 + $0x88] sm:$0xff]  ;;  %v2937_v59 = vadd.f32 %v6926_v56, %v1613_v55  ;;  %v2508_v61 = vpop.f32.mrb[93].mxu1  ;;  %v7056_v4 = vpop.f32.mrb[92].mxu0  ;;  %v1617_v31 = vld [vmem:[#allocation2 + $0x110] sm:$0xff] }
 0x1a1   : > { %3060 = vst.msk [vmem:[#allocation2 + $0xc8] sm:$0xff] %vm1454_vm3, %v2932_v39  ;;  %v5024_v50 = vmax.f32 %v4896_v42, 0.0  ;;  %4638 = vst.msk [vmem:[#allocation2 + $0xb8] sm:$0xff] %vm1454_vm3, %v4510_v44  ;;  %v5022_v53 = vmax.f32 %v4894_v47, 0.0  ;;  %v4895_v54 = vadd.f32 %v7967_v41, %v4760_v52  ;;  %v3189_v0 = vld [vmem:[#allocation2 + $0xd0] sm:$0xff]  ;;  %v2935_v1 = vadd.f32 %v2508_v61, %v1611_v60  ;;  %v6927_v3 = vpop.f32.mrb[94].mxu1 }
 0x1a2   : > { %4636 = vst.msk [vmem:[#allocation2 + $0xa8] sm:$0xff] %vm1454_vm3, %v4508_v49  ;;  %v5025_v58 = vmax.f32 %v4897_v51, 0.0  ;;  %v4513_v6 = vadd.f32 %v7052_v27, %v3189_v0  ;;  %3065 = vst.msk [vmem:[#allocation2 + $0xf0] sm:$0xff] %vm1454_vm3, %v2937_v59  ;;  %v2938_v8 = vadd.f32 %v6927_v3, %v1614_v2  ;;  %v2511_v10 = vpop.f32.mrb[95].mxu1  ;;  %v4088_v11 = vpop.f32.mrb[93].mxu0  ;;  %v1615_v36 = vld [vmem:[#allocation2 + $0x100] sm:$0xff] }
 0x1a3   : > { %v6459_v57 = vpack.c.bf16 %v5024_v50, %v5024_v50  ;;  %v6457_v62 = vpack.c.bf16 %v5022_v53, %v5022_v53  ;;  %v5023_v63 = vmax.f32 %v4895_v54, 0.0  ;;  %v3187_v7 = vld [vmem:[#allocation2 + $0xc0] sm:$0xff]  ;;  %v4765_v13 = vld [vmem:[#allocation2 + $0xb0] sm:$0xff]  ;;  %3063 = vst.msk [vmem:[#allocation2 + $0xe0] sm:$0xff] %vm1454_vm3, %v2935_v1  ;;  %v2936_v16 = vadd.f32 %v2511_v10, %v1612_v9  ;;  %v7057_v17 = vpop.f32.mrb[94].mxu0  ;;  %v1618_v43 = vld [vmem:[#allocation2 + $0x118] sm:$0xff] }
 0x1a4   : > { %v6460_v5 = vpack.c.bf16 %v5025_v58, %v5025_v58  ;;  %v4511_v14 = vadd.f32 %v4072_v34, %v3187_v7  ;;  %v4900_v18 = vadd.f32 %v7967_v41, %v4765_v13  ;;  %4641 = vst.msk [vmem:[#allocation2 + $0xd0] sm:$0xff] %vm1454_vm3, %v4513_v6  ;;  %3066 = vst.msk [vmem:[#allocation2 + $0xf8] sm:$0xff] %vm1454_vm3, %v2938_v8  ;;  %v4091_v22 = vpop.f32.mrb[95].mxu0  ;;  %v1616_v50 = vld [vmem:[#allocation2 + $0x108] sm:$0xff]  ;;  %v1621_v8 = vld [vmem:[#allocation2 + $0x130] sm:$0xff] }
 0x1a5   : > { %5665 = vst.msk [vmem:[%s7996_s4 + $0x48] sm:$0xf] %vm5646_vm4, %v6459_v57  ;;  %5663 = vst.msk [vmem:[%s7996_s4 + $0x40] sm:$0xf] %vm5646_vm4, %v6457_v62  ;;  %v6458_v12 = vpack.c.bf16 %v5023_v63, %v5023_v63  ;;  %v1619_v13 = vld [vmem:[#allocation2 + $0x120] sm:$0xff] }
 0x1a6   : > { %v3190_v15 = vld [vmem:[#allocation2 + $0xd8] sm:$0xff]  ;;  %5666 = vst.msk [vmem:[%s7996_s4 + $0x4c] sm:$0xf] %vm5646_vm4, %v6460_v5  ;;  %v4763_v19 = vld [vmem:[#allocation2 + $0xa0] sm:$0xff]  ;;  %v5028_v26 = vmax.f32 %v4900_v18, 0.0 }
 0x1a7   : > { %v4514_v20 = vadd.f32 %v7053_v40, %v3190_v15  ;;  %5664 = vst.msk [vmem:[%s7996_s4 + $0x44] sm:$0xf] %vm5646_vm4, %v6458_v12  ;;  %v4898_v23 = vadd.f32 %v7967_v41, %v4763_v19  ;;  %v6930_v32 = vpop.f32.mrb[96].mxu1  ;;  %v1622_v19 = vld [vmem:[#allocation2 + $0x138] sm:$0xff] }
 0x1a8   : > { %v3188_v21 = vld [vmem:[#allocation2 + $0xc8] sm:$0xff]  ;;  %v4766_v24 = vld [vmem:[#allocation2 + $0xb8] sm:$0xff]  ;;  %4639 = vst.msk [vmem:[#allocation2 + $0xc0] sm:$0xff] %vm1454_vm3, %v4511_v14  ;;  %3064 = vst.msk [vmem:[#allocation2 + $0xe8] sm:$0xff] %vm1454_vm3, %v2936_v16  ;;  %v6463_v33 = vpack.c.bf16 %v5028_v26, %v5028_v26  ;;  %v2941_v35 = vadd.f32 %v6930_v32, %v1617_v31  ;;  %v2524_v37 = vpop.f32.mrb[97].mxu1  ;;  %v7060_v45 = vpop.f32.mrb[96].mxu0 }
 0x1a9   : > { %v4512_v25 = vadd.f32 %v4075_v46, %v3188_v21  ;;  %v4901_v27 = vadd.f32 %v7967_v41, %v4766_v24  ;;  %v4764_v28 = vld [vmem:[#allocation2 + $0xa8] sm:$0xff]  ;;  %4642 = vst.msk [vmem:[#allocation2 + $0xd8] sm:$0xff] %vm1454_vm3, %v4514_v20  ;;  %v5026_v29 = vmax.f32 %v4898_v23, 0.0  ;;  %v3193_v40 = vld [vmem:[#allocation2 + $0xf0] sm:$0xff]  ;;  %v2939_v42 = vadd.f32 %v2524_v37, %v1615_v36  ;;  %v6931_v44 = vpop.f32.mrb[98].mxu1  ;;  %v4104_v52 = vpop.f32.mrb[97].mxu0 }
 0x1aa   : > { %v4899_v30 = vadd.f32 %v7967_v41, %v4764_v28  ;;  %5669 = vst.msk [vmem:[%s7996_s4 + $0x58] sm:$0xf] %vm5646_vm4, %v6463_v33  ;;  %v4517_v47 = vadd.f32 %v7056_v4, %v3193_v40  ;;  %v3191_v48 = vld [vmem:[#allocation2 + $0xe0] sm:$0xff]  ;;  %v2942_v49 = vadd.f32 %v6931_v44, %v1618_v43  ;;  %v2527_v51 = vpop.f32.mrb[99].mxu1  ;;  %v7061_v58 = vpop.f32.mrb[98].mxu0  ;;  %v1620_v26 = vld [vmem:[#allocation2 + $0x128] sm:$0xff] }
 0x1ab   : > { %4640 = vst.msk [vmem:[#allocation2 + $0xc8] sm:$0xff] %vm1454_vm3, %v4512_v25  ;;  %v5029_v34 = vmax.f32 %v4901_v27, 0.0  ;;  %v6461_v38 = vpack.c.bf16 %v5026_v29, %v5026_v29  ;;  %3069 = vst.msk [vmem:[#allocation2 + $0x110] sm:$0xff] %vm1454_vm3, %v2941_v35  ;;  %v4769_v54 = vld [vmem:[#allocation2 + $0xd0] sm:$0xff]  ;;  %v4515_v55 = vadd.f32 %v4088_v11, %v3191_v48  ;;  %v3194_v56 = vld [vmem:[#allocation2 + $0xf8] sm:$0xff]  ;;  %v2940_v57 = vadd.f32 %v2527_v51, %v1616_v50  ;;  %v4107_v63 = vpop.f32.mrb[99].mxu0 }
 0x1ac   : > { %v5027_v39 = vmax.f32 %v4899_v30, 0.0  ;;  %3067 = vst.msk [vmem:[#allocation2 + $0x100] sm:$0xff] %vm1454_vm3, %v2939_v42  ;;  %v4904_v59 = vadd.f32 %v7967_v41, %v4769_v54  ;;  %4645 = vst.msk [vmem:[#allocation2 + $0xf0] sm:$0xff] %vm1454_vm3, %v4517_v47  ;;  %v4518_v61 = vadd.f32 %v7057_v17, %v3194_v56  ;;  %v1623_v54 = vld [vmem:[#allocation2 + $0x140] sm:$0xff] }
 0x1ad   : > { %v6464_v46 = vpack.c.bf16 %v5029_v34, %v5029_v34  ;;  %5667 = vst.msk [vmem:[%s7996_s4 + $0x50] sm:$0xf] %vm5646_vm4, %v6461_v38 }
 0x1ae   : > { %v6462_v53 = vpack.c.bf16 %v5027_v39, %v5027_v39  ;;  %3070 = vst.msk [vmem:[#allocation2 + $0x118] sm:$0xff] %vm1454_vm3, %v2942_v49  ;;  %4643 = vst.msk [vmem:[#allocation2 + $0xe0] sm:$0xff] %vm1454_vm3, %v4515_v55  ;;  %v5032_v3 = vmax.f32 %v4904_v59, 0.0  ;;  %v1625_v49 = vld [vmem:[#allocation2 + $0x150] sm:$0xff] }
 0x1af   : > { %5670 = vst.msk [vmem:[%s7996_s4 + $0x5c] sm:$0xf] %vm5646_vm4, %v6464_v46  ;;  %v4767_v60 = vld [vmem:[#allocation2 + $0xc0] sm:$0xff]  ;;  %v3192_v62 = vld [vmem:[#allocation2 + $0xe8] sm:$0xff]  ;;  %v6934_v9 = vpop.f32.mrb[100].mxu1 }
 0x1b0   : > { %5668 = vst.msk [vmem:[%s7996_s4 + $0x54] sm:$0xf] %vm5646_vm4, %v6462_v53  ;;  %v4902_v0 = vadd.f32 %v7967_v41, %v4767_v60  ;;  %v4770_v1 = vld [vmem:[#allocation2 + $0xd8] sm:$0xff]  ;;  %v4516_v2 = vadd.f32 %v4091_v22, %v3192_v62  ;;  %v6467_v10 = vpack.c.bf16 %v5032_v3, %v5032_v3  ;;  %v2945_v12 = vadd.f32 %v6934_v9, %v1621_v8  ;;  %v2540_v14 = vpop.f32.mrb[101].mxu1  ;;  %v7064_v21 = vpop.f32.mrb[100].mxu0  ;;  %v1624_v3 = vld [vmem:[#allocation2 + $0x148] sm:$0xff] }
 0x1b1   : > { %3068 = vst.msk [vmem:[#allocation2 + $0x108] sm:$0xff] %vm1454_vm3, %v2940_v57  ;;  %v4905_v4 = vadd.f32 %v7967_v41, %v4770_v1  ;;  %4646 = vst.msk [vmem:[#allocation2 + $0xf8] sm:$0xff] %vm1454_vm3, %v4518_v61  ;;  %v2943_v18 = vadd.f32 %v2540_v14, %v1619_v13  ;;  %v6935_v20 = vpop.f32.mrb[102].mxu1  ;;  %v4120_v28 = vpop.f32.mrb[101].mxu0  ;;  %v1626_v60 = vld [vmem:[#allocation2 + $0x158] sm:$0xff] }
 0x1b2   : > { %v4768_v5 = vld [vmem:[#allocation2 + $0xc8] sm:$0xff]  ;;  %v5030_v6 = vmax.f32 %v4902_v0, 0.0  ;;  %4644 = vst.msk [vmem:[#allocation2 + $0xe8] sm:$0xff] %vm1454_vm3, %v4516_v2  ;;  %v3197_v17 = vld [vmem:[#allocation2 + $0x110] sm:$0xff]  ;;  %3073 = vst.msk [vmem:[#allocation2 + $0x130] sm:$0xff] %vm1454_vm3, %v2945_v12  ;;  %v2946_v25 = vadd.f32 %v6935_v20, %v1622_v19  ;;  %v2543_v27 = vpop.f32.mrb[103].mxu1 }
 0x1b3   : > { %v4903_v7 = vadd.f32 %v7967_v41, %v4768_v5  ;;  %v5033_v11 = vmax.f32 %v4905_v4, 0.0  ;;  %5673 = vst.msk [vmem:[%s7996_s4 + $0x68] sm:$0xf] %vm5646_vm4, %v6467_v10  ;;  %v4521_v23 = vadd.f32 %v7060_v45, %v3197_v17  ;;  %v3195_v24 = vld [vmem:[#allocation2 + $0x100] sm:$0xff]  ;;  %v4773_v30 = vld [vmem:[#allocation2 + $0xf0] sm:$0xff]  ;;  %v2944_v33 = vadd.f32 %v2543_v27, %v1620_v26  ;;  %v7065_v34 = vpop.f32.mrb[102].mxu0 }
 0x1b4   : > { %v6465_v15 = vpack.c.bf16 %v5030_v6, %v5030_v6  ;;  %v4519_v31 = vadd.f32 %v4104_v52, %v3195_v24  ;;  %3071 = vst.msk [vmem:[#allocation2 + $0x120] sm:$0xff] %vm1454_vm3, %v2943_v18  ;;  %v4908_v35 = vadd.f32 %v7967_v41, %v4773_v30  ;;  %3074 = vst.msk [vmem:[#allocation2 + $0x138] sm:$0xff] %vm1454_vm3, %v2946_v25  ;;  %v4123_v39 = vpop.f32.mrb[103].mxu0  ;;  %v1629_v25 = vld [vmem:[#allocation2 + $0x170] sm:$0xff]  ;;  %v1627_v30 = vld [vmem:[#allocation2 + $0x160] sm:$0xff] }
 0x1b5   : > { %v5031_v16 = vmax.f32 %v4903_v7, 0.0  ;;  %v6468_v22 = vpack.c.bf16 %v5033_v11, %v5033_v11  ;;  %v3198_v32 = vld [vmem:[#allocation2 + $0x118] sm:$0xff]  ;;  %v4771_v36 = vld [vmem:[#allocation2 + $0xe0] sm:$0xff]  ;;  %4649 = vst.msk [vmem:[#allocation2 + $0x110] sm:$0xff] %vm1454_vm3, %v4521_v23  ;;  %3072 = vst.msk [vmem:[#allocation2 + $0x128] sm:$0xff] %vm1454_vm3, %v2944_v33 }
 0x1b6   : > { %5671 = vst.msk [vmem:[%s7996_s4 + $0x60] sm:$0xf] %vm5646_vm4, %v6465_v15  ;;  %v4522_v37 = vadd.f32 %v7061_v58, %v3198_v32  ;;  %v4906_v40 = vadd.f32 %v7967_v41, %v4771_v36  ;;  %v5036_v44 = vmax.f32 %v4908_v35, 0.0  ;;  %v1630_v36 = vld [vmem:[#allocation2 + $0x178] sm:$0xff] }
 0x1b7   : > { %v6466_v29 = vpack.c.bf16 %v5031_v16, %v5031_v16  ;;  %5674 = vst.msk [vmem:[%s7996_s4 + $0x6c] sm:$0xf] %vm5646_vm4, %v6468_v22  ;;  %v6938_v50 = vpop.f32.mrb[104].mxu1 }
 0x1b8   : > { %v3196_v38 = vld [vmem:[#allocation2 + $0x108] sm:$0xff]  ;;  %v4774_v42 = vld [vmem:[#allocation2 + $0xf8] sm:$0xff]  ;;  %4647 = vst.msk [vmem:[#allocation2 + $0x100] sm:$0xff] %vm1454_vm3, %v4519_v31  ;;  %4650 = vst.msk [vmem:[#allocation2 + $0x118] sm:$0xff] %vm1454_vm3, %v4522_v37  ;;  %v5034_v47 = vmax.f32 %v4906_v40, 0.0  ;;  %v6471_v51 = vpack.c.bf16 %v5036_v44, %v5036_v44  ;;  %v2949_v53 = vadd.f32 %v6938_v50, %v1625_v49  ;;  %v2556_v55 = vpop.f32.mrb[105].mxu1 }
 0x1b9   : > { %5672 = vst.msk [vmem:[%s7996_s4 + $0x64] sm:$0xf] %vm5646_vm4, %v6466_v29  ;;  %v4520_v43 = vadd.f32 %v4107_v63, %v3196_v38  ;;  %v4909_v45 = vadd.f32 %v7967_v41, %v4774_v42  ;;  %v4772_v46 = vld [vmem:[#allocation2 + $0xe8] sm:$0xff]  ;;  %v3201_v58 = vld [vmem:[#allocation2 + $0x130] sm:$0xff]  ;;  %v2947_v59 = vadd.f32 %v2556_v55, %v1623_v54  ;;  %v6939_v61 = vpop.f32.mrb[106].mxu1  ;;  %v7068_v62 = vpop.f32.mrb[104].mxu0 }
 0x1ba   : > { %v4907_v48 = vadd.f32 %v7967_v41, %v4772_v46  ;;  %v6469_v56 = vpack.c.bf16 %v5034_v47, %v5034_v47  ;;  %5677 = vst.msk [vmem:[%s7996_s4 + $0x78] sm:$0xf] %vm5646_vm4, %v6471_v51  ;;  %v4525_v0 = vadd.f32 %v7064_v21, %v3201_v58  ;;  %v2950_v2 = vadd.f32 %v6939_v61, %v1626_v60  ;;  %v2559_v4 = vpop.f32.mrb[107].mxu1  ;;  %v4136_v5 = vpop.f32.mrb[105].mxu0 }
 0x1bb   : > { %4648 = vst.msk [vmem:[#allocation2 + $0x108] sm:$0xff] %vm1454_vm3, %v4520_v43  ;;  %v5037_v52 = vmax.f32 %v4909_v45, 0.0  ;;  %3077 = vst.msk [vmem:[#allocation2 + $0x150] sm:$0xff] %vm1454_vm3, %v2949_v53  ;;  %v3199_v1 = vld [vmem:[#allocation2 + $0x120] sm:$0xff]  ;;  %v3202_v9 = vld [vmem:[#allocation2 + $0x138] sm:$0xff]  ;;  %v2948_v10 = vadd.f32 %v2559_v4, %v1624_v3  ;;  %v7069_v11 = vpop.f32.mrb[106].mxu0 }
 0x1bc   : > { %v5035_v57 = vmax.f32 %v4907_v48, 0.0  ;;  %5675 = vst.msk [vmem:[%s7996_s4 + $0x70] sm:$0xf] %vm5646_vm4, %v6469_v56  ;;  %v4777_v7 = vld [vmem:[#allocation2 + $0x110] sm:$0xff]  ;;  %v4523_v8 = vadd.f32 %v4120_v28, %v3199_v1  ;;  %v4526_v14 = vadd.f32 %v7065_v34, %v3202_v9  ;;  %v3200_v15 = vld [vmem:[#allocation2 + $0x128] sm:$0xff]  ;;  %v4139_v16 = vpop.f32.mrb[107].mxu0 }
 0x1bd   : > { %v6472_v63 = vpack.c.bf16 %v5037_v52, %v5037_v52  ;;  %3075 = vst.msk [vmem:[#allocation2 + $0x140] sm:$0xff] %vm1454_vm3, %v2947_v59  ;;  %v4912_v12 = vadd.f32 %v7967_v41, %v4777_v7  ;;  %4653 = vst.msk [vmem:[#allocation2 + $0x130] sm:$0xff] %vm1454_vm3, %v4525_v0  ;;  %v4524_v19 = vadd.f32 %v4123_v39, %v3200_v15  ;;  %v1628_v43 = vld [vmem:[#allocation2 + $0x168] sm:$0xff]  ;;  %v8199_v52 = vld [vmem:[%s8670_s2] ss:$0 sm:$0xff] }
 0x1be   : > { %v6470_v6 = vpack.c.bf16 %v5035_v57, %v5035_v57  ;;  %3078 = vst.msk [vmem:[#allocation2 + $0x158] sm:$0xff] %vm1454_vm3, %v2950_v2  ;;  %4651 = vst.msk [vmem:[#allocation2 + $0x120] sm:$0xff] %vm1454_vm3, %v4523_v8  ;;  %v1633_v2 = vld [vmem:[#allocation2 + $0x190] sm:$0xff]  ;;  %v1631_v7 = vld [vmem:[#allocation2 + $0x180] sm:$0xff] }
 0x1bf   : > { %5678 = vst.msk [vmem:[%s7996_s4 + $0x7c] sm:$0xf] %vm5646_vm4, %v6472_v63  ;;  %v4775_v13 = vld [vmem:[#allocation2 + $0x100] sm:$0xff]  ;;  %v4778_v18 = vld [vmem:[#allocation2 + $0x118] sm:$0xff]  ;;  %v5040_v20 = vmax.f32 %v4912_v12, 0.0  ;;  %v6942_v26 = vpop.f32.mrb[108].mxu1 }
 0x1c0   : > { %5676 = vst.msk [vmem:[%s7996_s4 + $0x74] sm:$0xf] %vm5646_vm4, %v6470_v6  ;;  %v4910_v17 = vadd.f32 %v7967_v41, %v4775_v13  ;;  %v4913_v21 = vadd.f32 %v7967_v41, %v4778_v18  ;;  %v2953_v29 = vadd.f32 %v6942_v26, %v1629_v25  ;;  %v2572_v31 = vpop.f32.mrb[109].mxu1  ;;  %v7072_v38 = vpop.f32.mrb[108].mxu0  ;;  %v1634_v13 = vld [vmem:[#allocation2 + $0x198] sm:$0xff] }
 0x1c1   : > { %3076 = vst.msk [vmem:[#allocation2 + $0x148] sm:$0xff] %vm1454_vm3, %v2948_v10  ;;  %4654 = vst.msk [vmem:[#allocation2 + $0x138] sm:$0xff] %vm1454_vm3, %v4526_v14  ;;  %v6475_v27 = vpack.c.bf16 %v5040_v20, %v5040_v20  ;;  %v2951_v35 = vadd.f32 %v2572_v31, %v1627_v30  ;;  %v6943_v37 = vpop.f32.mrb[110].mxu1  ;;  %v4152_v45 = vpop.f32.mrb[109].mxu0  ;;  %v1632_v20 = vld [vmem:[#allocation2 + $0x188] sm:$0xff] }
 0x1c2   : > { %v4776_v22 = vld [vmem:[#allocation2 + $0x108] sm:$0xff]  ;;  %v5038_v23 = vmax.f32 %v4910_v17, 0.0  ;;  %4652 = vst.msk [vmem:[#allocation2 + $0x128] sm:$0xff] %vm1454_vm3, %v4524_v19  ;;  %v5041_v28 = vmax.f32 %v4913_v21, 0.0  ;;  %v3205_v34 = vld [vmem:[#allocation2 + $0x150] sm:$0xff]  ;;  %3081 = vst.msk [vmem:[#allocation2 + $0x170] sm:$0xff] %vm1454_vm3, %v2953_v29  ;;  %v2954_v42 = vadd.f32 %v6943_v37, %v1630_v36 }
 0x1c3   : > { %v4911_v24 = vadd.f32 %v7967_v41, %v4776_v22  ;;  %5681 = vst.msk [vmem:[%s7996_s4 + $0x88] sm:$0xf] %vm5646_vm4, %v6475_v27  ;;  %v4529_v39 = vadd.f32 %v7068_v62, %v3205_v34  ;;  %v2575_v44 = vpop.f32.mrb[111].mxu1  ;;  %v7073_v51 = vpop.f32.mrb[110].mxu0 }
 0x1c4   : > { %v6473_v32 = vpack.c.bf16 %v5038_v23, %v5038_v23  ;;  %v6476_v41 = vpack.c.bf16 %v5041_v28, %v5041_v28  ;;  %v3203_v40 = vld [vmem:[#allocation2 + $0x140] sm:$0xff]  ;;  %v4781_v47 = vld [vmem:[#allocation2 + $0x130] sm:$0xff]  ;;  %3079 = vst.msk [vmem:[#allocation2 + $0x160] sm:$0xff] %vm1454_vm3, %v2951_v35  ;;  %v2952_v50 = vadd.f32 %v2575_v44, %v1628_v43  ;;  %3082 = vst.msk [vmem:[#allocation2 + $0x178] sm:$0xff] %vm1454_vm3, %v2954_v42  ;;  %v4155_v57 = vpop.f32.mrb[111].mxu0 }
 0x1c5   : > { %v5039_v33 = vmax.f32 %v4911_v24, 0.0  ;;  %v4527_v48 = vadd.f32 %v4136_v5, %v3203_v40  ;;  %v3206_v49 = vld [vmem:[#allocation2 + $0x158] sm:$0xff]  ;;  %v4916_v53 = vadd.f32 %v8199_v52, %v4781_v47  ;;  %v4779_v54 = vld [vmem:[#allocation2 + $0x120] sm:$0xff]  ;;  %4657 = vst.msk [vmem:[#allocation2 + $0x150] sm:$0xff] %vm1454_vm3, %v4529_v39  ;;  %v1637_v42 = vld [vmem:[#allocation2 + $0x1b0] sm:$0xff] }
 0x1c6   : > { %5679 = vst.msk [vmem:[%s7996_s4 + $0x80] sm:$0xf] %vm5646_vm4, %v6473_v32  ;;  %5682 = vst.msk [vmem:[%s7996_s4 + $0x8c] sm:$0xf] %vm5646_vm4, %v6476_v41  ;;  %v4530_v55 = vadd.f32 %v7069_v11, %v3206_v49  ;;  %v4914_v58 = vadd.f32 %v8199_v52, %v4779_v54  ;;  %v1635_v47 = vld [vmem:[#allocation2 + $0x1a0] sm:$0xff]  ;;  %v1638_v54 = vld [vmem:[#allocation2 + $0x1b8] sm:$0xff] }
 0x1c7   : > { %v6474_v46 = vpack.c.bf16 %v5039_v33, %v5039_v33  ;;  %4655 = vst.msk [vmem:[#allocation2 + $0x140] sm:$0xff] %vm1454_vm3, %v4527_v48  ;;  %3080 = vst.msk [vmem:[#allocation2 + $0x168] sm:$0xff] %vm1454_vm3, %v2952_v50  ;;  %v5044_v61 = vmax.f32 %v4916_v53, 0.0  ;;  %v6946_v3 = vpop.f32.mrb[112].mxu1 }
 0x1c8   : > { %v3204_v56 = vld [vmem:[#allocation2 + $0x148] sm:$0xff]  ;;  %v4782_v59 = vld [vmem:[#allocation2 + $0x138] sm:$0xff]  ;;  %4658 = vst.msk [vmem:[#allocation2 + $0x158] sm:$0xff] %vm1454_vm3, %v4530_v55  ;;  %v5042_v0 = vmax.f32 %v4914_v58, 0.0  ;;  %v2957_v6 = vadd.f32 %v6946_v3, %v1633_v2  ;;  %v2588_v8 = vpop.f32.mrb[113].mxu1  ;;  %v7076_v15 = vpop.f32.mrb[112].mxu0 }
 0x1c9   : > { %5680 = vst.msk [vmem:[%s7996_s4 + $0x84] sm:$0xf] %vm5646_vm4, %v6474_v46  ;;  %v4528_v60 = vadd.f32 %v4139_v16, %v3204_v56  ;;  %v4917_v62 = vadd.f32 %v8199_v52, %v4782_v59  ;;  %v4780_v63 = vld [vmem:[#allocation2 + $0x128] sm:$0xff]  ;;  %v6479_v4 = vpack.c.bf16 %v5044_v61, %v5044_v61  ;;  %v3209_v11 = vld [vmem:[#allocation2 + $0x170] sm:$0xff]  ;;  %v2955_v12 = vadd.f32 %v2588_v8, %v1631_v7  ;;  %v6947_v14 = vpop.f32.mrb[114].mxu1  ;;  %v4168_v22 = vpop.f32.mrb[113].mxu0 }
 0x1ca   : > { %v4915_v1 = vadd.f32 %v8199_v52, %v4780_v63  ;;  %v6477_v9 = vpack.c.bf16 %v5042_v0, %v5042_v0  ;;  %v4533_v17 = vadd.f32 %v7072_v38, %v3209_v11  ;;  %3085 = vst.msk [vmem:[#allocation2 + $0x190] sm:$0xff] %vm1454_vm3, %v2957_v6  ;;  %v2958_v19 = vadd.f32 %v6947_v14, %v1634_v13  ;;  %v2591_v21 = vpop.f32.mrb[115].mxu1  ;;  %v7077_v28 = vpop.f32.mrb[114].mxu0  ;;  %v1636_v61 = vld [vmem:[#allocation2 + $0x1a8] sm:$0xff] }
 0x1cb   : > { %4656 = vst.msk [vmem:[#allocation2 + $0x148] sm:$0xff] %vm1454_vm3, %v4528_v60  ;;  %v5045_v5 = vmax.f32 %v4917_v62, 0.0  ;;  %v3207_v18 = vld [vmem:[#allocation2 + $0x160] sm:$0xff]  ;;  %3083 = vst.msk [vmem:[#allocation2 + $0x180] sm:$0xff] %vm1454_vm3, %v2955_v12  ;;  %v3210_v26 = vld [vmem:[#allocation2 + $0x178] sm:$0xff]  ;;  %v2956_v27 = vadd.f32 %v2591_v21, %v1632_v20  ;;  %v4171_v33 = vpop.f32.mrb[115].mxu0 }
 0x1cc   : > { %v5043_v10 = vmax.f32 %v4915_v1, 0.0  ;;  %5685 = vst.msk [vmem:[%s7996_s4 + $0x98] sm:$0xf] %vm5646_vm4, %v6479_v4  ;;  %5683 = vst.msk [vmem:[%s7996_s4 + $0x90] sm:$0xf] %vm5646_vm4, %v6477_v9  ;;  %v4785_v24 = vld [vmem:[#allocation2 + $0x150] sm:$0xff]  ;;  %v4531_v25 = vadd.f32 %v4152_v45, %v3207_v18  ;;  %v4534_v31 = vadd.f32 %v7073_v51, %v3210_v26 }
 0x1cd   : > { %v6480_v16 = vpack.c.bf16 %v5045_v5, %v5045_v5  ;;  %v4920_v29 = vadd.f32 %v8199_v52, %v4785_v24  ;;  %4661 = vst.msk [vmem:[#allocation2 + $0x170] sm:$0xff] %vm1454_vm3, %v4533_v17  ;;  %3086 = vst.msk [vmem:[#allocation2 + $0x198] sm:$0xff] %vm1454_vm3, %v2958_v19  ;;  %v1641_v19 = vld [vmem:[#allocation2 + $0x1d0] sm:$0xff]  ;;  %v1639_v24 = vld [vmem:[#allocation2 + $0x1c0] sm:$0xff] }
 0x1ce   : > { %v6478_v23 = vpack.c.bf16 %v5043_v10, %v5043_v10  ;;  %v4783_v30 = vld [vmem:[#allocation2 + $0x140] sm:$0xff]  ;;  %v3208_v32 = vld [vmem:[#allocation2 + $0x168] sm:$0xff]  ;;  %4659 = vst.msk [vmem:[#allocation2 + $0x160] sm:$0xff] %vm1454_vm3, %v4531_v25  ;;  %3084 = vst.msk [vmem:[#allocation2 + $0x188] sm:$0xff] %vm1454_vm3, %v2956_v27 }
 0x1cf   : > { %5686 = vst.msk [vmem:[%s7996_s4 + $0x9c] sm:$0xf] %vm5646_vm4, %v6480_v16  ;;  %v4918_v34 = vadd.f32 %v8199_v52, %v4783_v30  ;;  %v4786_v35 = vld [vmem:[#allocation2 + $0x158] sm:$0xff]  ;;  %v4532_v36 = vadd.f32 %v4155_v57, %v3208_v32  ;;  %v5048_v37 = vmax.f32 %v4920_v29, 0.0  ;;  %v6950_v43 = vpop.f32.mrb[116].mxu1 }
 0x1d0   : > { %5684 = vst.msk [vmem:[%s7996_s4 + $0x94] sm:$0xf] %vm5646_vm4, %v6478_v23  ;;  %v4921_v38 = vadd.f32 %v8199_v52, %v4786_v35  ;;  %v2961_v46 = vadd.f32 %v6950_v43, %v1637_v42  ;;  %v2604_v48 = vpop.f32.mrb[117].mxu1  ;;  %v7080_v56 = vpop.f32.mrb[116].mxu0  ;;  %v1642_v30 = vld [vmem:[#allocation2 + $0x1d8] sm:$0xff] }
 0x1d1   : > { %4662 = vst.msk [vmem:[#allocation2 + $0x178] sm:$0xff] %vm1454_vm3, %v4534_v31  ;;  %v5046_v39 = vmax.f32 %v4918_v34, 0.0  ;;  %4660 = vst.msk [vmem:[#allocation2 + $0x168] sm:$0xff] %vm1454_vm3, %v4532_v36  ;;  %v6483_v44 = vpack.c.bf16 %v5048_v37, %v5048_v37  ;;  %v3213_v51 = vld [vmem:[#allocation2 + $0x190] sm:$0xff]  ;;  %v2959_v53 = vadd.f32 %v2604_v48, %v1635_v47  ;;  %v6951_v55 = vpop.f32.mrb[118].mxu1  ;;  %v4184_v63 = vpop.f32.mrb[117].mxu0 }
 0x1d2   : > { %v4784_v41 = vld [vmem:[#allocation2 + $0x148] sm:$0xff]  ;;  %v5049_v45 = vmax.f32 %v4921_v38, 0.0  ;;  %v4537_v58 = vadd.f32 %v7076_v15, %v3213_v51  ;;  %3089 = vst.msk [vmem:[#allocation2 + $0x1b0] sm:$0xff] %vm1454_vm3, %v2961_v46  ;;  %v3211_v59 = vld [vmem:[#allocation2 + $0x180] sm:$0xff]  ;;  %v2962_v60 = vadd.f32 %v6951_v55, %v1638_v54  ;;  %v2607_v62 = vpop.f32.mrb[119].mxu1  ;;  %v7081_v5 = vpop.f32.mrb[118].mxu0 }
 0x1d3   : > { %v4919_v40 = vadd.f32 %v8199_v52, %v4784_v41  ;;  %v6481_v49 = vpack.c.bf16 %v5046_v39, %v5046_v39  ;;  %5689 = vst.msk [vmem:[%s7996_s4 + $0xa8] sm:$0xf] %vm5646_vm4, %v6483_v44  ;;  %v4535_v2 = vadd.f32 %v4168_v22, %v3211_v59  ;;  %v2960_v4 = vadd.f32 %v2607_v62, %v1636_v61  ;;  %v4187_v10 = vpop.f32.mrb[119].mxu0  ;;  %v1640_v37 = vld [vmem:[#allocation2 + $0x1c8] sm:$0xff] }
 0x1d4   : > { %v6484_v57 = vpack.c.bf16 %v5049_v45, %v5049_v45  ;;  %v4789_v1 = vld [vmem:[#allocation2 + $0x170] sm:$0xff]  ;;  %3087 = vst.msk [vmem:[#allocation2 + $0x1a0] sm:$0xff] %vm1454_vm3, %v2959_v53  ;;  %v3214_v3 = vld [vmem:[#allocation2 + $0x198] sm:$0xff]  ;;  %4665 = vst.msk [vmem:[#allocation2 + $0x190] sm:$0xff] %vm1454_vm3, %v4537_v58 }
 0x1d5   : > { %v5047_v50 = vmax.f32 %v4919_v40, 0.0  ;;  %5687 = vst.msk [vmem:[%s7996_s4 + $0xa0] sm:$0xf] %vm5646_vm4, %v6481_v49  ;;  %v4924_v6 = vadd.f32 %v8199_v52, %v4789_v1  ;;  %v4787_v7 = vld [vmem:[#allocation2 + $0x160] sm:$0xff]  ;;  %v4538_v8 = vadd.f32 %v7077_v28, %v3214_v3  ;;  %v3212_v9 = vld [vmem:[#allocation2 + $0x188] sm:$0xff] }
 0x1d6   : > { %5690 = vst.msk [vmem:[%s7996_s4 + $0xac] sm:$0xf] %vm5646_vm4, %v6484_v57  ;;  %v4922_v11 = vadd.f32 %v8199_v52, %v4787_v7  ;;  %v4536_v13 = vadd.f32 %v4171_v33, %v3212_v9  ;;  %v1643_v1 = vld [vmem:[#allocation2 + $0x1e0] sm:$0xff]  ;;  %v1646_v7 = vld [vmem:[#allocation2 + $0x1f8] sm:$0xff] }
 0x1d7   : > { %v6482_v0 = vpack.c.bf16 %v5047_v50, %v5047_v50  ;;  %3090 = vst.msk [vmem:[#allocation2 + $0x1b8] sm:$0xff] %vm1454_vm3, %v2962_v60  ;;  %4663 = vst.msk [vmem:[#allocation2 + $0x180] sm:$0xff] %vm1454_vm3, %v4535_v2  ;;  %v5052_v14 = vmax.f32 %v4924_v6, 0.0  ;;  %v6954_v20 = vpop.f32.mrb[120].mxu1  ;;  %v1645_v60 = vld [vmem:[#allocation2 + $0x1f0] sm:$0xff] }
 0x1d8   : > { %v4790_v12 = vld [vmem:[#allocation2 + $0x178] sm:$0xff]  ;;  %3088 = vst.msk [vmem:[#allocation2 + $0x1a8] sm:$0xff] %vm1454_vm3, %v2960_v4  ;;  %v4788_v16 = vld [vmem:[#allocation2 + $0x168] sm:$0xff]  ;;  %4666 = vst.msk [vmem:[#allocation2 + $0x198] sm:$0xff] %vm1454_vm3, %v4538_v8  ;;  %v5050_v17 = vmax.f32 %v4922_v11, 0.0  ;;  %v2965_v23 = vadd.f32 %v6954_v20, %v1641_v19  ;;  %v2620_v25 = vpop.f32.mrb[121].mxu1 }
 0x1d9   : > { %5688 = vst.msk [vmem:[%s7996_s4 + $0xa4] sm:$0xf] %vm5646_vm4, %v6482_v0  ;;  %v4925_v15 = vadd.f32 %v8199_v52, %v4790_v12  ;;  %v4923_v18 = vadd.f32 %v8199_v52, %v4788_v16  ;;  %v6487_v21 = vpack.c.bf16 %v5052_v14, %v5052_v14  ;;  %v3217_v28 = vld [vmem:[#allocation2 + $0x1b0] sm:$0xff]  ;;  %v2963_v29 = vadd.f32 %v2620_v25, %v1639_v24  ;;  %v6955_v31 = vpop.f32.mrb[122].mxu1  ;;  %v7084_v32 = vpop.f32.mrb[120].mxu0  ;;  %v1644_v14 = vld [vmem:[#allocation2 + $0x1e8] sm:$0xff] }
 0x1da   : > { %4664 = vst.msk [vmem:[#allocation2 + $0x188] sm:$0xff] %vm1454_vm3, %v4536_v13  ;;  %v6485_v26 = vpack.c.bf16 %v5050_v17, %v5050_v17  ;;  %v4541_v34 = vadd.f32 %v7080_v56, %v3217_v28  ;;  %3093 = vst.msk [vmem:[#allocation2 + $0x1d0] sm:$0xff] %vm1454_vm3, %v2965_v23  ;;  %v2966_v36 = vadd.f32 %v6955_v31, %v1642_v30  ;;  %v2623_v38 = vpop.f32.mrb[123].mxu1  ;;  %v4200_v41 = vpop.f32.mrb[121].mxu0 }
 0x1db   : > { %v5053_v22 = vmax.f32 %v4925_v15, 0.0  ;;  %v5051_v27 = vmax.f32 %v4923_v18, 0.0  ;;  %5693 = vst.msk [vmem:[%s7996_s4 + $0xb8] sm:$0xf] %vm5646_vm4, %v6487_v21  ;;  %v3215_v35 = vld [vmem:[#allocation2 + $0x1a0] sm:$0xff]  ;;  %v4793_v40 = vld [vmem:[#allocation2 + $0x190] sm:$0xff]  ;;  %v2964_v44 = vadd.f32 %v2623_v38, %v1640_v37 }
 0x1dc   : > { %5691 = vst.msk [vmem:[%s7996_s4 + $0xb0] sm:$0xf] %vm5646_vm4, %v6485_v26  ;;  %v4539_v42 = vadd.f32 %v4184_v63, %v3215_v35  ;;  %v7085_v45 = vpop.f32.mrb[122].mxu0  ;;  %v4928_v46 = vadd.f32 %v8199_v52, %v4793_v40  ;;  %v1647_v40 = vld [vmem:[#allocation2 + $0x200] sm:$0xff] }
 0x1dd   : > { %v6488_v33 = vpack.c.bf16 %v5053_v22, %v5053_v22  ;;  %v6486_v39 = vpack.c.bf16 %v5051_v27, %v5051_v27  ;;  %3091 = vst.msk [vmem:[#allocation2 + $0x1c0] sm:$0xff] %vm1454_vm3, %v2963_v29  ;;  %4669 = vst.msk [vmem:[#allocation2 + $0x1b0] sm:$0xff] %vm1454_vm3, %v4541_v34  ;;  %v4203_v50 = vpop.f32.mrb[123].mxu0 }
 0x1de   : > { %v3218_v43 = vld [vmem:[#allocation2 + $0x1b8] sm:$0xff]  ;;  %v4791_v47 = vld [vmem:[#allocation2 + $0x180] sm:$0xff]  ;;  %3094 = vst.msk [vmem:[#allocation2 + $0x1d8] sm:$0xff] %vm1454_vm3, %v2966_v36  ;;  %4667 = vst.msk [vmem:[#allocation2 + $0x1a0] sm:$0xff] %vm1454_vm3, %v4539_v42  ;;  %v5056_v55 = vmax.f32 %v4928_v46, 0.0 }
 0x1df   : > { %5694 = vst.msk [vmem:[%s7996_s4 + $0xbc] sm:$0xf] %vm5646_vm4, %v6488_v33  ;;  %v4542_v48 = vadd.f32 %v7081_v5, %v3218_v43  ;;  %v3216_v49 = vld [vmem:[#allocation2 + $0x1a8] sm:$0xff]  ;;  %5692 = vst.msk [vmem:[%s7996_s4 + $0xb4] sm:$0xf] %vm5646_vm4, %v6486_v39  ;;  %v4926_v51 = vadd.f32 %v8199_v52, %v4791_v47  ;;  %v4794_v53 = vld [vmem:[#allocation2 + $0x198] sm:$0xff] }
 0x1e0   : > { %v4540_v54 = vadd.f32 %v4187_v10, %v3216_v49  ;;  %3092 = vst.msk [vmem:[#allocation2 + $0x1c8] sm:$0xff] %vm1454_vm3, %v2964_v44  ;;  %v4929_v56 = vadd.f32 %v8199_v52, %v4794_v53  ;;  %v6958_v61 = vpop.f32.mrb[124].mxu1  ;;  %v6491_v62 = vpack.c.bf16 %v5056_v55, %v5056_v55  ;;  %v7088_v9 = vpop.f32.mrb[124].mxu0  ;;  %v1649_v36 = vld [vmem:[#allocation2 + $0x210] sm:$0xff]  ;;  %v1650_v47 = vld [vmem:[#allocation2 + $0x218] sm:$0xff]  ;;  %v1648_v55 = vld [vmem:[#allocation2 + $0x208] sm:$0xff] }
 0x1e1   : > { %v4792_v57 = vld [vmem:[#allocation2 + $0x188] sm:$0xff]  ;;  %4670 = vst.msk [vmem:[#allocation2 + $0x1b8] sm:$0xff] %vm1454_vm3, %v4542_v48  ;;  %v5054_v58 = vmax.f32 %v4926_v51, 0.0  ;;  %v2969_v0 = vadd.f32 %v6958_v61, %v1645_v60  ;;  %v2636_v2 = vpop.f32.mrb[125].mxu1  ;;  %v3221_v5 = vld [vmem:[#allocation2 + $0x1d0] sm:$0xff]  ;;  %v4216_v16 = vpop.f32.mrb[125].mxu0 }
 0x1e2   : > { %v4927_v59 = vadd.f32 %v8199_v52, %v4792_v57  ;;  %4668 = vst.msk [vmem:[#allocation2 + $0x1a8] sm:$0xff] %vm1454_vm3, %v4540_v54  ;;  %v5057_v63 = vmax.f32 %v4929_v56, 0.0  ;;  %v2967_v6 = vadd.f32 %v2636_v2, %v1643_v1  ;;  %v6959_v8 = vpop.f32.mrb[126].mxu1  ;;  %v4545_v11 = vadd.f32 %v7084_v32, %v3221_v5  ;;  %v7089_v22 = vpop.f32.mrb[126].mxu0 }
 0x1e3   : > { %v6489_v3 = vpack.c.bf16 %v5054_v58, %v5054_v58  ;;  %5697 = vst.msk [vmem:[%s7996_s4 + $0xc8] sm:$0xf] %vm5646_vm4, %v6491_v62  ;;  %v2970_v13 = vadd.f32 %v6959_v8, %v1646_v7  ;;  %v2639_v15 = vpop.f32.mrb[127].mxu1  ;;  %v4219_v27 = vpop.f32.mrb[127].mxu0 }
 0x1e4   : > { %v5055_v4 = vmax.f32 %v4927_v59, 0.0  ;;  %v6492_v10 = vpack.c.bf16 %v5057_v63, %v5057_v63  ;;  %3097 = vst.msk [vmem:[#allocation2 + $0x1f0] sm:$0xff] %vm1454_vm3, %v2969_v0  ;;  %v3219_v12 = vld [vmem:[#allocation2 + $0x1c0] sm:$0xff]  ;;  %v4797_v18 = vld [vmem:[#allocation2 + $0x1b0] sm:$0xff]  ;;  %3095 = vst.msk [vmem:[#allocation2 + $0x1e0] sm:$0xff] %vm1454_vm3, %v2967_v6  ;;  %v2968_v21 = vadd.f32 %v2639_v15, %v1644_v14 }
 0x1e5   : > { %5695 = vst.msk [vmem:[%s7996_s4 + $0xc0] sm:$0xf] %vm5646_vm4, %v6489_v3  ;;  %v4543_v19 = vadd.f32 %v4200_v41, %v3219_v12  ;;  %v3222_v20 = vld [vmem:[#allocation2 + $0x1d8] sm:$0xff]  ;;  %v4932_v23 = vadd.f32 %v8199_v52, %v4797_v18  ;;  %v4795_v24 = vld [vmem:[#allocation2 + $0x1a0] sm:$0xff] }
 0x1e6   : > { %v6490_v17 = vpack.c.bf16 %v5055_v4, %v5055_v4  ;;  %5698 = vst.msk [vmem:[%s7996_s4 + $0xcc] sm:$0xf] %vm5646_vm4, %v6492_v10  ;;  %v4546_v25 = vadd.f32 %v7085_v45, %v3222_v20  ;;  %v4930_v28 = vadd.f32 %v8199_v52, %v4795_v24  ;;  %v1651_v18 = vld [vmem:[#allocation2 + $0x220] sm:$0xff]  ;;  %v1654_v24 = vld [vmem:[#allocation2 + $0x238] sm:$0xff] }
 0x1e7   : > { %4673 = vst.msk [vmem:[#allocation2 + $0x1d0] sm:$0xff] %vm1454_vm3, %v4545_v11  ;;  %3098 = vst.msk [vmem:[#allocation2 + $0x1f8] sm:$0xff] %vm1454_vm3, %v2970_v13  ;;  %v3220_v26 = vld [vmem:[#allocation2 + $0x1c8] sm:$0xff]  ;;  %v5060_v31 = vmax.f32 %v4932_v23, 0.0  ;;  %v6962_v37 = vpop.f32.mrb[128].mxu1  ;;  %v1653_v13 = vld [vmem:[#allocation2 + $0x230] sm:$0xff] }
 0x1e8   : > { %5696 = vst.msk [vmem:[%s7996_s4 + $0xc4] sm:$0xf] %vm5646_vm4, %v6490_v17  ;;  %v4798_v29 = vld [vmem:[#allocation2 + $0x1b8] sm:$0xff]  ;;  %v4544_v30 = vadd.f32 %v4203_v50, %v3220_v26  ;;  %v5058_v34 = vmax.f32 %v4930_v28, 0.0  ;;  %v2973_v39 = vadd.f32 %v6962_v37, %v1649_v36  ;;  %v2652_v42 = vpop.f32.mrb[129].mxu1  ;;  %v7092_v49 = vpop.f32.mrb[128].mxu0 }
 0x1e9   : > { %4671 = vst.msk [vmem:[#allocation2 + $0x1c0] sm:$0xff] %vm1454_vm3, %v4543_v19  ;;  %3096 = vst.msk [vmem:[#allocation2 + $0x1e8] sm:$0xff] %vm1454_vm3, %v2968_v21  ;;  %v4933_v32 = vadd.f32 %v8199_v52, %v4798_v29  ;;  %v4796_v33 = vld [vmem:[#allocation2 + $0x1a8] sm:$0xff]  ;;  %v6495_v38 = vpack.c.bf16 %v5060_v31, %v5060_v31  ;;  %v2971_v46 = vadd.f32 %v2652_v42, %v1647_v40  ;;  %v6963_v48 = vpop.f32.mrb[130].mxu1  ;;  %v4232_v57 = vpop.f32.mrb[129].mxu0 }
 0x1ea   : > { %4674 = vst.msk [vmem:[#allocation2 + $0x1d8] sm:$0xff] %vm1454_vm3, %v4546_v25  ;;  %v4931_v35 = vadd.f32 %v8199_v52, %v4796_v33  ;;  %4672 = vst.msk [vmem:[#allocation2 + $0x1c8] sm:$0xff] %vm1454_vm3, %v4544_v30  ;;  %v6493_v43 = vpack.c.bf16 %v5058_v34, %v5058_v34  ;;  %v2974_v54 = vadd.f32 %v6963_v48, %v1650_v47  ;;  %v2655_v56 = vpop.f32.mrb[131].mxu1  ;;  %v7093_v63 = vpop.f32.mrb[130].mxu0  ;;  %v1652_v31 = vld [vmem:[#allocation2 + $0x228] sm:$0xff] }
 0x1eb   : > { %v5061_v41 = vmax.f32 %v4933_v32, 0.0  ;;  %v3225_v45 = vld [vmem:[#allocation2 + $0x1f0] sm:$0xff]  ;;  %5701 = vst.msk [vmem:[%s7996_s4 + $0xd8] sm:$0xf] %vm5646_vm4, %v6495_v38  ;;  %v3223_v53 = vld [vmem:[#allocation2 + $0x1e0] sm:$0xff]  ;;  %v2972_v62 = vadd.f32 %v2655_v56, %v1648_v55  ;;  %v4235_v4 = vpop.f32.mrb[131].mxu0 }
 0x1ec   : > { %v5059_v44 = vmax.f32 %v4931_v35, 0.0  ;;  %v4549_v51 = vadd.f32 %v7088_v9, %v3225_v45  ;;  %3101 = vst.msk [vmem:[#allocation2 + $0x210] sm:$0xff] %vm1454_vm3, %v2973_v39  ;;  %v4547_v60 = vadd.f32 %v4216_v16, %v3223_v53  ;;  %3099 = vst.msk [vmem:[#allocation2 + $0x200] sm:$0xff] %vm1454_vm3, %v2971_v46 }
 0x1ed   : > { %v6496_v50 = vpack.c.bf16 %v5061_v41, %v5061_v41  ;;  %5699 = vst.msk [vmem:[%s7996_s4 + $0xd0] sm:$0xf] %vm5646_vm4, %v6493_v43 }
 0x1ee   : > { %v6494_v58 = vpack.c.bf16 %v5059_v44, %v5059_v44  ;;  %v4801_v59 = vld [vmem:[#allocation2 + $0x1d0] sm:$0xff]  ;;  %v3226_v61 = vld [vmem:[#allocation2 + $0x1f8] sm:$0xff]  ;;  %4677 = vst.msk [vmem:[#allocation2 + $0x1f0] sm:$0xff] %vm1454_vm3, %v4549_v51  ;;  %3102 = vst.msk [vmem:[#allocation2 + $0x218] sm:$0xff] %vm1454_vm3, %v2974_v54 }
 0x1ef   : > { %5702 = vst.msk [vmem:[%s7996_s4 + $0xdc] sm:$0xf] %vm5646_vm4, %v6496_v50  ;;  %v4936_v0 = vadd.f32 %v8199_v52, %v4801_v59  ;;  %v4550_v2 = vadd.f32 %v7089_v22, %v3226_v61  ;;  %v6966_v14 = vpop.f32.mrb[132].mxu1  ;;  %v1657_v54 = vld [vmem:[#allocation2 + $0x250] sm:$0xff]  ;;  %v1655_v59 = vld [vmem:[#allocation2 + $0x240] sm:$0xff] }
 0x1f0   : > { %v4799_v1 = vld [vmem:[#allocation2 + $0x1c0] sm:$0xff]  ;;  %v3224_v3 = vld [vmem:[#allocation2 + $0x1e8] sm:$0xff]  ;;  %5700 = vst.msk [vmem:[%s7996_s4 + $0xd4] sm:$0xf] %vm5646_vm4, %v6494_v58  ;;  %v2977_v17 = vadd.f32 %v6966_v14, %v1653_v13  ;;  %v2668_v19 = vpop.f32.mrb[133].mxu1  ;;  %v7096_v26 = vpop.f32.mrb[132].mxu0 }
 0x1f1   : > { %v4934_v5 = vadd.f32 %v8199_v52, %v4799_v1  ;;  %v4802_v6 = vld [vmem:[#allocation2 + $0x1d8] sm:$0xff]  ;;  %4675 = vst.msk [vmem:[#allocation2 + $0x1e0] sm:$0xff] %vm1454_vm3, %v4547_v60  ;;  %v4548_v7 = vadd.f32 %v4219_v27, %v3224_v3  ;;  %3100 = vst.msk [vmem:[#allocation2 + $0x208] sm:$0xff] %vm1454_vm3, %v2972_v62  ;;  %v5064_v8 = vmax.f32 %v4936_v0, 0.0  ;;  %v4800_v10 = vld [vmem:[#allocation2 + $0x1c8] sm:$0xff]  ;;  %v2975_v23 = vadd.f32 %v2668_v19, %v1651_v18  ;;  %v6967_v25 = vpop.f32.mrb[134].mxu1 }
 0x1f2   : > { %v4937_v9 = vadd.f32 %v8199_v52, %v4802_v6  ;;  %4678 = vst.msk [vmem:[#allocation2 + $0x1f8] sm:$0xff] %vm1454_vm3, %v4550_v2  ;;  %v4935_v12 = vadd.f32 %v8199_v52, %v4800_v10  ;;  %3105 = vst.msk [vmem:[#allocation2 + $0x230] sm:$0xff] %vm1454_vm3, %v2977_v17  ;;  %v2978_v30 = vadd.f32 %v6967_v25, %v1654_v24  ;;  %v2671_v32 = vpop.f32.mrb[135].mxu1  ;;  %v4248_v33 = vpop.f32.mrb[133].mxu0  ;;  %v1658_v1 = vld [vmem:[#allocation2 + $0x258] sm:$0xff] }
 0x1f3   : > { %v5062_v11 = vmax.f32 %v4934_v5, 0.0  ;;  %4676 = vst.msk [vmem:[#allocation2 + $0x1e8] sm:$0xff] %vm1454_vm3, %v4548_v7  ;;  %v6499_v15 = vpack.c.bf16 %v5064_v8, %v5064_v8  ;;  %v3229_v22 = vld [vmem:[#allocation2 + $0x210] sm:$0xff]  ;;  %v3227_v29 = vld [vmem:[#allocation2 + $0x200] sm:$0xff]  ;;  %3103 = vst.msk [vmem:[#allocation2 + $0x220] sm:$0xff] %vm1454_vm3, %v2975_v23  ;;  %v2976_v38 = vadd.f32 %v2671_v32, %v1652_v31  ;;  %v7097_v41 = vpop.f32.mrb[134].mxu0 }
 0x1f4   : > { %v5065_v16 = vmax.f32 %v4937_v9, 0.0  ;;  %v5063_v21 = vmax.f32 %v4935_v12, 0.0  ;;  %v4553_v28 = vadd.f32 %v7092_v49, %v3229_v22  ;;  %v4551_v36 = vadd.f32 %v4232_v57, %v3227_v29  ;;  %3106 = vst.msk [vmem:[#allocation2 + $0x238] sm:$0xff] %vm1454_vm3, %v2978_v30  ;;  %v4251_v44 = vpop.f32.mrb[135].mxu0  ;;  %v1656_v8 = vld [vmem:[#allocation2 + $0x248] sm:$0xff]  ;;  %v1661_v30 = vld [vmem:[#allocation2 + $0x270] sm:$0xff] }
 0x1f5   : > { %v6497_v20 = vpack.c.bf16 %v5062_v11, %v5062_v11  ;;  %5705 = vst.msk [vmem:[%s7996_s4 + $0xe8] sm:$0xf] %vm5646_vm4, %v6499_v15  ;;  %v4805_v35 = vld [vmem:[#allocation2 + $0x1f0] sm:$0xff]  ;;  %v3230_v37 = vld [vmem:[#allocation2 + $0x218] sm:$0xff] }
 0x1f6   : > { %v6500_v27 = vpack.c.bf16 %v5065_v16, %v5065_v16  ;;  %v6498_v34 = vpack.c.bf16 %v5063_v21, %v5063_v21  ;;  %v4940_v39 = vadd.f32 %v8199_v52, %v4805_v35  ;;  %4681 = vst.msk [vmem:[#allocation2 + $0x210] sm:$0xff] %vm1454_vm3, %v4553_v28  ;;  %v4554_v42 = vadd.f32 %v7093_v63, %v3230_v37  ;;  %v1659_v35 = vld [vmem:[#allocation2 + $0x260] sm:$0xff] }
 0x1f7   : > { %5703 = vst.msk [vmem:[%s7996_s4 + $0xe0] sm:$0xf] %vm5646_vm4, %v6497_v20  ;;  %v6970_v55 = vpop.f32.mrb[136].mxu1 }
 0x1f8   : > { %5706 = vst.msk [vmem:[%s7996_s4 + $0xec] sm:$0xf] %vm5646_vm4, %v6500_v27  ;;  %v4803_v40 = vld [vmem:[#allocation2 + $0x1e0] sm:$0xff]  ;;  %v3228_v43 = vld [vmem:[#allocation2 + $0x208] sm:$0xff]  ;;  %5704 = vst.msk [vmem:[%s7996_s4 + $0xe4] sm:$0xf] %vm5646_vm4, %v6498_v34  ;;  %v2981_v58 = vadd.f32 %v6970_v55, %v1657_v54 }
 0x1f9   : > { %v4938_v45 = vadd.f32 %v8199_v52, %v4803_v40  ;;  %v4806_v46 = vld [vmem:[#allocation2 + $0x1f8] sm:$0xff]  ;;  %4679 = vst.msk [vmem:[#allocation2 + $0x200] sm:$0xff] %vm1454_vm3, %v4551_v36  ;;  %v4552_v47 = vadd.f32 %v4235_v4, %v3228_v43  ;;  %3104 = vst.msk [vmem:[#allocation2 + $0x228] sm:$0xff] %vm1454_vm3, %v2976_v38  ;;  %v5068_v48 = vmax.f32 %v4940_v39, 0.0  ;;  %v2684_v60 = vpop.f32.mrb[137].mxu1  ;;  %v3233_v63 = vld [vmem:[#allocation2 + $0x230] sm:$0xff] }
 0x1fa   : > { %v4941_v49 = vadd.f32 %v8199_v52, %v4806_v46  ;;  %v4804_v50 = vld [vmem:[#allocation2 + $0x1e8] sm:$0xff]  ;;  %4682 = vst.msk [vmem:[#allocation2 + $0x218] sm:$0xff] %vm1454_vm3, %v4554_v42  ;;  %v2979_v0 = vadd.f32 %v2684_v60, %v1655_v59  ;;  %v6971_v2 = vpop.f32.mrb[138].mxu1  ;;  %v7100_v3 = vpop.f32.mrb[136].mxu0  ;;  %v4557_v5 = vadd.f32 %v7096_v26, %v3233_v63  ;;  %3109 = vst.msk [vmem:[#allocation2 + $0x250] sm:$0xff] %vm1454_vm3, %v2981_v58  ;;  %v3231_v6 = vld [vmem:[#allocation2 + $0x220] sm:$0xff] }
 0x1fb   : > { %v5066_v51 = vmax.f32 %v4938_v45, 0.0  ;;  %v4939_v53 = vadd.f32 %v8199_v52, %v4804_v50  ;;  %4680 = vst.msk [vmem:[#allocation2 + $0x208] sm:$0xff] %vm1454_vm3, %v4552_v47  ;;  %v6503_v56 = vpack.c.bf16 %v5068_v48, %v5068_v48  ;;  %v2982_v7 = vadd.f32 %v6971_v2, %v1658_v1  ;;  %v2687_v9 = vpop.f32.mrb[139].mxu1  ;;  %v4264_v10 = vpop.f32.mrb[137].mxu0  ;;  %v3234_v14 = vld [vmem:[#allocation2 + $0x238] sm:$0xff]  ;;  %v1660_v48 = vld [vmem:[#allocation2 + $0x268] sm:$0xff] }
 0x1fc   : > { %v5069_v57 = vmax.f32 %v4941_v49, 0.0  ;;  %v4555_v13 = vadd.f32 %v4248_v33, %v3231_v6  ;;  %3107 = vst.msk [vmem:[#allocation2 + $0x240] sm:$0xff] %vm1454_vm3, %v2979_v0  ;;  %v2980_v15 = vadd.f32 %v2687_v9, %v1656_v8  ;;  %v7101_v16 = vpop.f32.mrb[138].mxu0  ;;  %4685 = vst.msk [vmem:[#allocation2 + $0x230] sm:$0xff] %vm1454_vm3, %v4557_v5  ;;  %v4558_v19 = vadd.f32 %v7097_v41, %v3234_v14  ;;  %v1662_v40 = vld [vmem:[#allocation2 + $0x278] sm:$0xff] }
 0x1fd   : > { %v6501_v61 = vpack.c.bf16 %v5066_v51, %v5066_v51  ;;  %v5067_v62 = vmax.f32 %v4939_v53, 0.0  ;;  %5709 = vst.msk [vmem:[%s7996_s4 + $0xf8] sm:$0xf] %vm5646_vm4, %v6503_v56  ;;  %v4809_v12 = vld [vmem:[#allocation2 + $0x210] sm:$0xff]  ;;  %v4267_v21 = vpop.f32.mrb[139].mxu0 }
 0x1fe   : > { %v6504_v4 = vpack.c.bf16 %v5069_v57, %v5069_v57  ;;  %v4944_v17 = vadd.f32 %v8199_v52, %v4809_v12  ;;  %3110 = vst.msk [vmem:[#allocation2 + $0x258] sm:$0xff] %vm1454_vm3, %v2982_v7  ;;  %4683 = vst.msk [vmem:[#allocation2 + $0x220] sm:$0xff] %vm1454_vm3, %v4555_v13  ;;  %v1665_v7 = vld [vmem:[#allocation2 + $0x290] sm:$0xff]  ;;  %v1663_v12 = vld [vmem:[#allocation2 + $0x280] sm:$0xff] }
 0x1ff   : > { %5707 = vst.msk [vmem:[%s7996_s4 + $0xf0] sm:$0xf] %vm5646_vm4, %v6501_v61  ;;  %v6502_v11 = vpack.c.bf16 %v5067_v62, %v5067_v62  ;;  %v6974_v31 = vpop.f32.mrb[140].mxu1 }
 0x200   : > { %5710 = vst.msk [vmem:[%s7996_s4 + $0xfc] sm:$0xf] %vm5646_vm4, %v6504_v4  ;;  %v4807_v18 = vld [vmem:[#allocation2 + $0x200] sm:$0xff]  ;;  %v3232_v20 = vld [vmem:[#allocation2 + $0x228] sm:$0xff]  ;;  %v5072_v25 = vmax.f32 %v4944_v17, 0.0  ;;  %v2985_v34 = vadd.f32 %v6974_v31, %v1661_v30  ;;  %v2700_v36 = vpop.f32.mrb[141].mxu1 }
 0x201   : > { %5708 = vst.msk [vmem:[%s7996_s4 + $0xf4] sm:$0xf] %vm5646_vm4, %v6502_v11  ;;  %v4942_v22 = vadd.f32 %v8199_v52, %v4807_v18  ;;  %v4810_v23 = vld [vmem:[#allocation2 + $0x218] sm:$0xff]  ;;  %v4556_v24 = vadd.f32 %v4251_v44, %v3232_v20  ;;  %v3237_v41 = vld [vmem:[#allocation2 + $0x250] sm:$0xff]  ;;  %v2983_v39 = vadd.f32 %v2700_v36, %v1659_v35  ;;  %v6975_v42 = vpop.f32.mrb[142].mxu1  ;;  %v7104_v43 = vpop.f32.mrb[140].mxu0 }
 0x202   : > { %3108 = vst.msk [vmem:[#allocation2 + $0x248] sm:$0xff] %vm1454_vm3, %v2980_v15  ;;  %v4945_v26 = vadd.f32 %v8199_v52, %v4810_v23  ;;  %v4808_v27 = vld [vmem:[#allocation2 + $0x208] sm:$0xff]  ;;  %4686 = vst.msk [vmem:[#allocation2 + $0x238] sm:$0xff] %vm1454_vm3, %v4558_v19  ;;  %v6507_v32 = vpack.c.bf16 %v5072_v25, %v5072_v25  ;;  %v4561_v45 = vadd.f32 %v7100_v3, %v3237_v41  ;;  %v2703_v49 = vpop.f32.mrb[143].mxu1  ;;  %v4280_v50 = vpop.f32.mrb[141].mxu0  ;;  %v1666_v18 = vld [vmem:[#allocation2 + $0x298] sm:$0xff] }
 0x203   : > { %v5070_v28 = vmax.f32 %v4942_v22, 0.0  ;;  %v4943_v29 = vadd.f32 %v8199_v52, %v4808_v27  ;;  %4684 = vst.msk [vmem:[#allocation2 + $0x228] sm:$0xff] %vm1454_vm3, %v4556_v24  ;;  %3113 = vst.msk [vmem:[#allocation2 + $0x270] sm:$0xff] %vm1454_vm3, %v2985_v34  ;;  %v3235_v46 = vld [vmem:[#allocation2 + $0x240] sm:$0xff]  ;;  %v2986_v47 = vadd.f32 %v6975_v42, %v1662_v40  ;;  %v4813_v53 = vld [vmem:[#allocation2 + $0x230] sm:$0xff]  ;;  %v2984_v56 = vadd.f32 %v2703_v49, %v1660_v48  ;;  %v7105_v57 = vpop.f32.mrb[142].mxu0 }
 0x204   : > { %v5073_v33 = vmax.f32 %v4945_v26, 0.0  ;;  %5713 = vst.msk [vmem:[%s7996_s4 + $0x108] sm:$0xf] %vm5646_vm4, %v6507_v32  ;;  %v4559_v54 = vadd.f32 %v4264_v10, %v3235_v46  ;;  %v4948_v58 = vadd.f32 %v8199_v52, %v4813_v53  ;;  %v4283_v62 = vpop.f32.mrb[143].mxu0  ;;  %v1664_v25 = vld [vmem:[#allocation2 + $0x288] sm:$0xff]  ;;  %v1667_v53 = vld [vmem:[#allocation2 + $0x2a0] sm:$0xff] }
 0x205   : > { %v6505_v37 = vpack.c.bf16 %v5070_v28, %v5070_v28  ;;  %v5071_v38 = vmax.f32 %v4943_v29, 0.0  ;;  %3111 = vst.msk [vmem:[#allocation2 + $0x260] sm:$0xff] %vm1454_vm3, %v2983_v39  ;;  %v3238_v55 = vld [vmem:[#allocation2 + $0x258] sm:$0xff]  ;;  %v4811_v59 = vld [vmem:[#allocation2 + $0x220] sm:$0xff]  ;;  %4689 = vst.msk [vmem:[#allocation2 + $0x250] sm:$0xff] %vm1454_vm3, %v4561_v45 }
 0x206   : > { %v6508_v44 = vpack.c.bf16 %v5073_v33, %v5073_v33  ;;  %v4562_v60 = vadd.f32 %v7101_v16, %v3238_v55  ;;  %3114 = vst.msk [vmem:[#allocation2 + $0x278] sm:$0xff] %vm1454_vm3, %v2986_v47  ;;  %v4946_v63 = vadd.f32 %v8199_v52, %v4811_v59  ;;  %4687 = vst.msk [vmem:[#allocation2 + $0x240] sm:$0xff] %vm1454_vm3, %v4559_v54  ;;  %v5076_v2 = vmax.f32 %v4948_v58, 0.0  ;;  %v1669_v47 = vld [vmem:[#allocation2 + $0x2b0] sm:$0xff]  ;;  %v1670_v59 = vld [vmem:[#allocation2 + $0x2b8] sm:$0xff] }
 0x207   : > { %5711 = vst.msk [vmem:[%s7996_s4 + $0x100] sm:$0xf] %vm5646_vm4, %v6505_v37  ;;  %v6506_v51 = vpack.c.bf16 %v5071_v38, %v5071_v38  ;;  %v6978_v8 = vpop.f32.mrb[144].mxu1 }
 0x208   : > { %5714 = vst.msk [vmem:[%s7996_s4 + $0x10c] sm:$0xf] %vm5646_vm4, %v6508_v44  ;;  %v5074_v5 = vmax.f32 %v4946_v63, 0.0  ;;  %v6511_v9 = vpack.c.bf16 %v5076_v2, %v5076_v2  ;;  %v2989_v11 = vadd.f32 %v6978_v8, %v1665_v7  ;;  %v2716_v13 = vpop.f32.mrb[145].mxu1  ;;  %v7108_v20 = vpop.f32.mrb[144].mxu0 }
 0x209   : > { %v3236_v61 = vld [vmem:[#allocation2 + $0x248] sm:$0xff]  ;;  %5712 = vst.msk [vmem:[%s7996_s4 + $0x104] sm:$0xf] %vm5646_vm4, %v6506_v51  ;;  %v4814_v0 = vld [vmem:[#allocation2 + $0x238] sm:$0xff]  ;;  %v2987_v17 = vadd.f32 %v2716_v13, %v1663_v12  ;;  %v6979_v19 = vpop.f32.mrb[146].mxu1  ;;  %v4296_v27 = vpop.f32.mrb[145].mxu0 }
 0x20a   : > { %v4560_v1 = vadd.f32 %v4267_v21, %v3236_v61  ;;  %3112 = vst.msk [vmem:[#allocation2 + $0x268] sm:$0xff] %vm1454_vm3, %v2984_v56  ;;  %v4949_v3 = vadd.f32 %v8199_v52, %v4814_v0  ;;  %v4812_v4 = vld [vmem:[#allocation2 + $0x228] sm:$0xff]  ;;  %4690 = vst.msk [vmem:[#allocation2 + $0x258] sm:$0xff] %vm1454_vm3, %v4562_v60  ;;  %v6509_v14 = vpack.c.bf16 %v5074_v5, %v5074_v5  ;;  %v3241_v16 = vld [vmem:[#allocation2 + $0x270] sm:$0xff]  ;;  %v2719_v26 = vpop.f32.mrb[147].mxu1  ;;  %v7109_v33 = vpop.f32.mrb[146].mxu0 }
 0x20b   : > { %v4947_v6 = vadd.f32 %v8199_v52, %v4812_v4  ;;  %5717 = vst.msk [vmem:[%s7996_s4 + $0x118] sm:$0xf] %vm5646_vm4, %v6511_v9  ;;  %v4565_v22 = vadd.f32 %v7104_v43, %v3241_v16  ;;  %v2990_v24 = vadd.f32 %v6979_v19, %v1666_v18  ;;  %v2988_v32 = vadd.f32 %v2719_v26, %v1664_v25  ;;  %v4299_v38 = vpop.f32.mrb[147].mxu0 }
 0x20c   : > { %4688 = vst.msk [vmem:[#allocation2 + $0x248] sm:$0xff] %vm1454_vm3, %v4560_v1  ;;  %v5077_v10 = vmax.f32 %v4949_v3, 0.0  ;;  %3117 = vst.msk [vmem:[#allocation2 + $0x290] sm:$0xff] %vm1454_vm3, %v2989_v11  ;;  %v3239_v23 = vld [vmem:[#allocation2 + $0x260] sm:$0xff]  ;;  %v4817_v29 = vld [vmem:[#allocation2 + $0x250] sm:$0xff] }
 0x20d   : > { %v5075_v15 = vmax.f32 %v4947_v6, 0.0  ;;  %5715 = vst.msk [vmem:[%s7996_s4 + $0x110] sm:$0xf] %vm5646_vm4, %v6509_v14  ;;  %v4563_v30 = vadd.f32 %v4280_v50, %v3239_v23  ;;  %v3242_v31 = vld [vmem:[#allocation2 + $0x278] sm:$0xff]  ;;  %v4952_v34 = vadd.f32 %v8199_v52, %v4817_v29  ;;  %v4815_v35 = vld [vmem:[#allocation2 + $0x240] sm:$0xff]  ;;  %v1668_v1 = vld [vmem:[#allocation2 + $0x2a8] sm:$0xff] }
 0x20e   : > { %v6512_v21 = vpack.c.bf16 %v5077_v10, %v5077_v10  ;;  %3115 = vst.msk [vmem:[#allocation2 + $0x280] sm:$0xff] %vm1454_vm3, %v2987_v17  ;;  %4693 = vst.msk [vmem:[#allocation2 + $0x270] sm:$0xff] %vm1454_vm3, %v4565_v22  ;;  %v4566_v36 = vadd.f32 %v7105_v57, %v3242_v31  ;;  %v4950_v41 = vadd.f32 %v8199_v52, %v4815_v35  ;;  %v8404_v10 = vld [vmem:[%s8670_s2] ss:$0 sm:$0xff]  ;;  %v1674_v35 = vld [vmem:[#allocation2 + $0x2d8] sm:$0xff] }
 0x20f   : > { %v6510_v28 = vpack.c.bf16 %v5075_v15, %v5075_v15  ;;  %3118 = vst.msk [vmem:[#allocation2 + $0x298] sm:$0xff] %vm1454_vm3, %v2990_v24  ;;  %4691 = vst.msk [vmem:[#allocation2 + $0x260] sm:$0xff] %vm1454_vm3, %v4563_v30  ;;  %v5080_v42 = vmax.f32 %v4952_v34, 0.0  ;;  %v6982_v48 = vpop.f32.mrb[148].mxu1  ;;  %v1673_v24 = vld [vmem:[#allocation2 + $0x2d0] sm:$0xff]  ;;  %v1671_v29 = vld [vmem:[#allocation2 + $0x2c0] sm:$0xff] }
 0x210   : > { %5718 = vst.msk [vmem:[%s7996_s4 + $0x11c] sm:$0xf] %vm5646_vm4, %v6512_v21  ;;  %v5078_v45 = vmax.f32 %v4950_v41, 0.0  ;;  %v2993_v51 = vadd.f32 %v6982_v48, %v1669_v47  ;;  %v2732_v54 = vpop.f32.mrb[149].mxu1  ;;  %v7112_v61 = vpop.f32.mrb[148].mxu0 }
 0x211   : > { %v3240_v37 = vld [vmem:[#allocation2 + $0x268] sm:$0xff]  ;;  %5716 = vst.msk [vmem:[%s7996_s4 + $0x114] sm:$0xf] %vm5646_vm4, %v6510_v28  ;;  %v4818_v39 = vld [vmem:[#allocation2 + $0x258] sm:$0xff]  ;;  %v6515_v49 = vpack.c.bf16 %v5080_v42, %v5080_v42  ;;  %v2991_v58 = vadd.f32 %v2732_v54, %v1667_v53  ;;  %v6983_v60 = vpop.f32.mrb[150].mxu1  ;;  %v4312_v3 = vpop.f32.mrb[149].mxu0 }
 0x212   : > { %v4564_v40 = vadd.f32 %v4283_v62, %v3240_v37  ;;  %3116 = vst.msk [vmem:[#allocation2 + $0x288] sm:$0xff] %vm1454_vm3, %v2988_v32  ;;  %v4953_v43 = vadd.f32 %v8199_v52, %v4818_v39  ;;  %4694 = vst.msk [vmem:[#allocation2 + $0x278] sm:$0xff] %vm1454_vm3, %v4566_v36  ;;  %v6513_v55 = vpack.c.bf16 %v5078_v45, %v5078_v45  ;;  %v2735_v2 = vpop.f32.mrb[151].mxu1  ;;  %v7113_v9 = vpop.f32.mrb[150].mxu0  ;;  %v1672_v42 = vld [vmem:[#allocation2 + $0x2c8] sm:$0xff] }
 0x213   : > { %v4816_v44 = vld [vmem:[#allocation2 + $0x248] sm:$0xff]  ;;  %v3245_v57 = vld [vmem:[#allocation2 + $0x290] sm:$0xff]  ;;  %5721 = vst.msk [vmem:[%s7996_s4 + $0x128] sm:$0xf] %vm5646_vm4, %v6515_v49  ;;  %v2994_v0 = vadd.f32 %v6983_v60, %v1670_v59  ;;  %v2992_v8 = vadd.f32 %v2735_v2, %v1668_v1  ;;  %v4315_v15 = vpop.f32.mrb[151].mxu0 }
 0x214   : > { %v4951_v46 = vadd.f32 %v8199_v52, %v4816_v44  ;;  %4692 = vst.msk [vmem:[#allocation2 + $0x268] sm:$0xff] %vm1454_vm3, %v4564_v40  ;;  %v5081_v50 = vmax.f32 %v4953_v43, 0.0  ;;  %v4569_v62 = vadd.f32 %v7108_v20, %v3245_v57  ;;  %3121 = vst.msk [vmem:[#allocation2 + $0x2b0] sm:$0xff] %vm1454_vm3, %v2993_v51 }
 0x215   : > { %v3243_v63 = vld [vmem:[#allocation2 + $0x280] sm:$0xff]  ;;  %5719 = vst.msk [vmem:[%s7996_s4 + $0x120] sm:$0xf] %vm5646_vm4, %v6513_v55  ;;  %v4821_v5 = vld [vmem:[#allocation2 + $0x270] sm:$0xff] }
 0x216   : > { %v5079_v56 = vmax.f32 %v4951_v46, 0.0  ;;  %v6516_v52 = vpack.c.bf16 %v5081_v50, %v5081_v50  ;;  %v4567_v6 = vadd.f32 %v4296_v27, %v3243_v63  ;;  %3119 = vst.msk [vmem:[#allocation2 + $0x2a0] sm:$0xff] %vm1454_vm3, %v2991_v58  ;;  %v3246_v7 = vld [vmem:[#allocation2 + $0x298] sm:$0xff]  ;;  %v4956_v11 = vadd.f32 %v8404_v10, %v4821_v5  ;;  %v4819_v12 = vld [vmem:[#allocation2 + $0x260] sm:$0xff]  ;;  %4697 = vst.msk [vmem:[#allocation2 + $0x290] sm:$0xff] %vm1454_vm3, %v4569_v62 }
 0x217   : > { %v4570_v13 = vadd.f32 %v7109_v33, %v3246_v7  ;;  %3122 = vst.msk [vmem:[#allocation2 + $0x2b8] sm:$0xff] %vm1454_vm3, %v2994_v0  ;;  %v4954_v16 = vadd.f32 %v8404_v10, %v4819_v12  ;;  %3120 = vst.msk [vmem:[#allocation2 + $0x2a8] sm:$0xff] %vm1454_vm3, %v2992_v8  ;;  %v6986_v25 = vpop.f32.mrb[152].mxu1  ;;  %v1677_v0 = vld [vmem:[#allocation2 + $0x2f0] sm:$0xff]  ;;  %v1675_v5 = vld [vmem:[#allocation2 + $0x2e0] sm:$0xff] }
 0x218   : > { %v6514_v4 = vpack.c.bf16 %v5079_v56, %v5079_v56  ;;  %5722 = vst.msk [vmem:[%s7996_s4 + $0x12c] sm:$0xf] %vm5646_vm4, %v6516_v52  ;;  %v5084_v19 = vmax.f32 %v4956_v11, 0.0  ;;  %v2997_v28 = vadd.f32 %v6986_v25, %v1673_v24  ;;  %v2748_v30 = vpop.f32.mrb[153].mxu1  ;;  %v7116_v37 = vpop.f32.mrb[152].mxu0  ;;  %v1678_v12 = vld [vmem:[#allocation2 + $0x2f8] sm:$0xff] }
 0x219   : > { %v3244_v14 = vld [vmem:[#allocation2 + $0x288] sm:$0xff]  ;;  %v4822_v17 = vld [vmem:[#allocation2 + $0x278] sm:$0xff]  ;;  %4695 = vst.msk [vmem:[#allocation2 + $0x280] sm:$0xff] %vm1454_vm3, %v4567_v6  ;;  %4698 = vst.msk [vmem:[#allocation2 + $0x298] sm:$0xff] %vm1454_vm3, %v4570_v13  ;;  %v5082_v22 = vmax.f32 %v4954_v16, 0.0  ;;  %v2995_v34 = vadd.f32 %v2748_v30, %v1671_v29  ;;  %v6987_v36 = vpop.f32.mrb[154].mxu1 }
 0x21a   : > { %5720 = vst.msk [vmem:[%s7996_s4 + $0x124] sm:$0xf] %vm5646_vm4, %v6514_v4  ;;  %v4568_v18 = vadd.f32 %v4299_v38, %v3244_v14  ;;  %v4957_v20 = vadd.f32 %v8404_v10, %v4822_v17  ;;  %v6519_v26 = vpack.c.bf16 %v5084_v19, %v5084_v19  ;;  %v2998_v40 = vadd.f32 %v6987_v36, %v1674_v35  ;;  %v2751_v43 = vpop.f32.mrb[155].mxu1  ;;  %v4328_v44 = vpop.f32.mrb[153].mxu0  ;;  %v1676_v19 = vld [vmem:[#allocation2 + $0x2e8] sm:$0xff] }
 0x21b   : > { %v4820_v21 = vld [vmem:[#allocation2 + $0x268] sm:$0xff]  ;;  %v6517_v31 = vpack.c.bf16 %v5082_v22, %v5082_v22  ;;  %v3249_v33 = vld [vmem:[#allocation2 + $0x2b0] sm:$0xff]  ;;  %3125 = vst.msk [vmem:[#allocation2 + $0x2d0] sm:$0xff] %vm1454_vm3, %v2997_v28  ;;  %3123 = vst.msk [vmem:[#allocation2 + $0x2c0] sm:$0xff] %vm1454_vm3, %v2995_v34  ;;  %v2996_v49 = vadd.f32 %v2751_v43, %v1672_v42  ;;  %v7117_v50 = vpop.f32.mrb[154].mxu0 }
 0x21c   : > { %v4955_v23 = vadd.f32 %v8404_v10, %v4820_v21  ;;  %4696 = vst.msk [vmem:[#allocation2 + $0x288] sm:$0xff] %vm1454_vm3, %v4568_v18  ;;  %v5085_v27 = vmax.f32 %v4957_v20, 0.0  ;;  %v4573_v41 = vadd.f32 %v7112_v61, %v3249_v33  ;;  %3126 = vst.msk [vmem:[#allocation2 + $0x2d8] sm:$0xff] %vm1454_vm3, %v2998_v40  ;;  %v4331_v56 = vpop.f32.mrb[155].mxu0  ;;  %v1681_v40 = vld [vmem:[#allocation2 + $0x310] sm:$0xff] }
 0x21d   : > { %5725 = vst.msk [vmem:[%s7996_s4 + $0x138] sm:$0xf] %vm5646_vm4, %v6519_v26  ;;  %v3247_v39 = vld [vmem:[#allocation2 + $0x2a0] sm:$0xff]  ;;  %5723 = vst.msk [vmem:[%s7996_s4 + $0x130] sm:$0xf] %vm5646_vm4, %v6517_v31  ;;  %v4825_v46 = vld [vmem:[#allocation2 + $0x290] sm:$0xff] }
 0x21e   : > { %v5083_v32 = vmax.f32 %v4955_v23, 0.0  ;;  %v6520_v38 = vpack.c.bf16 %v5085_v27, %v5085_v27  ;;  %v4571_v47 = vadd.f32 %v4312_v3, %v3247_v39  ;;  %v3250_v48 = vld [vmem:[#allocation2 + $0x2b8] sm:$0xff]  ;;  %v4960_v51 = vadd.f32 %v8404_v10, %v4825_v46  ;;  %4701 = vst.msk [vmem:[#allocation2 + $0x2b0] sm:$0xff] %vm1454_vm3, %v4573_v41  ;;  %v3248_v55 = vld [vmem:[#allocation2 + $0x2a8] sm:$0xff]  ;;  %3124 = vst.msk [vmem:[#allocation2 + $0x2c8] sm:$0xff] %vm1454_vm3, %v2996_v49 }
 0x21f   : > { %v4574_v54 = vadd.f32 %v7113_v9, %v3250_v48  ;;  %v4572_v59 = vadd.f32 %v4315_v15, %v3248_v55  ;;  %v6990_v1 = vpop.f32.mrb[156].mxu1  ;;  %v1679_v46 = vld [vmem:[#allocation2 + $0x300] sm:$0xff] }
 0x220   : > { %v6518_v45 = vpack.c.bf16 %v5083_v32, %v5083_v32  ;;  %5726 = vst.msk [vmem:[%s7996_s4 + $0x13c] sm:$0xf] %vm5646_vm4, %v6520_v38  ;;  %v4823_v53 = vld [vmem:[#allocation2 + $0x280] sm:$0xff]  ;;  %v4826_v58 = vld [vmem:[#allocation2 + $0x298] sm:$0xff]  ;;  %v5088_v60 = vmax.f32 %v4960_v51, 0.0  ;;  %v3001_v4 = vadd.f32 %v6990_v1, %v1677_v0  ;;  %v2764_v6 = vpop.f32.mrb[157].mxu1 }
 0x221   : > { %v4958_v57 = vadd.f32 %v8404_v10, %v4823_v53  ;;  %4699 = vst.msk [vmem:[#allocation2 + $0x2a0] sm:$0xff] %vm1454_vm3, %v4571_v47  ;;  %v4961_v61 = vadd.f32 %v8404_v10, %v4826_v58  ;;  %4702 = vst.msk [vmem:[#allocation2 + $0x2b8] sm:$0xff] %vm1454_vm3, %v4574_v54  ;;  %v2999_v11 = vadd.f32 %v2764_v6, %v1675_v5  ;;  %v6991_v13 = vpop.f32.mrb[158].mxu1  ;;  %v7120_v14 = vpop.f32.mrb[156].mxu0  ;;  %v1682_v53 = vld [vmem:[#allocation2 + $0x318] sm:$0xff] }
 0x222   : > { %5724 = vst.msk [vmem:[%s7996_s4 + $0x134] sm:$0xf] %vm5646_vm4, %v6518_v45  ;;  %v6523_v2 = vpack.c.bf16 %v5088_v60, %v5088_v60  ;;  %v3253_v9 = vld [vmem:[#allocation2 + $0x2d0] sm:$0xff]  ;;  %v3251_v17 = vld [vmem:[#allocation2 + $0x2c0] sm:$0xff]  ;;  %v3002_v18 = vadd.f32 %v6991_v13, %v1678_v12  ;;  %v2767_v20 = vpop.f32.mrb[159].mxu1  ;;  %v4344_v21 = vpop.f32.mrb[157].mxu0 }
 0x223   : > { %v4824_v52 = vld [vmem:[#allocation2 + $0x288] sm:$0xff]  ;;  %v5086_v62 = vmax.f32 %v4958_v57, 0.0  ;;  %4700 = vst.msk [vmem:[#allocation2 + $0x2a8] sm:$0xff] %vm1454_vm3, %v4572_v59  ;;  %v5089_v3 = vmax.f32 %v4961_v61, 0.0  ;;  %v4577_v16 = vadd.f32 %v7116_v37, %v3253_v9  ;;  %3129 = vst.msk [vmem:[#allocation2 + $0x2f0] sm:$0xff] %vm1454_vm3, %v3001_v4  ;;  %v4575_v24 = vadd.f32 %v4328_v44, %v3251_v17  ;;  %v3254_v25 = vld [vmem:[#allocation2 + $0x2d8] sm:$0xff] }
 0x224   : > { %v4959_v63 = vadd.f32 %v8404_v10, %v4824_v52  ;;  %5729 = vst.msk [vmem:[%s7996_s4 + $0x148] sm:$0xf] %vm5646_vm4, %v6523_v2  ;;  %v3000_v26 = vadd.f32 %v2767_v20, %v1676_v19  ;;  %v7121_v27 = vpop.f32.mrb[158].mxu0  ;;  %v4578_v30 = vadd.f32 %v7117_v50, %v3254_v25  ;;  %v1680_v60 = vld [vmem:[#allocation2 + $0x308] sm:$0xff] }
 0x225   : > { %v6521_v7 = vpack.c.bf16 %v5086_v62, %v5086_v62  ;;  %v6524_v15 = vpack.c.bf16 %v5089_v3, %v5089_v3  ;;  %v4829_v23 = vld [vmem:[#allocation2 + $0x2b0] sm:$0xff]  ;;  %3127 = vst.msk [vmem:[#allocation2 + $0x2e0] sm:$0xff] %vm1454_vm3, %v2999_v11  ;;  %4705 = vst.msk [vmem:[#allocation2 + $0x2d0] sm:$0xff] %vm1454_vm3, %v4577_v16  ;;  %v3252_v31 = vld [vmem:[#allocation2 + $0x2c8] sm:$0xff]  ;;  %v4347_v32 = vpop.f32.mrb[159].mxu0 }
 0x226   : > { %v5087_v8 = vmax.f32 %v4959_v63, 0.0  ;;  %v4964_v28 = vadd.f32 %v8404_v10, %v4829_v23  ;;  %3130 = vst.msk [vmem:[#allocation2 + $0x2f8] sm:$0xff] %vm1454_vm3, %v3002_v18  ;;  %4703 = vst.msk [vmem:[#allocation2 + $0x2c0] sm:$0xff] %vm1454_vm3, %v4575_v24  ;;  %v4576_v35 = vadd.f32 %v4331_v56, %v3252_v31  ;;  %v1685_v18 = vld [vmem:[#allocation2 + $0x330] sm:$0xff]  ;;  %v1683_v23 = vld [vmem:[#allocation2 + $0x320] sm:$0xff] }
 0x227   : > { %5727 = vst.msk [vmem:[%s7996_s4 + $0x140] sm:$0xf] %vm5646_vm4, %v6521_v7  ;;  %5730 = vst.msk [vmem:[%s7996_s4 + $0x14c] sm:$0xf] %vm5646_vm4, %v6524_v15  ;;  %v6994_v42 = vpop.f32.mrb[160].mxu1 }
 0x228   : > { %v6522_v22 = vpack.c.bf16 %v5087_v8, %v5087_v8  ;;  %v4827_v29 = vld [vmem:[#allocation2 + $0x2a0] sm:$0xff]  ;;  %v4830_v34 = vld [vmem:[#allocation2 + $0x2b8] sm:$0xff]  ;;  %3128 = vst.msk [vmem:[#allocation2 + $0x2e8] sm:$0xff] %vm1454_vm3, %v3000_v26  ;;  %v5092_v36 = vmax.f32 %v4964_v28, 0.0  ;;  %4706 = vst.msk [vmem:[#allocation2 + $0x2d8] sm:$0xff] %vm1454_vm3, %v4578_v30  ;;  %v3005_v45 = vadd.f32 %v6994_v42, %v1681_v40  ;;  %v2780_v47 = vpop.f32.mrb[161].mxu1 }
 0x229   : > { %v4962_v33 = vadd.f32 %v8404_v10, %v4827_v29  ;;  %v4965_v37 = vadd.f32 %v8404_v10, %v4830_v34  ;;  %4704 = vst.msk [vmem:[#allocation2 + $0x2c8] sm:$0xff] %vm1454_vm3, %v4576_v35  ;;  %v3003_v51 = vadd.f32 %v2780_v47, %v1679_v46  ;;  %v6995_v54 = vpop.f32.mrb[162].mxu1  ;;  %v7124_v55 = vpop.f32.mrb[160].mxu0  ;;  %v1686_v29 = vld [vmem:[#allocation2 + $0x338] sm:$0xff] }
 0x22a   : > { %5728 = vst.msk [vmem:[%s7996_s4 + $0x144] sm:$0xf] %vm5646_vm4, %v6522_v22  ;;  %v4828_v38 = vld [vmem:[#allocation2 + $0x2a8] sm:$0xff]  ;;  %v6527_v43 = vpack.c.bf16 %v5092_v36, %v5092_v36  ;;  %v3257_v50 = vld [vmem:[#allocation2 + $0x2f0] sm:$0xff]  ;;  %v3006_v59 = vadd.f32 %v6995_v54, %v1682_v53  ;;  %v2783_v61 = vpop.f32.mrb[163].mxu1  ;;  %v4360_v52 = vpop.f32.mrb[161].mxu0 }
 0x22b   : > { %v5090_v41 = vmax.f32 %v4962_v33, 0.0  ;;  %v4963_v39 = vadd.f32 %v8404_v10, %v4828_v38  ;;  %v5093_v44 = vmax.f32 %v4965_v37, 0.0  ;;  %v4581_v57 = vadd.f32 %v7120_v14, %v3257_v50  ;;  %3133 = vst.msk [vmem:[#allocation2 + $0x310] sm:$0xff] %vm1454_vm3, %v3005_v45  ;;  %3131 = vst.msk [vmem:[#allocation2 + $0x300] sm:$0xff] %vm1454_vm3, %v3003_v51  ;;  %v7125_v3 = vpop.f32.mrb[162].mxu0  ;;  %v1684_v36 = vld [vmem:[#allocation2 + $0x328] sm:$0xff] }
 0x22c   : > { %5733 = vst.msk [vmem:[%s7996_s4 + $0x158] sm:$0xf] %vm5646_vm4, %v6527_v43  ;;  %v3255_v58 = vld [vmem:[#allocation2 + $0x2e0] sm:$0xff]  ;;  %v4833_v63 = vld [vmem:[#allocation2 + $0x2d0] sm:$0xff]  ;;  %v3004_v2 = vadd.f32 %v2783_v61, %v1680_v60  ;;  %v4363_v8 = vpop.f32.mrb[163].mxu0 }
 0x22d   : > { %v6525_v48 = vpack.c.bf16 %v5090_v41, %v5090_v41  ;;  %v5091_v49 = vmax.f32 %v4963_v39, 0.0  ;;  %v6528_v56 = vpack.c.bf16 %v5093_v44, %v5093_v44  ;;  %v4579_v0 = vadd.f32 %v4344_v21, %v3255_v58  ;;  %v3258_v1 = vld [vmem:[#allocation2 + $0x2f8] sm:$0xff]  ;;  %v4831_v5 = vld [vmem:[#allocation2 + $0x2c0] sm:$0xff]  ;;  %4709 = vst.msk [vmem:[#allocation2 + $0x2f0] sm:$0xff] %vm1454_vm3, %v4581_v57  ;;  %3134 = vst.msk [vmem:[#allocation2 + $0x318] sm:$0xff] %vm1454_vm3, %v3006_v59 }
 0x22e   : > { %v4968_v4 = vadd.f32 %v8404_v10, %v4833_v63  ;;  %v4582_v6 = vadd.f32 %v7121_v27, %v3258_v1  ;;  %v4966_v9 = vadd.f32 %v8404_v10, %v4831_v5  ;;  %3132 = vst.msk [vmem:[#allocation2 + $0x308] sm:$0xff] %vm1454_vm3, %v3004_v2  ;;  %v1689_v59 = vld [vmem:[#allocation2 + $0x350] sm:$0xff]  ;;  %v1687_v63 = vld [vmem:[#allocation2 + $0x340] sm:$0xff]  ;;  %v1690_v5 = vld [vmem:[#allocation2 + $0x358] sm:$0xff] }
 0x22f   : > { %5731 = vst.msk [vmem:[%s7996_s4 + $0x150] sm:$0xf] %vm5646_vm4, %v6525_v48  ;;  %v6526_v62 = vpack.c.bf16 %v5091_v49, %v5091_v49  ;;  %5734 = vst.msk [vmem:[%s7996_s4 + $0x15c] sm:$0xf] %vm5646_vm4, %v6528_v56  ;;  %v3256_v7 = vld [vmem:[#allocation2 + $0x2e8] sm:$0xff]  ;;  %v4834_v11 = vld [vmem:[#allocation2 + $0x2d8] sm:$0xff] }
 0x230   : > { %4707 = vst.msk [vmem:[#allocation2 + $0x2e0] sm:$0xff] %vm1454_vm3, %v4579_v0  ;;  %v4580_v12 = vadd.f32 %v4347_v32, %v3256_v7  ;;  %v5096_v13 = vmax.f32 %v4968_v4, 0.0  ;;  %v4969_v14 = vadd.f32 %v8404_v10, %v4834_v11  ;;  %v4832_v15 = vld [vmem:[#allocation2 + $0x2c8] sm:$0xff]  ;;  %4710 = vst.msk [vmem:[#allocation2 + $0x2f8] sm:$0xff] %vm1454_vm3, %v4582_v6  ;;  %v5094_v16 = vmax.f32 %v4966_v9, 0.0  ;;  %v6998_v19 = vpop.f32.mrb[164].mxu1 }
 0x231   : > { %5732 = vst.msk [vmem:[%s7996_s4 + $0x154] sm:$0xf] %vm5646_vm4, %v6526_v62  ;;  %v4967_v17 = vadd.f32 %v8404_v10, %v4832_v15  ;;  %v3009_v22 = vadd.f32 %v6998_v19, %v1685_v18  ;;  %v2796_v24 = vpop.f32.mrb[165].mxu1  ;;  %v7128_v31 = vpop.f32.mrb[164].mxu0 }
 0x232   : > { %4708 = vst.msk [vmem:[#allocation2 + $0x2e8] sm:$0xff] %vm1454_vm3, %v4580_v12  ;;  %v6531_v20 = vpack.c.bf16 %v5096_v13, %v5096_v13  ;;  %v5097_v21 = vmax.f32 %v4969_v14, 0.0  ;;  %v6529_v25 = vpack.c.bf16 %v5094_v16, %v5094_v16  ;;  %v3261_v27 = vld [vmem:[#allocation2 + $0x310] sm:$0xff]  ;;  %v3007_v28 = vadd.f32 %v2796_v24, %v1683_v23  ;;  %v6999_v30 = vpop.f32.mrb[166].mxu1  ;;  %v3259_v34 = vld [vmem:[#allocation2 + $0x300] sm:$0xff]  ;;  %v4376_v38 = vpop.f32.mrb[165].mxu0 }
 0x233   : > { %v5095_v26 = vmax.f32 %v4967_v17, 0.0  ;;  %v4585_v33 = vadd.f32 %v7124_v55, %v3261_v27  ;;  %3137 = vst.msk [vmem:[#allocation2 + $0x330] sm:$0xff] %vm1454_vm3, %v3009_v22  ;;  %v3010_v35 = vadd.f32 %v6999_v30, %v1686_v29  ;;  %v2799_v37 = vpop.f32.mrb[167].mxu1  ;;  %v4583_v40 = vadd.f32 %v4360_v52, %v3259_v34  ;;  %v7129_v44 = vpop.f32.mrb[166].mxu0  ;;  %v1688_v13 = vld [vmem:[#allocation2 + $0x348] sm:$0xff] }
 0x234   : > { %5737 = vst.msk [vmem:[%s7996_s4 + $0x168] sm:$0xf] %vm5646_vm4, %v6531_v20  ;;  %v6532_v32 = vpack.c.bf16 %v5097_v21, %v5097_v21  ;;  %5735 = vst.msk [vmem:[%s7996_s4 + $0x160] sm:$0xf] %vm5646_vm4, %v6529_v25  ;;  %v4837_v39 = vld [vmem:[#allocation2 + $0x2f0] sm:$0xff]  ;;  %v3262_v42 = vld [vmem:[#allocation2 + $0x318] sm:$0xff]  ;;  %v3008_v43 = vadd.f32 %v2799_v37, %v1684_v36 }
 0x235   : > { %v6530_v41 = vpack.c.bf16 %v5095_v26, %v5095_v26  ;;  %3135 = vst.msk [vmem:[#allocation2 + $0x320] sm:$0xff] %vm1454_vm3, %v3007_v28  ;;  %v4972_v45 = vadd.f32 %v8404_v10, %v4837_v39  ;;  %4713 = vst.msk [vmem:[#allocation2 + $0x310] sm:$0xff] %vm1454_vm3, %v4585_v33  ;;  %v4586_v47 = vadd.f32 %v7125_v3, %v3262_v42  ;;  %v3260_v48 = vld [vmem:[#allocation2 + $0x308] sm:$0xff]  ;;  %v4379_v49 = vpop.f32.mrb[167].mxu0  ;;  %v1691_v39 = vld [vmem:[#allocation2 + $0x360] sm:$0xff] }
 0x236   : > { %5738 = vst.msk [vmem:[%s7996_s4 + $0x16c] sm:$0xf] %vm5646_vm4, %v6532_v32  ;;  %v4584_v53 = vadd.f32 %v4363_v8, %v3260_v48 }
 0x237   : > { %v4835_v46 = vld [vmem:[#allocation2 + $0x2e0] sm:$0xff]  ;;  %3138 = vst.msk [vmem:[#allocation2 + $0x338] sm:$0xff] %vm1454_vm3, %v3010_v35  ;;  %v4838_v51 = vld [vmem:[#allocation2 + $0x2f8] sm:$0xff]  ;;  %4711 = vst.msk [vmem:[#allocation2 + $0x300] sm:$0xff] %vm1454_vm3, %v4583_v40  ;;  %v5100_v54 = vmax.f32 %v4972_v45, 0.0  ;;  %v7002_v60 = vpop.f32.mrb[168].mxu1 }
 0x238   : > { %5736 = vst.msk [vmem:[%s7996_s4 + $0x164] sm:$0xf] %vm5646_vm4, %v6530_v41  ;;  %v4970_v50 = vadd.f32 %v8404_v10, %v4835_v46  ;;  %v4973_v55 = vadd.f32 %v8404_v10, %v4838_v51  ;;  %v3013_v62 = vadd.f32 %v7002_v60, %v1689_v59  ;;  %v2812_v0 = vpop.f32.mrb[169].mxu1  ;;  %v7132_v7 = vpop.f32.mrb[168].mxu0  ;;  %v1693_v35 = vld [vmem:[#allocation2 + $0x370] sm:$0xff]  ;;  %v1694_v46 = vld [vmem:[#allocation2 + $0x378] sm:$0xff] }
 0x239   : > { %3136 = vst.msk [vmem:[#allocation2 + $0x328] sm:$0xff] %vm1454_vm3, %v3008_v43  ;;  %v4836_v56 = vld [vmem:[#allocation2 + $0x2e8] sm:$0xff]  ;;  %4714 = vst.msk [vmem:[#allocation2 + $0x318] sm:$0xff] %vm1454_vm3, %v4586_v47  ;;  %v6535_v61 = vpack.c.bf16 %v5100_v54, %v5100_v54  ;;  %v3011_v4 = vadd.f32 %v2812_v0, %v1687_v63  ;;  %v7003_v6 = vpop.f32.mrb[170].mxu1  ;;  %v4392_v15 = vpop.f32.mrb[169].mxu0 }
 0x23a   : > { %v5098_v57 = vmax.f32 %v4970_v50, 0.0  ;;  %v4971_v58 = vadd.f32 %v8404_v10, %v4836_v56  ;;  %4712 = vst.msk [vmem:[#allocation2 + $0x308] sm:$0xff] %vm1454_vm3, %v4584_v53  ;;  %v5101_v52 = vmax.f32 %v4973_v55, 0.0  ;;  %v3265_v3 = vld [vmem:[#allocation2 + $0x330] sm:$0xff]  ;;  %3141 = vst.msk [vmem:[#allocation2 + $0x350] sm:$0xff] %vm1454_vm3, %v3013_v62  ;;  %v3014_v12 = vadd.f32 %v7003_v6, %v1690_v5  ;;  %v2815_v14 = vpop.f32.mrb[171].mxu1 }
 0x23b   : > { %5741 = vst.msk [vmem:[%s7996_s4 + $0x178] sm:$0xf] %vm5646_vm4, %v6535_v61  ;;  %v4589_v9 = vadd.f32 %v7128_v31, %v3265_v3  ;;  %v3012_v20 = vadd.f32 %v2815_v14, %v1688_v13  ;;  %v7133_v21 = vpop.f32.mrb[170].mxu0  ;;  %v1692_v54 = vld [vmem:[#allocation2 + $0x368] sm:$0xff] }
 0x23c   : > { %v6533_v1 = vpack.c.bf16 %v5098_v57, %v5098_v57  ;;  %v5099_v2 = vmax.f32 %v4971_v58, 0.0  ;;  %v6536_v8 = vpack.c.bf16 %v5101_v52, %v5101_v52  ;;  %v3263_v11 = vld [vmem:[#allocation2 + $0x320] sm:$0xff]  ;;  %v4841_v17 = vld [vmem:[#allocation2 + $0x310] sm:$0xff]  ;;  %3139 = vst.msk [vmem:[#allocation2 + $0x340] sm:$0xff] %vm1454_vm3, %v3011_v4  ;;  %3142 = vst.msk [vmem:[#allocation2 + $0x358] sm:$0xff] %vm1454_vm3, %v3014_v12  ;;  %v4395_v26 = vpop.f32.mrb[171].mxu0 }
 0x23d   : > { %v4587_v18 = vadd.f32 %v4376_v38, %v3263_v11  ;;  %v4976_v22 = vadd.f32 %v8404_v10, %v4841_v17  ;;  %4717 = vst.msk [vmem:[#allocation2 + $0x330] sm:$0xff] %vm1454_vm3, %v4589_v9  ;;  %3140 = vst.msk [vmem:[#allocation2 + $0x348] sm:$0xff] %vm1454_vm3, %v3012_v20  ;;  %v1697_v12 = vld [vmem:[#allocation2 + $0x390] sm:$0xff]  ;;  %v1695_v17 = vld [vmem:[#allocation2 + $0x380] sm:$0xff] }
 0x23e   : > { %5739 = vst.msk [vmem:[%s7996_s4 + $0x170] sm:$0xf] %vm5646_vm4, %v6533_v1  ;;  %v6534_v16 = vpack.c.bf16 %v5099_v2, %v5099_v2  ;;  %v3266_v19 = vld [vmem:[#allocation2 + $0x338] sm:$0xff]  ;;  %5742 = vst.msk [vmem:[%s7996_s4 + $0x17c] sm:$0xf] %vm5646_vm4, %v6536_v8  ;;  %v4839_v23 = vld [vmem:[#allocation2 + $0x300] sm:$0xff] }
 0x23f   : > { %v4590_v24 = vadd.f32 %v7129_v44, %v3266_v19  ;;  %v4974_v27 = vadd.f32 %v8404_v10, %v4839_v23  ;;  %4715 = vst.msk [vmem:[#allocation2 + $0x320] sm:$0xff] %vm1454_vm3, %v4587_v18  ;;  %v5104_v30 = vmax.f32 %v4976_v22, 0.0  ;;  %v7006_v36 = vpop.f32.mrb[172].mxu1  ;;  %v1698_v23 = vld [vmem:[#allocation2 + $0x398] sm:$0xff] }
 0x240   : > { %v3264_v25 = vld [vmem:[#allocation2 + $0x328] sm:$0xff]  ;;  %5740 = vst.msk [vmem:[%s7996_s4 + $0x174] sm:$0xf] %vm5646_vm4, %v6534_v16  ;;  %v4842_v28 = vld [vmem:[#allocation2 + $0x318] sm:$0xff]  ;;  %v3017_v41 = vadd.f32 %v7006_v36, %v1693_v35  ;;  %v2828_v40 = vpop.f32.mrb[173].mxu1  ;;  %v7136_v48 = vpop.f32.mrb[172].mxu0 }
 0x241   : > { %v4588_v29 = vadd.f32 %v4379_v49, %v3264_v25  ;;  %v4977_v31 = vadd.f32 %v8404_v10, %v4842_v28  ;;  %v4840_v32 = vld [vmem:[#allocation2 + $0x308] sm:$0xff]  ;;  %4718 = vst.msk [vmem:[#allocation2 + $0x338] sm:$0xff] %vm1454_vm3, %v4590_v24  ;;  %v5102_v33 = vmax.f32 %v4974_v27, 0.0  ;;  %v6539_v37 = vpack.c.bf16 %v5104_v30, %v5104_v30  ;;  %v3269_v44 = vld [vmem:[#allocation2 + $0x350] sm:$0xff]  ;;  %v7007_v47 = vpop.f32.mrb[174].mxu1  ;;  %v4408_v56 = vpop.f32.mrb[173].mxu0 }
 0x242   : > { %v4975_v34 = vadd.f32 %v8404_v10, %v4840_v32  ;;  %v3015_v45 = vadd.f32 %v2828_v40, %v1691_v39  ;;  %v4593_v50 = vadd.f32 %v7132_v7, %v3269_v44  ;;  %3145 = vst.msk [vmem:[#allocation2 + $0x370] sm:$0xff] %vm1454_vm3, %v3017_v41  ;;  %v3018_v53 = vadd.f32 %v7007_v47, %v1694_v46  ;;  %v2831_v55 = vpop.f32.mrb[175].mxu1  ;;  %v7137_v52 = vpop.f32.mrb[174].mxu0  ;;  %v1696_v30 = vld [vmem:[#allocation2 + $0x388] sm:$0xff] }
 0x243   : > { %4716 = vst.msk [vmem:[#allocation2 + $0x328] sm:$0xff] %vm1454_vm3, %v4588_v29  ;;  %v5105_v38 = vmax.f32 %v4977_v31, 0.0  ;;  %v6537_v42 = vpack.c.bf16 %v5102_v33, %v5102_v33  ;;  %v3267_v51 = vld [vmem:[#allocation2 + $0x340] sm:$0xff]  ;;  %v3270_v60 = vld [vmem:[#allocation2 + $0x358] sm:$0xff]  ;;  %v3016_v61 = vadd.f32 %v2831_v55, %v1692_v54  ;;  %v4411_v2 = vpop.f32.mrb[175].mxu0 }
 0x244   : > { %v5103_v43 = vmax.f32 %v4975_v34, 0.0  ;;  %5745 = vst.msk [vmem:[%s7996_s4 + $0x188] sm:$0xf] %vm5646_vm4, %v6539_v37  ;;  %v4845_v58 = vld [vmem:[#allocation2 + $0x330] sm:$0xff]  ;;  %v4591_v59 = vadd.f32 %v4392_v15, %v3267_v51  ;;  %v4594_v0 = vadd.f32 %v7133_v21, %v3270_v60  ;;  %v3268_v1 = vld [vmem:[#allocation2 + $0x348] sm:$0xff] }
 0x245   : > { %v6540_v49 = vpack.c.bf16 %v5105_v38, %v5105_v38  ;;  %5743 = vst.msk [vmem:[%s7996_s4 + $0x180] sm:$0xf] %vm5646_vm4, %v6537_v42  ;;  %v4980_v62 = vadd.f32 %v8404_v10, %v4845_v58  ;;  %v4592_v5 = vadd.f32 %v4395_v26, %v3268_v1  ;;  %v1699_v58 = vld [vmem:[#allocation2 + $0x3a0] sm:$0xff] }
 0x246   : > { %v6538_v57 = vpack.c.bf16 %v5103_v43, %v5103_v43  ;;  %3143 = vst.msk [vmem:[#allocation2 + $0x360] sm:$0xff] %vm1454_vm3, %v3015_v45  ;;  %v4843_v63 = vld [vmem:[#allocation2 + $0x320] sm:$0xff]  ;;  %4721 = vst.msk [vmem:[#allocation2 + $0x350] sm:$0xff] %vm1454_vm3, %v4593_v50 }
 0x247   : > { %5746 = vst.msk [vmem:[%s7996_s4 + $0x18c] sm:$0xf] %vm5646_vm4, %v6540_v49  ;;  %v4978_v3 = vadd.f32 %v8404_v10, %v4843_v63  ;;  %v5108_v6 = vmax.f32 %v4980_v62, 0.0  ;;  %v7010_v13 = vpop.f32.mrb[176].mxu1  ;;  %v1702_v63 = vld [vmem:[#allocation2 + $0x3b8] sm:$0xff] }
 0x248   : > { %3146 = vst.msk [vmem:[#allocation2 + $0x378] sm:$0xff] %vm1454_vm3, %v3018_v53  ;;  %v4846_v4 = vld [vmem:[#allocation2 + $0x338] sm:$0xff]  ;;  %4719 = vst.msk [vmem:[#allocation2 + $0x340] sm:$0xff] %vm1454_vm3, %v4591_v59  ;;  %v3021_v16 = vadd.f32 %v7010_v13, %v1697_v12  ;;  %v2844_v18 = vpop.f32.mrb[177].mxu1  ;;  %v7140_v25 = vpop.f32.mrb[176].mxu0  ;;  %v1701_v53 = vld [vmem:[#allocation2 + $0x3b0] sm:$0xff] }
 0x249   : > { %5744 = vst.msk [vmem:[%s7996_s4 + $0x184] sm:$0xf] %vm5646_vm4, %v6538_v57  ;;  %v4981_v7 = vadd.f32 %v8404_v10, %v4846_v4  ;;  %v5106_v9 = vmax.f32 %v4978_v3, 0.0  ;;  %v6543_v14 = vpack.c.bf16 %v5108_v6, %v5108_v6  ;;  %v3273_v21 = vld [vmem:[#allocation2 + $0x370] sm:$0xff]  ;;  %v3019_v22 = vadd.f32 %v2844_v18, %v1695_v17  ;;  %v7011_v24 = vpop.f32.mrb[178].mxu1  ;;  %v4424_v32 = vpop.f32.mrb[177].mxu0 }
 0x24a   : > { %3144 = vst.msk [vmem:[#allocation2 + $0x368] sm:$0xff] %vm1454_vm3, %v3016_v61  ;;  %v4844_v8 = vld [vmem:[#allocation2 + $0x328] sm:$0xff]  ;;  %4722 = vst.msk [vmem:[#allocation2 + $0x358] sm:$0xff] %vm1454_vm3, %v4594_v0  ;;  %v4597_v27 = vadd.f32 %v7136_v48, %v3273_v21  ;;  %v3022_v29 = vadd.f32 %v7011_v24, %v1698_v23  ;;  %v2847_v31 = vpop.f32.mrb[179].mxu1  ;;  %v7141_v38 = vpop.f32.mrb[178].mxu0 }
 0x24b   : > { %v4979_v11 = vadd.f32 %v8404_v10, %v4844_v8  ;;  %4720 = vst.msk [vmem:[#allocation2 + $0x348] sm:$0xff] %vm1454_vm3, %v4592_v5  ;;  %v5109_v15 = vmax.f32 %v4981_v7, 0.0  ;;  %v6541_v19 = vpack.c.bf16 %v5106_v9, %v5106_v9  ;;  %3149 = vst.msk [vmem:[#allocation2 + $0x390] sm:$0xff] %vm1454_vm3, %v3021_v16  ;;  %v3020_v37 = vadd.f32 %v2847_v31, %v1696_v30  ;;  %v4427_v43 = vpop.f32.mrb[179].mxu0  ;;  %v1700_v6 = vld [vmem:[#allocation2 + $0x3a8] sm:$0xff] }
 0x24c   : > { %5749 = vst.msk [vmem:[%s7996_s4 + $0x198] sm:$0xf] %vm5646_vm4, %v6543_v14 }
 0x24d   : > { %v5107_v20 = vmax.f32 %v4979_v11, 0.0  ;;  %v6544_v26 = vpack.c.bf16 %v5109_v15, %v5109_v15  ;;  %v3271_v28 = vld [vmem:[#allocation2 + $0x360] sm:$0xff]  ;;  %5747 = vst.msk [vmem:[%s7996_s4 + $0x190] sm:$0xf] %vm5646_vm4, %v6541_v19  ;;  %v4849_v34 = vld [vmem:[#allocation2 + $0x350] sm:$0xff] }
 0x24e   : > { %v4595_v35 = vadd.f32 %v4408_v56, %v3271_v28  ;;  %3147 = vst.msk [vmem:[#allocation2 + $0x380] sm:$0xff] %vm1454_vm3, %v3019_v22  ;;  %v4984_v41 = vadd.f32 %v8404_v10, %v4849_v34  ;;  %4725 = vst.msk [vmem:[#allocation2 + $0x370] sm:$0xff] %vm1454_vm3, %v4597_v27  ;;  %v1703_v34 = vld [vmem:[#allocation2 + $0x3c0] sm:$0xff] }
 0x24f   : > { %v6542_v33 = vpack.c.bf16 %v5107_v20, %v5107_v20  ;;  %v3274_v36 = vld [vmem:[#allocation2 + $0x378] sm:$0xff]  ;;  %5750 = vst.msk [vmem:[%s7996_s4 + $0x19c] sm:$0xf] %vm5646_vm4, %v6544_v26  ;;  %v4847_v39 = vld [vmem:[#allocation2 + $0x340] sm:$0xff]  ;;  %v7014_v54 = vpop.f32.mrb[180].mxu1 }
 0x250   : > { %v4598_v40 = vadd.f32 %v7137_v52, %v3274_v36  ;;  %3150 = vst.msk [vmem:[#allocation2 + $0x398] sm:$0xff] %vm1454_vm3, %v3022_v29  ;;  %v4982_v44 = vadd.f32 %v8404_v10, %v4847_v39  ;;  %4723 = vst.msk [vmem:[#allocation2 + $0x360] sm:$0xff] %vm1454_vm3, %v4595_v35  ;;  %v5112_v47 = vmax.f32 %v4984_v41, 0.0  ;;  %v3025_v57 = vadd.f32 %v7014_v54, %v1701_v53  ;;  %v2860_v59 = vpop.f32.mrb[181].mxu1  ;;  %v7144_v1 = vpop.f32.mrb[180].mxu0  ;;  %v1705_v29 = vld [vmem:[#allocation2 + $0x3d0] sm:$0xff] }
 0x251   : > { %v3272_v42 = vld [vmem:[#allocation2 + $0x368] sm:$0xff]  ;;  %5748 = vst.msk [vmem:[%s7996_s4 + $0x194] sm:$0xf] %vm5646_vm4, %v6542_v33  ;;  %v4850_v45 = vld [vmem:[#allocation2 + $0x358] sm:$0xff]  ;;  %v3023_v62 = vadd.f32 %v2860_v59, %v1699_v58  ;;  %v7015_v0 = vpop.f32.mrb[182].mxu1  ;;  %v4440_v8 = vpop.f32.mrb[181].mxu0 }
 0x252   : > { %v4596_v46 = vadd.f32 %v4411_v2, %v3272_v42  ;;  %3148 = vst.msk [vmem:[#allocation2 + $0x388] sm:$0xff] %vm1454_vm3, %v3020_v37  ;;  %v4985_v48 = vadd.f32 %v8404_v10, %v4850_v45  ;;  %v4848_v49 = vld [vmem:[#allocation2 + $0x348] sm:$0xff]  ;;  %4726 = vst.msk [vmem:[#allocation2 + $0x378] sm:$0xff] %vm1454_vm3, %v4598_v40  ;;  %v5110_v50 = vmax.f32 %v4982_v44, 0.0  ;;  %v6547_v55 = vpack.c.bf16 %v5112_v47, %v5112_v47  ;;  %v3277_v52 = vld [vmem:[#allocation2 + $0x390] sm:$0xff]  ;;  %v2863_v7 = vpop.f32.mrb[183].mxu1 }
 0x253   : > { %v4983_v51 = vadd.f32 %v8404_v10, %v4848_v49  ;;  %v4601_v3 = vadd.f32 %v7140_v25, %v3277_v52  ;;  %3153 = vst.msk [vmem:[#allocation2 + $0x3b0] sm:$0xff] %vm1454_vm3, %v3025_v57  ;;  %v3026_v5 = vadd.f32 %v7015_v0, %v1702_v63  ;;  %3151 = vst.msk [vmem:[#allocation2 + $0x3a0] sm:$0xff] %vm1454_vm3, %v3023_v62  ;;  %v7145_v15 = vpop.f32.mrb[182].mxu0  ;;  %v1706_v39 = vld [vmem:[#allocation2 + $0x3d8] sm:$0xff]  ;;  %v1704_v47 = vld [vmem:[#allocation2 + $0x3c8] sm:$0xff] }
 0x254   : > { %4724 = vst.msk [vmem:[#allocation2 + $0x368] sm:$0xff] %vm1454_vm3, %v4596_v46  ;;  %v5113_v56 = vmax.f32 %v4985_v48, 0.0  ;;  %v6545_v60 = vpack.c.bf16 %v5110_v50, %v5110_v50  ;;  %v3024_v14 = vadd.f32 %v2863_v7, %v1700_v6  ;;  %v4443_v20 = vpop.f32.mrb[183].mxu0 }
 0x255   : > { %v5111_v61 = vmax.f32 %v4983_v51, 0.0  ;;  %5753 = vst.msk [vmem:[%s7996_s4 + $0x1a8] sm:$0xf] %vm5646_vm4, %v6547_v55  ;;  %v3275_v4 = vld [vmem:[#allocation2 + $0x380] sm:$0xff]  ;;  %v4853_v11 = vld [vmem:[#allocation2 + $0x370] sm:$0xff] }
 0x256   : > { %v6548_v2 = vpack.c.bf16 %v5113_v56, %v5113_v56  ;;  %5751 = vst.msk [vmem:[%s7996_s4 + $0x1a0] sm:$0xf] %vm5646_vm4, %v6545_v60  ;;  %v4599_v12 = vadd.f32 %v4424_v32, %v3275_v4  ;;  %v4988_v16 = vadd.f32 %v8404_v10, %v4853_v11  ;;  %v1707_v11 = vld [vmem:[#allocation2 + $0x3e0] sm:$0xff] }
 0x257   : > { %v6546_v9 = vpack.c.bf16 %v5111_v61, %v5111_v61  ;;  %v3278_v13 = vld [vmem:[#allocation2 + $0x398] sm:$0xff]  ;;  %v4851_v17 = vld [vmem:[#allocation2 + $0x360] sm:$0xff]  ;;  %4729 = vst.msk [vmem:[#allocation2 + $0x390] sm:$0xff] %vm1454_vm3, %v4601_v3  ;;  %3154 = vst.msk [vmem:[#allocation2 + $0x3b8] sm:$0xff] %vm1454_vm3, %v3026_v5  ;;  %v7018_v30 = vpop.f32.mrb[184].mxu1 }
 0x258   : > { %5754 = vst.msk [vmem:[%s7996_s4 + $0x1ac] sm:$0xf] %vm5646_vm4, %v6548_v2  ;;  %v4602_v18 = vadd.f32 %v7141_v38, %v3278_v13  ;;  %v4986_v21 = vadd.f32 %v8404_v10, %v4851_v17  ;;  %v5116_v24 = vmax.f32 %v4988_v16, 0.0  ;;  %v3029_v33 = vadd.f32 %v7018_v30, %v1705_v29  ;;  %v2876_v35 = vpop.f32.mrb[185].mxu1  ;;  %v7148_v42 = vpop.f32.mrb[184].mxu0  ;;  %v1709_v5 = vld [vmem:[#allocation2 + $0x3f0] sm:$0xff] }
 0x259   : > { %v3276_v19 = vld [vmem:[#allocation2 + $0x388] sm:$0xff]  ;;  %5752 = vst.msk [vmem:[%s7996_s4 + $0x1a4] sm:$0xf] %vm5646_vm4, %v6546_v9  ;;  %v4854_v22 = vld [vmem:[#allocation2 + $0x378] sm:$0xff]  ;;  %v3027_v41 = vadd.f32 %v2876_v35, %v1703_v34  ;;  %v7019_v40 = vpop.f32.mrb[186].mxu1  ;;  %v4456_v49 = vpop.f32.mrb[185].mxu0 }
 0x25a   : > { %4727 = vst.msk [vmem:[#allocation2 + $0x380] sm:$0xff] %vm1454_vm3, %v4599_v12  ;;  %v4600_v23 = vadd.f32 %v4427_v43, %v3276_v19  ;;  %3152 = vst.msk [vmem:[#allocation2 + $0x3a8] sm:$0xff] %vm1454_vm3, %v3024_v14  ;;  %v4989_v25 = vadd.f32 %v8404_v10, %v4854_v22  ;;  %v5114_v27 = vmax.f32 %v4986_v21, 0.0  ;;  %v6551_v31 = vpack.c.bf16 %v5116_v24, %v5116_v24  ;;  %v3281_v38 = vld [vmem:[#allocation2 + $0x3b0] sm:$0xff]  ;;  %v3279_v45 = vld [vmem:[#allocation2 + $0x3a0] sm:$0xff]  ;;  %v2879_v48 = vpop.f32.mrb[187].mxu1 }
 0x25b   : > { %v4852_v26 = vld [vmem:[#allocation2 + $0x368] sm:$0xff]  ;;  %4730 = vst.msk [vmem:[#allocation2 + $0x398] sm:$0xff] %vm1454_vm3, %v4602_v18  ;;  %v4605_v44 = vadd.f32 %v7144_v1, %v3281_v38  ;;  %3157 = vst.msk [vmem:[#allocation2 + $0x3d0] sm:$0xff] %vm1454_vm3, %v3029_v33  ;;  %v3030_v46 = vadd.f32 %v7019_v40, %v1706_v39  ;;  %v4603_v53 = vadd.f32 %v4440_v8, %v3279_v45  ;;  %v7149_v56 = vpop.f32.mrb[186].mxu0  ;;  %v1710_v17 = vld [vmem:[#allocation2 + $0x3f8] sm:$0xff] }
 0x25c   : > { %v4987_v28 = vadd.f32 %v8404_v10, %v4852_v26  ;;  %4728 = vst.msk [vmem:[#allocation2 + $0x388] sm:$0xff] %vm1454_vm3, %v4600_v23  ;;  %v5117_v32 = vmax.f32 %v4989_v25, 0.0  ;;  %v6549_v36 = vpack.c.bf16 %v5114_v27, %v5114_v27  ;;  %3155 = vst.msk [vmem:[#allocation2 + $0x3c0] sm:$0xff] %vm1454_vm3, %v3027_v41  ;;  %v3028_v55 = vadd.f32 %v2879_v48, %v1704_v47  ;;  %v4459_v61 = vpop.f32.mrb[187].mxu0  ;;  %v1708_v23 = vld [vmem:[#allocation2 + $0x3e8] sm:$0xff] }
 0x25d   : > { %5757 = vst.msk [vmem:[%s7996_s4 + $0x1b8] sm:$0xf] %vm5646_vm4, %v6551_v31 }
 0x25e   : > { %v5115_v37 = vmax.f32 %v4987_v28, 0.0  ;;  %v6552_v43 = vpack.c.bf16 %v5117_v32, %v5117_v32  ;;  %5755 = vst.msk [vmem:[%s7996_s4 + $0x1b0] sm:$0xf] %vm5646_vm4, %v6549_v36  ;;  %v4857_v51 = vld [vmem:[#allocation2 + $0x390] sm:$0xff]  ;;  %v3282_v54 = vld [vmem:[#allocation2 + $0x3b8] sm:$0xff] }
 0x25f   : > { %v4992_v57 = vadd.f32 %v8404_v10, %v4857_v51  ;;  %4733 = vst.msk [vmem:[#allocation2 + $0x3b0] sm:$0xff] %vm1454_vm3, %v4605_v44  ;;  %v4606_v59 = vadd.f32 %v7145_v15, %v3282_v54  ;;  %3158 = vst.msk [vmem:[#allocation2 + $0x3d8] sm:$0xff] %vm1454_vm3, %v3030_v46  ;;  %v7022_v6 = vpop.f32.mrb[188].mxu1  ;;  %v8609_v32 = vld [vmem:[%s8670_s2] ss:$0 sm:$0xff] }
 0x260   : > { %v6550_v50 = vpack.c.bf16 %v5115_v37, %v5115_v37  ;;  %5758 = vst.msk [vmem:[%s7996_s4 + $0x1bc] sm:$0xf] %vm5646_vm4, %v6552_v43  ;;  %v3033_v9 = vadd.f32 %v7022_v6, %v1709_v5  ;;  %v2892_v12 = vpop.f32.mrb[189].mxu1  ;;  %v7152_v19 = vpop.f32.mrb[188].mxu0 }
 0x261   : > { %v4855_v58 = vld [vmem:[#allocation2 + $0x380] sm:$0xff]  ;;  %v3280_v60 = vld [vmem:[#allocation2 + $0x3a8] sm:$0xff]  ;;  %4731 = vst.msk [vmem:[#allocation2 + $0x3a0] sm:$0xff] %vm1454_vm3, %v4603_v53  ;;  %3156 = vst.msk [vmem:[#allocation2 + $0x3c8] sm:$0xff] %vm1454_vm3, %v3028_v55  ;;  %v5120_v0 = vmax.f32 %v4992_v57, 0.0  ;;  %v3031_v16 = vadd.f32 %v2892_v12, %v1707_v11  ;;  %v7023_v18 = vpop.f32.mrb[190].mxu1 }
 0x262   : > { %5756 = vst.msk [vmem:[%s7996_s4 + $0x1b4] sm:$0xf] %vm5646_vm4, %v6550_v50  ;;  %v4990_v52 = vadd.f32 %v8404_v10, %v4855_v58  ;;  %v4858_v62 = vld [vmem:[#allocation2 + $0x398] sm:$0xff]  ;;  %v4604_v63 = vadd.f32 %v4443_v20, %v3280_v60  ;;  %v3285_v15 = vld [vmem:[#allocation2 + $0x3d0] sm:$0xff]  ;;  %v3034_v22 = vadd.f32 %v7023_v18, %v1710_v17  ;;  %v2895_v24 = vpop.f32.mrb[191].mxu1  ;;  %v4472_v25 = vpop.f32.mrb[189].mxu0 }
 0x263   : > { %v4993_v1 = vadd.f32 %v8404_v10, %v4858_v62  ;;  %v4856_v2 = vld [vmem:[#allocation2 + $0x388] sm:$0xff]  ;;  %4734 = vst.msk [vmem:[#allocation2 + $0x3b8] sm:$0xff] %vm1454_vm3, %v4606_v59  ;;  %v6555_v7 = vpack.c.bf16 %v5120_v0, %v5120_v0  ;;  %v4609_v20 = vadd.f32 %v7148_v42, %v3285_v15  ;;  %3161 = vst.msk [vmem:[#allocation2 + $0x3f0] sm:$0xff] %vm1454_vm3, %v3033_v9  ;;  %v3283_v21 = vld [vmem:[#allocation2 + $0x3c0] sm:$0xff]  ;;  %v7153_v31 = vpop.f32.mrb[190].mxu0 }
 0x264   : > { %v5118_v3 = vmax.f32 %v4990_v52, 0.0  ;;  %v4991_v4 = vadd.f32 %v8404_v10, %v4856_v2  ;;  %4732 = vst.msk [vmem:[#allocation2 + $0x3a8] sm:$0xff] %vm1454_vm3, %v4604_v63  ;;  %v4607_v28 = vadd.f32 %v4456_v49, %v3283_v21  ;;  %3159 = vst.msk [vmem:[#allocation2 + $0x3e0] sm:$0xff] %vm1454_vm3, %v3031_v16  ;;  %v3032_v30 = vadd.f32 %v2895_v24, %v1708_v23  ;;  %v4475_v37 = vpop.f32.mrb[191].mxu0 }
 0x265   : > { %v5121_v8 = vmax.f32 %v4993_v1, 0.0  ;;  %5761 = vst.msk [vmem:[%s7996_s4 + $0x1c8] sm:$0xf] %vm5646_vm4, %v6555_v7 }
 0x266   : > { %v6553_v13 = vpack.c.bf16 %v5118_v3, %v5118_v3  ;;  %v5119_v14 = vmax.f32 %v4991_v4, 0.0  ;;  %v4861_v27 = vld [vmem:[#allocation2 + $0x3b0] sm:$0xff]  ;;  %v3286_v29 = vld [vmem:[#allocation2 + $0x3d8] sm:$0xff]  ;;  %4737 = vst.msk [vmem:[#allocation2 + $0x3d0] sm:$0xff] %vm1454_vm3, %v4609_v20  ;;  %3162 = vst.msk [vmem:[#allocation2 + $0x3f8] sm:$0xff] %vm1454_vm3, %v3034_v22 }
 0x267   : > { %v6556_v10 = vpack.c.bf16 %v5121_v8, %v5121_v8  ;;  %v4996_v33 = vadd.f32 %v8609_v32, %v4861_v27  ;;  %v4610_v35 = vadd.f32 %v7149_v56, %v3286_v29  ;;  %4735 = vst.msk [vmem:[#allocation2 + $0x3c0] sm:$0xff] %vm1454_vm3, %v4607_v28  ;;  %3160 = vst.msk [vmem:[#allocation2 + $0x3e8] sm:$0xff] %vm1454_vm3, %v3032_v30 }
 0x268   : > { %5759 = vst.msk [vmem:[%s7996_s4 + $0x1c0] sm:$0xf] %vm5646_vm4, %v6553_v13  ;;  %v6554_v26 = vpack.c.bf16 %v5119_v14, %v5119_v14  ;;  %v4859_v34 = vld [vmem:[#allocation2 + $0x3a0] sm:$0xff]  ;;  %v3284_v36 = vld [vmem:[#allocation2 + $0x3c8] sm:$0xff] }
 0x269   : > { %5762 = vst.msk [vmem:[%s7996_s4 + $0x1cc] sm:$0xf] %vm5646_vm4, %v6556_v10  ;;  %v4994_v38 = vadd.f32 %v8609_v32, %v4859_v34  ;;  %v4608_v39 = vadd.f32 %v4459_v61, %v3284_v36  ;;  %v5124_v40 = vmax.f32 %v4996_v33, 0.0 }
 0x26a   : > { %5760 = vst.msk [vmem:[%s7996_s4 + $0x1c4] sm:$0xf] %vm5646_vm4, %v6554_v26  ;;  %v4862_v41 = vld [vmem:[#allocation2 + $0x3b8] sm:$0xff]  ;;  %v3289_v50 = vld [vmem:[#allocation2 + $0x3f0] sm:$0xff] }
 0x26b   : > { %v4997_v42 = vadd.f32 %v8609_v32, %v4862_v41  ;;  %v4860_v43 = vld [vmem:[#allocation2 + $0x3a8] sm:$0xff]  ;;  %4738 = vst.msk [vmem:[#allocation2 + $0x3d8] sm:$0xff] %vm1454_vm3, %v4610_v35  ;;  %v5122_v44 = vmax.f32 %v4994_v38, 0.0  ;;  %4736 = vst.msk [vmem:[#allocation2 + $0x3c8] sm:$0xff] %vm1454_vm3, %v4608_v39  ;;  %v6559_v46 = vpack.c.bf16 %v5124_v40, %v5124_v40  ;;  %v4613_v53 = vadd.f32 %v7152_v19, %v3289_v50  ;;  %v3287_v54 = vld [vmem:[#allocation2 + $0x3e0] sm:$0xff] }
 0x26c   : > { %v4995_v45 = vadd.f32 %v8609_v32, %v4860_v43  ;;  %v4611_v57 = vadd.f32 %v4472_v25, %v3287_v54 }
 0x26d   : > { %v5125_v47 = vmax.f32 %v4997_v42, 0.0  ;;  %v6557_v48 = vpack.c.bf16 %v5122_v44, %v5122_v44  ;;  %5765 = vst.msk [vmem:[%s7996_s4 + $0x1d8] sm:$0xf] %vm5646_vm4, %v6559_v46  ;;  %v4865_v56 = vld [vmem:[#allocation2 + $0x3d0] sm:$0xff]  ;;  %v3290_v58 = vld [vmem:[#allocation2 + $0x3f8] sm:$0xff] }
 0x26e   : > { %v5123_v49 = vmax.f32 %v4995_v45, 0.0  ;;  %v5000_v59 = vadd.f32 %v8609_v32, %v4865_v56  ;;  %v4863_v60 = vld [vmem:[#allocation2 + $0x3c0] sm:$0xff]  ;;  %4741 = vst.msk [vmem:[#allocation2 + $0x3f0] sm:$0xff] %vm1454_vm3, %v4613_v53  ;;  %v4614_v61 = vadd.f32 %v7153_v31, %v3290_v58  ;;  %v3288_v52 = vld [vmem:[#allocation2 + $0x3e8] sm:$0xff]  ;;  %4739 = vst.msk [vmem:[#allocation2 + $0x3e0] sm:$0xff] %vm1454_vm3, %v4611_v57 }
 0x26f   : > { %v6560_v51 = vpack.c.bf16 %v5125_v47, %v5125_v47  ;;  %5763 = vst.msk [vmem:[%s7996_s4 + $0x1d0] sm:$0xf] %vm5646_vm4, %v6557_v48  ;;  %v4998_v62 = vadd.f32 %v8609_v32, %v4863_v60  ;;  %v4612_v0 = vadd.f32 %v4475_v37, %v3288_v52 }
 0x270   : > { %v6558_v55 = vpack.c.bf16 %v5123_v49, %v5123_v49  ;;  %v5128_v1 = vmax.f32 %v5000_v59, 0.0  ;;  %4742 = vst.msk [vmem:[#allocation2 + $0x3f8] sm:$0xff] %vm1454_vm3, %v4614_v61 }
 0x271   : > { %5766 = vst.msk [vmem:[%s7996_s4 + $0x1dc] sm:$0xf] %vm5646_vm4, %v6560_v51  ;;  %v5126_v4 = vmax.f32 %v4998_v62, 0.0 }
 0x272   : > { %5764 = vst.msk [vmem:[%s7996_s4 + $0x1d4] sm:$0xf] %vm5646_vm4, %v6558_v55  ;;  %v4866_v63 = vld [vmem:[#allocation2 + $0x3d8] sm:$0xff]  ;;  %v4864_v3 = vld [vmem:[#allocation2 + $0x3c8] sm:$0xff]  ;;  %v6563_v6 = vpack.c.bf16 %v5128_v1, %v5128_v1 }
 0x273   : > { %v5001_v2 = vadd.f32 %v8609_v32, %v4866_v63  ;;  %v4999_v5 = vadd.f32 %v8609_v32, %v4864_v3  ;;  %4740 = vst.msk [vmem:[#allocation2 + $0x3e8] sm:$0xff] %vm1454_vm3, %v4612_v0  ;;  %v6561_v8 = vpack.c.bf16 %v5126_v4, %v5126_v4 }
 0x274   : > { %5769 = vst.msk [vmem:[%s7996_s4 + $0x1e8] sm:$0xf] %vm5646_vm4, %v6563_v6 }
 0x275   : > { %v5129_v7 = vmax.f32 %v5001_v2, 0.0  ;;  %v5127_v9 = vmax.f32 %v4999_v5, 0.0  ;;  %5767 = vst.msk [vmem:[%s7996_s4 + $0x1e0] sm:$0xf] %vm5646_vm4, %v6561_v8  ;;  %v4869_v13 = vld [vmem:[#allocation2 + $0x3f0] sm:$0xff]  ;;  %v4867_v15 = vld [vmem:[#allocation2 + $0x3e0] sm:$0xff] }
 0x276   : > { %v5004_v14 = vadd.f32 %v8609_v32, %v4869_v13  ;;  %v5002_v16 = vadd.f32 %v8609_v32, %v4867_v15 }
 0x277   : > { %v6564_v11 = vpack.c.bf16 %v5129_v7, %v5129_v7  ;;  %v6562_v12 = vpack.c.bf16 %v5127_v9, %v5127_v9  ;;  %v4870_v17 = vld [vmem:[#allocation2 + $0x3f8] sm:$0xff] }
 0x278   : > { %v5132_v18 = vmax.f32 %v5004_v14, 0.0  ;;  %v5005_v19 = vadd.f32 %v8609_v32, %v4870_v17  ;;  %v5130_v20 = vmax.f32 %v5002_v16, 0.0 }
 0x279   : > { %5770 = vst.msk [vmem:[%s7996_s4 + $0x1ec] sm:$0xf] %vm5646_vm4, %v6564_v11  ;;  %5768 = vst.msk [vmem:[%s7996_s4 + $0x1e4] sm:$0xf] %vm5646_vm4, %v6562_v12 }
 0x27a   : > { %v4868_v10 = vld [vmem:[#allocation2 + $0x3e8] sm:$0xff]  ;;  %v6567_v22 = vpack.c.bf16 %v5132_v18, %v5132_v18  ;;  %v5133_v23 = vmax.f32 %v5005_v19, 0.0  ;;  %v6565_v24 = vpack.c.bf16 %v5130_v20, %v5130_v20 }
 0x27b   : > { %v5003_v21 = vadd.f32 %v8609_v32, %v4868_v10 }
 0x27c   : > { %5773 = vst.msk [vmem:[%s7996_s4 + $0x1f8] sm:$0xf] %vm5646_vm4, %v6567_v22  ;;  %v6568_v26 = vpack.c.bf16 %v5133_v23, %v5133_v23  ;;  %5771 = vst.msk [vmem:[%s7996_s4 + $0x1f0] sm:$0xf] %vm5646_vm4, %v6565_v24 }
 0x27d   : > { %v5131_v25 = vmax.f32 %v5003_v21, 0.0 }
 0x27e   : > { %5774 = vst.msk [vmem:[%s7996_s4 + $0x1fc] sm:$0xf] %vm5646_vm4, %v6568_v26 }
 0x27f   : > { %v6566_v27 = vpack.c.bf16 %v5131_v25, %v5131_v25 }
 0x281   : > { %5772 = vst.msk [vmem:[%s7996_s4 + $0x1f4] sm:$0xf] %vm5646_vm4, %v6566_v27 }
 0x282 PF: > { %s13_s14 = sadd.s32 1, %s7402_s14   ;;  %s8672_s12 = smov %s7398_s13 }
 0x283   : > { %p10_p5 = scmp.ge.s32.totalorder %s13_s14, 4   ;;  %s8673_s13 = smov %s8675_s15 }
 0x285   :  { %12 = sbr.rel (!%p10_p5) target bundleno = 2 (0x2), region = 70 }

</bundles_post_ra>
